<compile_context>
chip_gen: v7x
topology: tpu7x:2x2x1
jax: 0.10.0
libtpu: 0.0.40
codegen_flags: <defaults>
</compile_context>

<pallas_src>
import functools

import numpy as np
import jax
import jax.numpy as jnp
from jax import lax
from jax.experimental import pallas as pl
from jax.experimental.pallas import tpu as pltpu

EPS = 1e-5
NUM_GROUPS = 4

# Matmul precision for the activation matmuls (conv1x1 / bilinear / conv3x3).
# Kept at HIGHEST here: after removing the shift-matrix matmuls this kernel is
# overhead/VPU-bound at these shapes (MXU work is ~0.4 MFLOP per sample), and
# HIGHEST keeps the tight 2e-3 check against the f32 reference valid.  At
# production sizes drop this to lax.Precision.DEFAULT (per the perf review) and
# re-validate the tolerance against bf16 operand rounding.
ACT_PREC = lax.Precision.HIGHEST
STAT_PREC = lax.Precision.HIGHEST   # tiny (C,C)@(C,128) stat matmuls; negligible


# ----------------------------- kernel ------------------------------------- #

def _gn_relu(y, gavg, gamma, beta):
    """GroupNorm (affine, biased variance) + ReLU on a (C, HW) tile.

    Stats are computed as lane reductions first (per-channel spatial mean and
    mean-of-squares) and then group-averaged with the tiny (C, C) `gavg`
    matrix — by linearity identical to averaging the full (C, HW) tile, but
    without any full-width statistic matmul.  The (C,1) stats are broadcast to
    a 128-lane slab so the group-average matmul keeps a plain (C,C)@(C,128)
    shape (every column identical); column 0 is sliced back out.
    """
    c = y.shape[0]
    mean_c = jnp.mean(y, axis=1, keepdims=True)          # (C, 1)  lane reduce
    ex2_c = jnp.mean(y * y, axis=1, keepdims=True)       # (C, 1)
    mean = jnp.dot(gavg, jnp.broadcast_to(mean_c, (c, 128)),
                   precision=STAT_PREC,
                   preferred_element_type=jnp.float32)[:, 0:1]     # (C, 1)
    ex2 = jnp.dot(gavg, jnp.broadcast_to(ex2_c, (c, 128)),
                  precision=STAT_PREC,
                  preferred_element_type=jnp.float32)[:, 0:1]      # (C, 1)
    var = jnp.maximum(ex2 - mean * mean, 0.0)            # guard cancellation
    yn = (y - mean) * lax.rsqrt(var + EPS)
    return jnp.maximum(yn * gamma + beta, 0.0)


def _decoder_block_kernel(ws, pad, x_ref, xs_ref, w1_ref, g1_ref, b1_ref,
                          m_ref, w3_ref, g2_ref, b2_ref, gavg_ref, mask_ref,
                          o_ref, pad_ref):
    x = x_ref[0]                  # (Cin, Hin*Win)
    xs = xs_ref[0]                # (C,   Hs*Ws)
    gavg = gavg_ref[...]          # (C, C)
    c, hws = xs.shape

    # ---- layer1: 1x1 conv (no bias) + GroupNorm + ReLU ----
    y = jnp.dot(w1_ref[...], x, precision=ACT_PREC,
                preferred_element_type=jnp.float32)               # (C, HWin)
    y = _gn_relu(y, gavg, g1_ref[...], b1_ref[...])

    # ---- bilinear upsample (align_corners=True) as a single matmul ----
    y = jnp.dot(y, m_ref[...], precision=ACT_PREC,
                preferred_element_type=jnp.float32)               # (C, HWs)
    y = y + xs

    # ---- layer2: 2 x (3x3 conv pad=1, no bias) + GroupNorm + ReLU ----
    # y is stored into the middle of a zero-halo VMEM buffer; each tap is a
    # static lane-offset slice of that buffer (zero MXU cost), masked where a
    # column shift would wrap across rows.  The 9 taps are stacked along the
    # contracting dim so each conv layer is ONE (C,9C)@(9C,HWs) MXU matmul.
    zeros_halo = jnp.zeros((c, pad), jnp.float32)
    pad_ref[:, :pad] = zeros_halo                 # left halo  (lane-aligned)
    pad_ref[:, pad + hws:] = zeros_halo           # right halo (lane-aligned)

    for n in range(2):
        pad_ref[:, pad:pad + hws] = y             # lane-aligned store
        taps = []
        for k in range(9):
            dy, dx = k // 3 - 1, k % 3 - 1
            s = dy * ws + dx                      # flat-lane offset of tap k
            t = pad_ref[:, pad + s:pad + s + hws]
            if dx != 0:
                # column shifts wrap into the neighbouring row: mask them.
                # (pure row shifts fall into the zero halo automatically)
                t = t * mask_ref[k]               # (1, HWs) broadcast over C
            taps.append(t)
        slab = jnp.concatenate(taps, axis=0)      # (9C, HWs)
        y = jnp.dot(w3_ref[n], slab, precision=ACT_PREC,
                    preferred_element_type=jnp.float32)           # (C, HWs)
        y = _gn_relu(y, gavg, g2_ref[n], b2_ref[n])

    o_ref[0] = y


# ------------------------- host-side constant setup ----------------------- #

def _bilinear_matrix(out_size, in_size):
    """Row-interp matrix for F.interpolate(mode='bilinear', align_corners=True)."""
    A = np.zeros((out_size, in_size), np.float32)
    for o in range(out_size):
        s = 0.0 if out_size == 1 else o * (in_size - 1) / (out_size - 1)
        i0 = int(np.floor(s))
        i1 = min(i0 + 1, in_size - 1)
        w = s - i0
        A[o, i0] += 1.0 - w
        A[o, i1] += w
    return A


def _tap_masks(H, W):
    """mask[k, 0, i*W+j] = 1 iff 3x3 tap k=(ky*3+kx) reads inside the image."""
    m = np.zeros((9, 1, H * W), np.float32)
    for k in range(9):
        dy, dx = k // 3 - 1, k % 3 - 1
        for i in range(H):
            for j in range(W):
                if 0 <= i + dy < H and 0 <= j + dx < W:
                    m[k, 0, i * W + j] = 1.0
    return m


def _group_avg_matrix(C, G):
    Cg = C // G
    m = np.zeros((C, C), np.float32)
    for g in range(G):
        m[g * Cg:(g + 1) * Cg, g * Cg:(g + 1) * Cg] = 1.0 / Cg
    return m


# ------------------------------ wrapper ------------------------------------ #

def decoder_block(x, x_side, params, num_groups=NUM_GROUPS):
    N, Cin, Hin, Win = x.shape
    _, C, Hs, Ws = x_side.shape
    HWin, HWs = Hin * Win, Hs * Ws

    x2 = x.reshape(N, Cin, HWin)
    xs2 = x_side.reshape(N, C, HWs)

    # halo width: >= Ws+1 (max tap offset) rounded up to a 128-lane tile so
    # the halo / middle stores are lane-aligned.
    pad = ((Ws + 1 + 127) // 128) * 128

    # constants
    # TODO(synk): separable (H-then-W) interp at production sizes; kron is fine
    # while HWin*HWs*4B stays far below the scoped-VMEM budget (64 KiB here).
    M = np.kron(_bilinear_matrix(Hs, Hin), _bilinear_matrix(Ws, Win))  # (HWs, HWin)
    mT = jnp.asarray(M.T)                                              # (HWin, HWs)
    masks = jnp.asarray(_tap_masks(Hs, Ws))                            # (9, 1, HWs)
    gavg = jnp.asarray(_group_avg_matrix(C, num_groups))               # (C, C)

    # parameters (PyTorch OIHW conv weights -> matmul-friendly layouts)
    w1 = params['w1']                                                  # (C, Cin)
    g1 = params['g1'].reshape(C, 1)
    b1 = params['b1'].reshape(C, 1)
    # (2, Cout, Cin, 3, 3) -> (2, Cout, ky, kx, Cin) -> (2, Cout, 9*Cin):
    # column k*Cin+ci of w3f[n] multiplies tap k=(ky*3+kx) of input channel ci.
    w3f = jnp.transpose(params['w3'], (0, 1, 3, 4, 2)).reshape(2, C, 9 * C)
    g2 = params['g2'].reshape(2, C, 1)
    b2 = params['b2'].reshape(2, C, 1)

    def full(shape):
        rank = len(shape)
        return pl.BlockSpec(shape, lambda n, _r=rank: (0,) * _r)

    kernel = functools.partial(_decoder_block_kernel, Ws, pad)

    out = pl.pallas_call(
        kernel,
        out_shape=jax.ShapeDtypeStruct((N, C, HWs), jnp.float32),
        grid_spec=pltpu.PrefetchScalarGridSpec(
            num_scalar_prefetch=0,
            grid=(N,),
            in_specs=[
                pl.BlockSpec((1, Cin, HWin), lambda n: (n, 0, 0)),   # x
                pl.BlockSpec((1, C, HWs), lambda n: (n, 0, 0)),      # x_side
                full((C, Cin)),                                      # w1
                full((C, 1)), full((C, 1)),                          # g1, b1
                full((HWin, HWs)),                                   # interp matrix
                full((2, C, 9 * C)),                                 # fused 3x3 weights
                full((2, C, 1)), full((2, C, 1)),                    # g2, b2
                full((C, C)),                                        # group-avg matrix
                full((9, 1, HWs)),                                   # tap validity masks
            ],
            out_specs=pl.BlockSpec((1, C, HWs), lambda n: (n, 0, 0)),
            scratch_shapes=[pltpu.VMEM((C, HWs + 2 * pad), jnp.float32)],
        ),
        compiler_params=pltpu.CompilerParams(
            # batch items are independent -> shard over v7x's two TensorCores
            dimension_semantics=("parallel",),
            vmem_limit_bytes=32 * 1024 * 1024,
        ),
    )(x2, xs2, w1, g1, b1, mT, w3f, g2, b2, gavg, masks)

    return out.reshape(N, C, Hs, Ws)


# ------------------------------ reference ---------------------------------- #

def _reference(x, x_side, params, num_groups=NUM_GROUPS):
    def gn_relu(y, gamma, beta):
        N, C, H, W = y.shape
        yg = y.reshape(N, num_groups, C // num_groups, H, W)
        mean = yg.mean(axis=(2, 3, 4), keepdims=True)
        var = ((yg - mean) ** 2).mean(axis=(2, 3, 4), keepdims=True)
        yn = ((yg - mean) / jnp.sqrt(var + EPS)).reshape(N, C, H, W)
        return jax.nn.relu(yn * gamma.reshape(1, C, 1, 1) + beta.reshape(1, C, 1, 1))

    y = jnp.einsum('oc,nchw->nohw', params['w1'], x, precision=lax.Precision.HIGHEST)
    y = gn_relu(y, params['g1'], params['b1'])

    Hs, Ws = x_side.shape[2:]
    Hin, Win = y.shape[2:]

    def idx(out_size, in_size):
        o = jnp.arange(out_size, dtype=jnp.float32)
        s = o * (in_size - 1) / max(out_size - 1, 1)
        i0 = jnp.floor(s).astype(jnp.int32)
        i1 = jnp.minimum(i0 + 1, in_size - 1)
        return i0, i1, s - i0

    h0, h1, wh = idx(Hs, Hin)
    w0, w1, ww = idx(Ws, Win)
    yh = (jnp.take(y, h0, axis=2) * (1.0 - wh)[None, None, :, None]
          + jnp.take(y, h1, axis=2) * wh[None, None, :, None])
    y = jnp.take(yh, w0, axis=3) * (1.0 - ww) + jnp.take(yh, w1, axis=3) * ww
    y = y + x_side

    for n in range(2):
        y = lax.conv_general_dilated(
            y, params['w3'][n], (1, 1), 'SAME',
            dimension_numbers=('NCHW', 'OIHW', 'NCHW'),
            precision=lax.Precision.HIGHEST)
        y = gn_relu(y, params['g2'][n], params['b2'][n])
    return y


# -------------------------------- main -------------------------------------- #

if __name__ == "__main__":
    # DecoderBlock(n_inputs=8, n_channels=8, n_layers=2)
    N, Cin, C = 2, 8, 8
    Hin, Win, Hs, Ws = 8, 8, 16, 16

    key = jax.random.PRNGKey(0)
    ks = jax.random.split(key, 8)
    params = {
        'w1': 0.2 * jax.random.normal(ks[0], (C, Cin), jnp.float32),
        'g1': 1.0 + 0.1 * jax.random.normal(ks[1], (C,), jnp.float32),
        'b1': 0.1 * jax.random.normal(ks[2], (C,), jnp.float32),
        'w3': 0.1 * jax.random.normal(ks[3], (2, C, C, 3, 3), jnp.float32),
        'g2': 1.0 + 0.1 * jax.random.normal(ks[4], (2, C), jnp.float32),
        'b2': 0.1 * jax.random.normal(ks[5], (2, C), jnp.float32),
    }
    x = jax.random.normal(ks[6], (N, Cin, Hin, Win), jnp.float32)
    x_side = jax.random.normal(ks[7], (N, C, Hs, Ws), jnp.float32)

    out = jax.block_until_ready(decoder_block(x, x_side, params))

    ref = _reference(x, x_side, params)
    assert out.shape == (N, C, Hs, Ws)
    err = float(jnp.max(jnp.abs(out - ref)))
    assert err < 2e-3, f"max abs error {err}"
    print("KERNEL_OK")
</pallas_src>

<mosaic_0001>
module attributes {stable_mosaic.version = 11 : i64} {
  func.func @_decoder_block_kernel(%arg0: i32, %arg1: memref<1x8x64xf32, #tpu.memory_space<vmem>>, %arg2: memref<1x8x256xf32, #tpu.memory_space<vmem>>, %arg3: memref<8x8xf32, #tpu.memory_space<vmem>>, %arg4: memref<8x1xf32, #tpu.memory_space<vmem>>, %arg5: memref<8x1xf32, #tpu.memory_space<vmem>>, %arg6: memref<64x256xf32, #tpu.memory_space<vmem>>, %arg7: memref<2x8x72xf32, #tpu.memory_space<vmem>>, %arg8: memref<2x8x1xf32, #tpu.memory_space<vmem>>, %arg9: memref<2x8x1xf32, #tpu.memory_space<vmem>>, %arg10: memref<8x8xf32, #tpu.memory_space<vmem>>, %arg11: memref<9x1x256xf32, #tpu.memory_space<vmem>>, %arg12: memref<1x8x256xf32, #tpu.memory_space<vmem>>, %arg13: memref<8x512xf32, #tpu.memory_space<vmem>>) attributes {dimension_semantics = [#tpu.dimension_semantics<parallel>], iteration_bounds = array<i64: 2>, scalar_prefetch = 0 : i64, scratch_operands = 1 : i64, tpu.core_type = #tpu.core_type<tc>, window_params = [{transform_indices = @transform_0, window_bounds = array<i64: 1, 8, 64>}, {transform_indices = @transform_1, window_bounds = array<i64: 1, 8, 256>}, {pipeline_mode = #tpu.pipeline_mode<synchronous>, transform_indices = @transform_2, window_bounds = array<i64: 8, 8>}, {pipeline_mode = #tpu.pipeline_mode<synchronous>, transform_indices = @transform_3, window_bounds = array<i64: 8, 1>}, {pipeline_mode = #tpu.pipeline_mode<synchronous>, transform_indices = @transform_4, window_bounds = array<i64: 8, 1>}, {pipeline_mode = #tpu.pipeline_mode<synchronous>, transform_indices = @transform_5, window_bounds = array<i64: 64, 256>}, {pipeline_mode = #tpu.pipeline_mode<synchronous>, transform_indices = @transform_6, window_bounds = array<i64: 2, 8, 72>}, {pipeline_mode = #tpu.pipeline_mode<synchronous>, transform_indices = @transform_7, window_bounds = array<i64: 2, 8, 1>}, {pipeline_mode = #tpu.pipeline_mode<synchronous>, transform_indices = @transform_8, window_bounds = array<i64: 2, 8, 1>}, {pipeline_mode = #tpu.pipeline_mode<synchronous>, transform_indices = @transform_9, window_bounds = array<i64: 8, 8>}, {pipeline_mode = #tpu.pipeline_mode<synchronous>, transform_indices = @transform_10, window_bounds = array<i64: 9, 1, 256>}, {transform_indices = @transform_11, window_bounds = array<i64: 1, 8, 256>}]} {
    %c0 = arith.constant 0 : index
    %c0_0 = arith.constant 0 : index
    %c0_1 = arith.constant 0 : index
    %0 = vector.load %arg1[%c0, %c0_0, %c0_1] : memref<1x8x64xf32, #tpu.memory_space<vmem>>, vector<1x8x64xf32>
    %1 = vector.shape_cast %0 : vector<1x8x64xf32> to vector<8x64xf32>
    %c0_2 = arith.constant 0 : index
    %c0_3 = arith.constant 0 : index
    %c0_4 = arith.constant 0 : index
    %2 = vector.load %arg2[%c0_2, %c0_3, %c0_4] : memref<1x8x256xf32, #tpu.memory_space<vmem>>, vector<1x8x256xf32>
    %3 = vector.shape_cast %2 : vector<1x8x256xf32> to vector<8x256xf32>
    %c0_5 = arith.constant 0 : index
    %c0_6 = arith.constant 0 : index
    %4 = vector.load %arg10[%c0_5, %c0_6] : memref<8x8xf32, #tpu.memory_space<vmem>>, vector<8x8xf32>
    %c0_7 = arith.constant 0 : index
    %c0_8 = arith.constant 0 : index
    %5 = vector.load %arg3[%c0_7, %c0_8] : memref<8x8xf32, #tpu.memory_space<vmem>>, vector<8x8xf32>
    %cst = arith.constant dense<0.000000e+00> : vector<8x64xf32>
    %6 = tpu.matmul %5, %1, %cst {dimension_numbers = #tpu.dot_dimension_numbers<[1], [0], [0], [1], [0, 0, 1, 1], [], []>, precision = #tpu.contract_precision<fp32>} : vector<8x8xf32>, vector<8x64xf32>, vector<8x64xf32> -> vector<8x64xf32>
    %c0_9 = arith.constant 0 : index
    %c0_10 = arith.constant 0 : index
    %7 = vector.load %arg4[%c0_9, %c0_10] : memref<8x1xf32, #tpu.memory_space<vmem>>, vector<8x1xf32>
    %c0_11 = arith.constant 0 : index
    %c0_12 = arith.constant 0 : index
    %8 = vector.load %arg5[%c0_11, %c0_12] : memref<8x1xf32, #tpu.memory_space<vmem>>, vector<8x1xf32>
    %cst_13 = arith.constant dense<0.000000e+00> : vector<8xf32>
    %9 = vector.multi_reduction <add>, %6, %cst_13 [1] : vector<8x64xf32> to vector<8xf32>
    %10 = vector.shape_cast %9 : vector<8xf32> to vector<8x1xf32>
    %cst_14 = arith.constant 6.400000e+01 : f32
    %11 = vector.broadcast %cst_14 : f32 to vector<8x1xf32>
    %12 = arith.divf %10, %11 : vector<8x1xf32>
    %13 = arith.mulf %6, %6 : vector<8x64xf32>
    %cst_15 = arith.constant dense<0.000000e+00> : vector<8xf32>
    %14 = vector.multi_reduction <add>, %13, %cst_15 [1] : vector<8x64xf32> to vector<8xf32>
    %15 = vector.shape_cast %14 : vector<8xf32> to vector<8x1xf32>
    %cst_16 = arith.constant 6.400000e+01 : f32
    %16 = vector.broadcast %cst_16 : f32 to vector<8x1xf32>
    %17 = arith.divf %15, %16 : vector<8x1xf32>
    %18 = vector.shape_cast %12 : vector<8x1xf32> to vector<8x1xf32>
    %19 = vector.broadcast %18 : vector<8x1xf32> to vector<8x128xf32>
    %cst_17 = arith.constant dense<0.000000e+00> : vector<8x128xf32>
    %20 = tpu.matmul %4, %19, %cst_17 {dimension_numbers = #tpu.dot_dimension_numbers<[1], [0], [0], [1], [0, 0, 1, 1], [], []>, precision = #tpu.contract_precision<fp32>} : vector<8x8xf32>, vector<8x128xf32>, vector<8x128xf32> -> vector<8x128xf32>
    %21 = vector.extract_strided_slice %20 {offsets = [0, 0], sizes = [8, 1], strides = [1, 1]} : vector<8x128xf32> to vector<8x1xf32>
    %22 = vector.shape_cast %17 : vector<8x1xf32> to vector<8x1xf32>
    %23 = vector.broadcast %22 : vector<8x1xf32> to vector<8x128xf32>
    %cst_18 = arith.constant dense<0.000000e+00> : vector<8x128xf32>
    %24 = tpu.matmul %4, %23, %cst_18 {dimension_numbers = #tpu.dot_dimension_numbers<[1], [0], [0], [1], [0, 0, 1, 1], [], []>, precision = #tpu.contract_precision<fp32>} : vector<8x8xf32>, vector<8x128xf32>, vector<8x128xf32> -> vector<8x128xf32>
    %25 = vector.extract_strided_slice %24 {offsets = [0, 0], sizes = [8, 1], strides = [1, 1]} : vector<8x128xf32> to vector<8x1xf32>
    %26 = arith.mulf %21, %21 : vector<8x1xf32>
    %27 = arith.subf %25, %26 : vector<8x1xf32>
    %cst_19 = arith.constant 0.000000e+00 : f32
    %28 = vector.broadcast %cst_19 : f32 to vector<8x1xf32>
    %29 = arith.maximumf %27, %28 : vector<8x1xf32>
    %30 = vector.broadcast %21 : vector<8x1xf32> to vector<8x64xf32>
    %31 = arith.subf %6, %30 : vector<8x64xf32>
    %cst_20 = arith.constant 9.99999974E-6 : f32
    %32 = vector.broadcast %cst_20 : f32 to vector<8x1xf32>
    %33 = arith.addf %29, %32 : vector<8x1xf32>
    %34 = math.rsqrt %33 : vector<8x1xf32>
    %35 = vector.broadcast %34 : vector<8x1xf32> to vector<8x64xf32>
    %36 = arith.mulf %31, %35 : vector<8x64xf32>
    %37 = vector.broadcast %7 : vector<8x1xf32> to vector<8x64xf32>
    %38 = arith.mulf %36, %37 : vector<8x64xf32>
    %39 = vector.broadcast %8 : vector<8x1xf32> to vector<8x64xf32>
    %40 = arith.addf %38, %39 : vector<8x64xf32>
    %cst_21 = arith.constant 0.000000e+00 : f32
    %41 = vector.broadcast %cst_21 : f32 to vector<8x64xf32>
    %42 = arith.maximumf %40, %41 : vector<8x64xf32>
    %c0_22 = arith.constant 0 : index
    %c0_23 = arith.constant 0 : index
    %43 = vector.load %arg6[%c0_22, %c0_23] : memref<64x256xf32, #tpu.memory_space<vmem>>, vector<64x256xf32>
    %cst_24 = arith.constant dense<0.000000e+00> : vector<8x256xf32>
    %44 = tpu.matmul %42, %43, %cst_24 {dimension_numbers = #tpu.dot_dimension_numbers<[1], [0], [0], [1], [0, 0, 1, 1], [], []>, precision = #tpu.contract_precision<fp32>} : vector<8x64xf32>, vector<64x256xf32>, vector<8x256xf32> -> vector<8x256xf32>
    %45 = arith.addf %44, %3 : vector<8x256xf32>
    %cst_25 = arith.constant 0.000000e+00 : f32
    %46 = vector.broadcast %cst_25 : f32 to vector<8x128xf32>
    %c0_26 = arith.constant 0 : index
    %c0_27 = arith.constant 0 : index
    %47 = vector.load %arg13[%c0_26, %c0_27] : memref<8x512xf32, #tpu.memory_space<vmem>>, vector<8x128xf32>
    tpu.vector_store %arg13[%c0_26, %c0_27], %46 {strides = array<i32>} : memref<8x512xf32, #tpu.memory_space<vmem>>, vector<8x128xf32>,
    %c0_28 = arith.constant 0 : index
    %c384 = arith.constant 384 : index
    %48 = vector.load %arg13[%c0_28, %c384] : memref<8x512xf32, #tpu.memory_space<vmem>>, vector<8x128xf32>
    tpu.vector_store %arg13[%c0_28, %c384], %46 {strides = array<i32>} : memref<8x512xf32, #tpu.memory_space<vmem>>, vector<8x128xf32>,
    %c0_29 = arith.constant 0 : index
    %c128 = arith.constant 128 : index
    %49 = vector.load %arg13[%c0_29, %c128] : memref<8x512xf32, #tpu.memory_space<vmem>>, vector<8x256xf32>
    tpu.vector_store %arg13[%c0_29, %c128], %45 {strides = array<i32>} : memref<8x512xf32, #tpu.memory_space<vmem>>, vector<8x256xf32>,
    %c0_30 = arith.constant 0 : index
    %c111 = arith.constant 111 : index
    %50 = vector.load %arg13[%c0_30, %c111] : memref<8x512xf32, #tpu.memory_space<vmem>>, vector<8x256xf32>
    %c0_31 = arith.constant 0 : index
    %c0_32 = arith.constant 0 : index
    %c0_33 = arith.constant 0 : index
    %51 = vector.load %arg11[%c0_31, %c0_32, %c0_33] : memref<9x1x256xf32, #tpu.memory_space<vmem>>, vector<1x1x256xf32>
    %52 = vector.shape_cast %51 : vector<1x1x256xf32> to vector<1x256xf32>
    %53 = vector.broadcast %52 : vector<1x256xf32> to vector<8x256xf32>
    %54 = arith.mulf %50, %53 : vector<8x256xf32>
    %c0_34 = arith.constant 0 : index
    %c112 = arith.constant 112 : index
    %55 = vector.load %arg13[%c0_34, %c112] : memref<8x512xf32, #tpu.memory_space<vmem>>, vector<8x256xf32>
    %c0_35 = arith.constant 0 : index
    %c113 = arith.constant 113 : index
    %56 = vector.load %arg13[%c0_35, %c113] : memref<8x512xf32, #tpu.memory_space<vmem>>, vector<8x256xf32>
    %c2 = arith.constant 2 : index
    %c0_36 = arith.constant 0 : index
    %c0_37 = arith.constant 0 : index
    %57 = vector.load %arg11[%c2, %c0_36, %c0_37] : memref<9x1x256xf32, #tpu.memory_space<vmem>>, vector<1x1x256xf32>
    %58 = vector.shape_cast %57 : vector<1x1x256xf32> to vector<1x256xf32>
    %59 = vector.broadcast %58 : vector<1x256xf32> to vector<8x256xf32>
    %60 = arith.mulf %56, %59 : vector<8x256xf32>
    %c0_38 = arith.constant 0 : index
    %c127 = arith.constant 127 : index
    %61 = vector.load %arg13[%c0_38, %c127] : memref<8x512xf32, #tpu.memory_space<vmem>>, vector<8x256xf32>
    %c3 = arith.constant 3 : index
    %c0_39 = arith.constant 0 : index
    %c0_40 = arith.constant 0 : index
    %62 = vector.load %arg11[%c3, %c0_39, %c0_40] : memref<9x1x256xf32, #tpu.memory_space<vmem>>, vector<1x1x256xf32>
    %63 = vector.shape_cast %62 : vector<1x1x256xf32> to vector<1x256xf32>
    %64 = vector.broadcast %63 : vector<1x256xf32> to vector<8x256xf32>
    %65 = arith.mulf %61, %64 : vector<8x256xf32>
    %c0_41 = arith.constant 0 : index
    %c128_42 = arith.constant 128 : index
    %66 = vector.load %arg13[%c0_41, %c128_42] : memref<8x512xf32, #tpu.memory_space<vmem>>, vector<8x256xf32>
    %c0_43 = arith.constant 0 : index
    %c129 = arith.constant 129 : index
    %67 = vector.load %arg13[%c0_43, %c129] : memref<8x512xf32, #tpu.memory_space<vmem>>, vector<8x256xf32>
    %c5 = arith.constant 5 : index
    %c0_44 = arith.constant 0 : index
    %c0_45 = arith.constant 0 : index
    %68 = vector.load %arg11[%c5, %c0_44, %c0_45] : memref<9x1x256xf32, #tpu.memory_space<vmem>>, vector<1x1x256xf32>
    %69 = vector.shape_cast %68 : vector<1x1x256xf32> to vector<1x256xf32>
    %70 = vector.broadcast %69 : vector<1x256xf32> to vector<8x256xf32>
    %71 = arith.mulf %67, %70 : vector<8x256xf32>
    %c0_46 = arith.constant 0 : index
    %c143 = arith.constant 143 : index
    %72 = vector.load %arg13[%c0_46, %c143] : memref<8x512xf32, #tpu.memory_space<vmem>>, vector<8x256xf32>
    %c6 = arith.constant 6 : index
    %c0_47 = arith.constant 0 : index
    %c0_48 = arith.constant 0 : index
    %73 = vector.load %arg11[%c6, %c0_47, %c0_48] : memref<9x1x256xf32, #tpu.memory_space<vmem>>, vector<1x1x256xf32>
    %74 = vector.shape_cast %73 : vector<1x1x256xf32> to vector<1x256xf32>
    %75 = vector.broadcast %74 : vector<1x256xf32> to vector<8x256xf32>
    %76 = arith.mulf %72, %75 : vector<8x256xf32>
    %c0_49 = arith.constant 0 : index
    %c144 = arith.constant 144 : index
    %77 = vector.load %arg13[%c0_49, %c144] : memref<8x512xf32, #tpu.memory_space<vmem>>, vector<8x256xf32>
    %c0_50 = arith.constant 0 : index
    %c145 = arith.constant 145 : index
    %78 = vector.load %arg13[%c0_50, %c145] : memref<8x512xf32, #tpu.memory_space<vmem>>, vector<8x256xf32>
    %c8 = arith.constant 8 : index
    %c0_51 = arith.constant 0 : index
    %c0_52 = arith.constant 0 : index
    %79 = vector.load %arg11[%c8, %c0_51, %c0_52] : memref<9x1x256xf32, #tpu.memory_space<vmem>>, vector<1x1x256xf32>
    %80 = vector.shape_cast %79 : vector<1x1x256xf32> to vector<1x256xf32>
    %81 = vector.broadcast %80 : vector<1x256xf32> to vector<8x256xf32>
    %82 = arith.mulf %78, %81 : vector<8x256xf32>
    %83 = tpu.concatenate %54, %55, %60, %65, %66, %71, %76, %77, %82 in 0 : vector<8x256xf32>, vector<8x256xf32>, vector<8x256xf32>, vector<8x256xf32>, vector<8x256xf32>, vector<8x256xf32>, vector<8x256xf32>, vector<8x256xf32>, vector<8x256xf32> -> vector<72x256xf32>
    %c0_53 = arith.constant 0 : index
    %c0_54 = arith.constant 0 : index
    %c0_55 = arith.constant 0 : index
    %84 = vector.load %arg7[%c0_53, %c0_54, %c0_55] : memref<2x8x72xf32, #tpu.memory_space<vmem>>, vector<1x8x72xf32>
    %85 = vector.shape_cast %84 : vector<1x8x72xf32> to vector<8x72xf32>
    %cst_56 = arith.constant dense<0.000000e+00> : vector<8x256xf32>
    %86 = tpu.matmul %85, %83, %cst_56 {dimension_numbers = #tpu.dot_dimension_numbers<[1], [0], [0], [1], [0, 0, 1, 1], [], []>, precision = #tpu.contract_precision<fp32>} : vector<8x72xf32>, vector<72x256xf32>, vector<8x256xf32> -> vector<8x256xf32>
    %c0_57 = arith.constant 0 : index
    %c0_58 = arith.constant 0 : index
    %c0_59 = arith.constant 0 : index
    %87 = vector.load %arg8[%c0_57, %c0_58, %c0_59] : memref<2x8x1xf32, #tpu.memory_space<vmem>>, vector<1x8x1xf32>
    %88 = vector.shape_cast %87 : vector<1x8x1xf32> to vector<8x1xf32>
    %c0_60 = arith.constant 0 : index
    %c0_61 = arith.constant 0 : index
    %c0_62 = arith.constant 0 : index
    %89 = vector.load %arg9[%c0_60, %c0_61, %c0_62] : memref<2x8x1xf32, #tpu.memory_space<vmem>>, vector<1x8x1xf32>
    %90 = vector.shape_cast %89 : vector<1x8x1xf32> to vector<8x1xf32>
    %cst_63 = arith.constant dense<0.000000e+00> : vector<8xf32>
    %91 = vector.multi_reduction <add>, %86, %cst_63 [1] : vector<8x256xf32> to vector<8xf32>
    %92 = vector.shape_cast %91 : vector<8xf32> to vector<8x1xf32>
    %cst_64 = arith.constant 2.560000e+02 : f32
    %93 = vector.broadcast %cst_64 : f32 to vector<8x1xf32>
    %94 = arith.divf %92, %93 : vector<8x1xf32>
    %95 = arith.mulf %86, %86 : vector<8x256xf32>
    %cst_65 = arith.constant dense<0.000000e+00> : vector<8xf32>
    %96 = vector.multi_reduction <add>, %95, %cst_65 [1] : vector<8x256xf32> to vector<8xf32>
    %97 = vector.shape_cast %96 : vector<8xf32> to vector<8x1xf32>
    %cst_66 = arith.constant 2.560000e+02 : f32
    %98 = vector.broadcast %cst_66 : f32 to vector<8x1xf32>
    %99 = arith.divf %97, %98 : vector<8x1xf32>
    %100 = vector.shape_cast %94 : vector<8x1xf32> to vector<8x1xf32>
    %101 = vector.broadcast %100 : vector<8x1xf32> to vector<8x128xf32>
    %cst_67 = arith.constant dense<0.000000e+00> : vector<8x128xf32>
    %102 = tpu.matmul %4, %101, %cst_67 {dimension_numbers = #tpu.dot_dimension_numbers<[1], [0], [0], [1], [0, 0, 1, 1], [], []>, precision = #tpu.contract_precision<fp32>} : vector<8x8xf32>, vector<8x128xf32>, vector<8x128xf32> -> vector<8x128xf32>
    %103 = vector.extract_strided_slice %102 {offsets = [0, 0], sizes = [8, 1], strides = [1, 1]} : vector<8x128xf32> to vector<8x1xf32>
    %104 = vector.shape_cast %99 : vector<8x1xf32> to vector<8x1xf32>
    %105 = vector.broadcast %104 : vector<8x1xf32> to vector<8x128xf32>
    %cst_68 = arith.constant dense<0.000000e+00> : vector<8x128xf32>
    %106 = tpu.matmul %4, %105, %cst_68 {dimension_numbers = #tpu.dot_dimension_numbers<[1], [0], [0], [1], [0, 0, 1, 1], [], []>, precision = #tpu.contract_precision<fp32>} : vector<8x8xf32>, vector<8x128xf32>, vector<8x128xf32> -> vector<8x128xf32>
    %107 = vector.extract_strided_slice %106 {offsets = [0, 0], sizes = [8, 1], strides = [1, 1]} : vector<8x128xf32> to vector<8x1xf32>
    %108 = arith.mulf %103, %103 : vector<8x1xf32>
    %109 = arith.subf %107, %108 : vector<8x1xf32>
    %cst_69 = arith.constant 0.000000e+00 : f32
    %110 = vector.broadcast %cst_69 : f32 to vector<8x1xf32>
    %111 = arith.maximumf %109, %110 : vector<8x1xf32>
    %112 = vector.broadcast %103 : vector<8x1xf32> to vector<8x256xf32>
    %113 = arith.subf %86, %112 : vector<8x256xf32>
    %cst_70 = arith.constant 9.99999974E-6 : f32
    %114 = vector.broadcast %cst_70 : f32 to vector<8x1xf32>
    %115 = arith.addf %111, %114 : vector<8x1xf32>
    %116 = math.rsqrt %115 : vector<8x1xf32>
    %117 = vector.broadcast %116 : vector<8x1xf32> to vector<8x256xf32>
    %118 = arith.mulf %113, %117 : vector<8x256xf32>
    %119 = vector.broadcast %88 : vector<8x1xf32> to vector<8x256xf32>
    %120 = arith.mulf %118, %119 : vector<8x256xf32>
    %121 = vector.broadcast %90 : vector<8x1xf32> to vector<8x256xf32>
    %122 = arith.addf %120, %121 : vector<8x256xf32>
    %cst_71 = arith.constant 0.000000e+00 : f32
    %123 = vector.broadcast %cst_71 : f32 to vector<8x256xf32>
    %124 = arith.maximumf %122, %123 : vector<8x256xf32>
    %c0_72 = arith.constant 0 : index
    %c128_73 = arith.constant 128 : index
    %125 = vector.load %arg13[%c0_72, %c128_73] : memref<8x512xf32, #tpu.memory_space<vmem>>, vector<8x256xf32>
    tpu.vector_store %arg13[%c0_72, %c128_73], %124 {strides = array<i32>} : memref<8x512xf32, #tpu.memory_space<vmem>>, vector<8x256xf32>,
    %c0_74 = arith.constant 0 : index
    %c111_75 = arith.constant 111 : index
    %126 = vector.load %arg13[%c0_74, %c111_75] : memref<8x512xf32, #tpu.memory_space<vmem>>, vector<8x256xf32>
    %c0_76 = arith.constant 0 : index
    %c0_77 = arith.constant 0 : index
    %c0_78 = arith.constant 0 : index
    %127 = vector.load %arg11[%c0_76, %c0_77, %c0_78] : memref<9x1x256xf32, #tpu.memory_space<vmem>>, vector<1x1x256xf32>
    %128 = vector.shape_cast %127 : vector<1x1x256xf32> to vector<1x256xf32>
    %129 = vector.broadcast %128 : vector<1x256xf32> to vector<8x256xf32>
    %130 = arith.mulf %126, %129 : vector<8x256xf32>
    %c0_79 = arith.constant 0 : index
    %c112_80 = arith.constant 112 : index
    %131 = vector.load %arg13[%c0_79, %c112_80] : memref<8x512xf32, #tpu.memory_space<vmem>>, vector<8x256xf32>
    %c0_81 = arith.constant 0 : index
    %c113_82 = arith.constant 113 : index
    %132 = vector.load %arg13[%c0_81, %c113_82] : memref<8x512xf32, #tpu.memory_space<vmem>>, vector<8x256xf32>
    %c2_83 = arith.constant 2 : index
    %c0_84 = arith.constant 0 : index
    %c0_85 = arith.constant 0 : index
    %133 = vector.load %arg11[%c2_83, %c0_84, %c0_85] : memref<9x1x256xf32, #tpu.memory_space<vmem>>, vector<1x1x256xf32>
    %134 = vector.shape_cast %133 : vector<1x1x256xf32> to vector<1x256xf32>
    %135 = vector.broadcast %134 : vector<1x256xf32> to vector<8x256xf32>
    %136 = arith.mulf %132, %135 : vector<8x256xf32>
    %c0_86 = arith.constant 0 : index
    %c127_87 = arith.constant 127 : index
    %137 = vector.load %arg13[%c0_86, %c127_87] : memref<8x512xf32, #tpu.memory_space<vmem>>, vector<8x256xf32>
    %c3_88 = arith.constant 3 : index
    %c0_89 = arith.constant 0 : index
    %c0_90 = arith.constant 0 : index
    %138 = vector.load %arg11[%c3_88, %c0_89, %c0_90] : memref<9x1x256xf32, #tpu.memory_space<vmem>>, vector<1x1x256xf32>
    %139 = vector.shape_cast %138 : vector<1x1x256xf32> to vector<1x256xf32>
    %140 = vector.broadcast %139 : vector<1x256xf32> to vector<8x256xf32>
    %141 = arith.mulf %137, %140 : vector<8x256xf32>
    %c0_91 = arith.constant 0 : index
    %c128_92 = arith.constant 128 : index
    %142 = vector.load %arg13[%c0_91, %c128_92] : memref<8x512xf32, #tpu.memory_space<vmem>>, vector<8x256xf32>
    %c0_93 = arith.constant 0 : index
    %c129_94 = arith.constant 129 : index
    %143 = vector.load %arg13[%c0_93, %c129_94] : memref<8x512xf32, #tpu.memory_space<vmem>>, vector<8x256xf32>
    %c5_95 = arith.constant 5 : index
    %c0_96 = arith.constant 0 : index
    %c0_97 = arith.constant 0 : index
    %144 = vector.load %arg11[%c5_95, %c0_96, %c0_97] : memref<9x1x256xf32, #tpu.memory_space<vmem>>, vector<1x1x256xf32>
    %145 = vector.shape_cast %144 : vector<1x1x256xf32> to vector<1x256xf32>
    %146 = vector.broadcast %145 : vector<1x256xf32> to vector<8x256xf32>
    %147 = arith.mulf %143, %146 : vector<8x256xf32>
    %c0_98 = arith.constant 0 : index
    %c143_99 = arith.constant 143 : index
    %148 = vector.load %arg13[%c0_98, %c143_99] : memref<8x512xf32, #tpu.memory_space<vmem>>, vector<8x256xf32>
    %c6_100 = arith.constant 6 : index
    %c0_101 = arith.constant 0 : index
    %c0_102 = arith.constant 0 : index
    %149 = vector.load %arg11[%c6_100, %c0_101, %c0_102] : memref<9x1x256xf32, #tpu.memory_space<vmem>>, vector<1x1x256xf32>
    %150 = vector.shape_cast %149 : vector<1x1x256xf32> to vector<1x256xf32>
    %151 = vector.broadcast %150 : vector<1x256xf32> to vector<8x256xf32>
    %152 = arith.mulf %148, %151 : vector<8x256xf32>
    %c0_103 = arith.constant 0 : index
    %c144_104 = arith.constant 144 : index
    %153 = vector.load %arg13[%c0_103, %c144_104] : memref<8x512xf32, #tpu.memory_space<vmem>>, vector<8x256xf32>
    %c0_105 = arith.constant 0 : index
    %c145_106 = arith.constant 145 : index
    %154 = vector.load %arg13[%c0_105, %c145_106] : memref<8x512xf32, #tpu.memory_space<vmem>>, vector<8x256xf32>
    %c8_107 = arith.constant 8 : index
    %c0_108 = arith.constant 0 : index
    %c0_109 = arith.constant 0 : index
    %155 = vector.load %arg11[%c8_107, %c0_108, %c0_109] : memref<9x1x256xf32, #tpu.memory_space<vmem>>, vector<1x1x256xf32>
    %156 = vector.shape_cast %155 : vector<1x1x256xf32> to vector<1x256xf32>
    %157 = vector.broadcast %156 : vector<1x256xf32> to vector<8x256xf32>
    %158 = arith.mulf %154, %157 : vector<8x256xf32>
    %159 = tpu.concatenate %130, %131, %136, %141, %142, %147, %152, %153, %158 in 0 : vector<8x256xf32>, vector<8x256xf32>, vector<8x256xf32>, vector<8x256xf32>, vector<8x256xf32>, vector<8x256xf32>, vector<8x256xf32>, vector<8x256xf32>, vector<8x256xf32> -> vector<72x256xf32>
    %c1 = arith.constant 1 : index
    %c0_110 = arith.constant 0 : index
    %c0_111 = arith.constant 0 : index
    %160 = vector.load %arg7[%c1, %c0_110, %c0_111] : memref<2x8x72xf32, #tpu.memory_space<vmem>>, vector<1x8x72xf32>
    %161 = vector.shape_cast %160 : vector<1x8x72xf32> to vector<8x72xf32>
    %cst_112 = arith.constant dense<0.000000e+00> : vector<8x256xf32>
    %162 = tpu.matmul %161, %159, %cst_112 {dimension_numbers = #tpu.dot_dimension_numbers<[1], [0], [0], [1], [0, 0, 1, 1], [], []>, precision = #tpu.contract_precision<fp32>} : vector<8x72xf32>, vector<72x256xf32>, vector<8x256xf32> -> vector<8x256xf32>
    %c1_113 = arith.constant 1 : index
    %c0_114 = arith.constant 0 : index
    %c0_115 = arith.constant 0 : index
    %163 = vector.load %arg8[%c1_113, %c0_114, %c0_115] : memref<2x8x1xf32, #tpu.memory_space<vmem>>, vector<1x8x1xf32>
    %164 = vector.shape_cast %163 : vector<1x8x1xf32> to vector<8x1xf32>
    %c1_116 = arith.constant 1 : index
    %c0_117 = arith.constant 0 : index
    %c0_118 = arith.constant 0 : index
    %165 = vector.load %arg9[%c1_116, %c0_117, %c0_118] : memref<2x8x1xf32, #tpu.memory_space<vmem>>, vector<1x8x1xf32>
    %166 = vector.shape_cast %165 : vector<1x8x1xf32> to vector<8x1xf32>
    %cst_119 = arith.constant dense<0.000000e+00> : vector<8xf32>
    %167 = vector.multi_reduction <add>, %162, %cst_119 [1] : vector<8x256xf32> to vector<8xf32>
    %168 = vector.shape_cast %167 : vector<8xf32> to vector<8x1xf32>
    %cst_120 = arith.constant 2.560000e+02 : f32
    %169 = vector.broadcast %cst_120 : f32 to vector<8x1xf32>
    %170 = arith.divf %168, %169 : vector<8x1xf32>
    %171 = arith.mulf %162, %162 : vector<8x256xf32>
    %cst_121 = arith.constant dense<0.000000e+00> : vector<8xf32>
    %172 = vector.multi_reduction <add>, %171, %cst_121 [1] : vector<8x256xf32> to vector<8xf32>
    %173 = vector.shape_cast %172 : vector<8xf32> to vector<8x1xf32>
    %cst_122 = arith.constant 2.560000e+02 : f32
    %174 = vector.broadcast %cst_122 : f32 to vector<8x1xf32>
    %175 = arith.divf %173, %174 : vector<8x1xf32>
    %176 = vector.shape_cast %170 : vector<8x1xf32> to vector<8x1xf32>
    %177 = vector.broadcast %176 : vector<8x1xf32> to vector<8x128xf32>
    %cst_123 = arith.constant dense<0.000000e+00> : vector<8x128xf32>
    %178 = tpu.matmul %4, %177, %cst_123 {dimension_numbers = #tpu.dot_dimension_numbers<[1], [0], [0], [1], [0, 0, 1, 1], [], []>, precision = #tpu.contract_precision<fp32>} : vector<8x8xf32>, vector<8x128xf32>, vector<8x128xf32> -> vector<8x128xf32>
    %179 = vector.extract_strided_slice %178 {offsets = [0, 0], sizes = [8, 1], strides = [1, 1]} : vector<8x128xf32> to vector<8x1xf32>
    %180 = vector.shape_cast %175 : vector<8x1xf32> to vector<8x1xf32>
    %181 = vector.broadcast %180 : vector<8x1xf32> to vector<8x128xf32>
    %cst_124 = arith.constant dense<0.000000e+00> : vector<8x128xf32>
    %182 = tpu.matmul %4, %181, %cst_124 {dimension_numbers = #tpu.dot_dimension_numbers<[1], [0], [0], [1], [0, 0, 1, 1], [], []>, precision = #tpu.contract_precision<fp32>} : vector<8x8xf32>, vector<8x128xf32>, vector<8x128xf32> -> vector<8x128xf32>
    %183 = vector.extract_strided_slice %182 {offsets = [0, 0], sizes = [8, 1], strides = [1, 1]} : vector<8x128xf32> to vector<8x1xf32>
    %184 = arith.mulf %179, %179 : vector<8x1xf32>
    %185 = arith.subf %183, %184 : vector<8x1xf32>
    %cst_125 = arith.constant 0.000000e+00 : f32
    %186 = vector.broadcast %cst_125 : f32 to vector<8x1xf32>
    %187 = arith.maximumf %185, %186 : vector<8x1xf32>
    %188 = vector.broadcast %179 : vector<8x1xf32> to vector<8x256xf32>
    %189 = arith.subf %162, %188 : vector<8x256xf32>
    %cst_126 = arith.constant 9.99999974E-6 : f32
    %190 = vector.broadcast %cst_126 : f32 to vector<8x1xf32>
    %191 = arith.addf %187, %190 : vector<8x1xf32>
    %192 = math.rsqrt %191 : vector<8x1xf32>
    %193 = vector.broadcast %192 : vector<8x1xf32> to vector<8x256xf32>
    %194 = arith.mulf %189, %193 : vector<8x256xf32>
    %195 = vector.broadcast %164 : vector<8x1xf32> to vector<8x256xf32>
    %196 = arith.mulf %194, %195 : vector<8x256xf32>
    %197 = vector.broadcast %166 : vector<8x1xf32> to vector<8x256xf32>
    %198 = arith.addf %196, %197 : vector<8x256xf32>
    %cst_127 = arith.constant 0.000000e+00 : f32
    %199 = vector.broadcast %cst_127 : f32 to vector<8x256xf32>
    %200 = arith.maximumf %198, %199 : vector<8x256xf32>
    %c0_128 = arith.constant 0 : index
    %c0_129 = arith.constant 0 : index
    %c0_130 = arith.constant 0 : index
    %201 = vector.load %arg12[%c0_128, %c0_129, %c0_130] : memref<1x8x256xf32, #tpu.memory_space<vmem>>, vector<1x8x256xf32>
    %202 = vector.shape_cast %201 : vector<1x8x256xf32> to vector<8x256xf32>
    %203 = vector.shape_cast %200 : vector<8x256xf32> to vector<1x8x256xf32>
    tpu.vector_store %arg12[%c0_128, %c0_129, %c0_130], %203 {strides = array<i32>} : memref<1x8x256xf32, #tpu.memory_space<vmem>>, vector<1x8x256xf32>,
    return
  }
  func.func @transform_0(%arg0: i32) -> (i32, i32, i32) {
    %c0_i32 = arith.constant 0 : i32
    %c0_i32_0 = arith.constant 0 : i32
    %c0_i32_1 = arith.constant 0 : i32
    return %arg0, %c0_i32, %c0_i32_0 : i32, i32, i32
  }
  func.func @transform_1(%arg0: i32) -> (i32, i32, i32) {
    %c0_i32 = arith.constant 0 : i32
    %c0_i32_0 = arith.constant 0 : i32
    %c0_i32_1 = arith.constant 0 : i32
    return %arg0, %c0_i32, %c0_i32_0 : i32, i32, i32
  }
  func.func @transform_2(%arg0: i32) -> (i32, i32) {
    %c0_i32 = arith.constant 0 : i32
    %c0_i32_0 = arith.constant 0 : i32
    %c0_i32_1 = arith.constant 0 : i32
    return %c0_i32, %c0_i32_0 : i32, i32
  }
  func.func @transform_3(%arg0: i32) -> (i32, i32) {
    %c0_i32 = arith.constant 0 : i32
    %c0_i32_0 = arith.constant 0 : i32
    %c0_i32_1 = arith.constant 0 : i32
    return %c0_i32, %c0_i32_0 : i32, i32
  }
  func.func @transform_4(%arg0: i32) -> (i32, i32) {
    %c0_i32 = arith.constant 0 : i32
    %c0_i32_0 = arith.constant 0 : i32
    %c0_i32_1 = arith.constant 0 : i32
    return %c0_i32, %c0_i32_0 : i32, i32
  }
  func.func @transform_5(%arg0: i32) -> (i32, i32) {
    %c0_i32 = arith.constant 0 : i32
    %c0_i32_0 = arith.constant 0 : i32
    %c0_i32_1 = arith.constant 0 : i32
    return %c0_i32, %c0_i32_0 : i32, i32
  }
  func.func @transform_6(%arg0: i32) -> (i32, i32, i32) {
    %c0_i32 = arith.constant 0 : i32
    %c0_i32_0 = arith.constant 0 : i32
    %c0_i32_1 = arith.constant 0 : i32
    %c0_i32_2 = arith.constant 0 : i32
    return %c0_i32, %c0_i32_0, %c0_i32_1 : i32, i32, i32
  }
  func.func @transform_7(%arg0: i32) -> (i32, i32, i32) {
    %c0_i32 = arith.constant 0 : i32
    %c0_i32_0 = arith.constant 0 : i32
    %c0_i32_1 = arith.constant 0 : i32
    %c0_i32_2 = arith.constant 0 : i32
    return %c0_i32, %c0_i32_0, %c0_i32_1 : i32, i32, i32
  }
  func.func @transform_8(%arg0: i32) -> (i32, i32, i32) {
    %c0_i32 = arith.constant 0 : i32
    %c0_i32_0 = arith.constant 0 : i32
    %c0_i32_1 = arith.constant 0 : i32
    %c0_i32_2 = arith.constant 0 : i32
    return %c0_i32, %c0_i32_0, %c0_i32_1 : i32, i32, i32
  }
  func.func @transform_9(%arg0: i32) -> (i32, i32) {
    %c0_i32 = arith.constant 0 : i32
    %c0_i32_0 = arith.constant 0 : i32
    %c0_i32_1 = arith.constant 0 : i32
    return %c0_i32, %c0_i32_0 : i32, i32
  }
  func.func @transform_10(%arg0: i32) -> (i32, i32, i32) {
    %c0_i32 = arith.constant 0 : i32
    %c0_i32_0 = arith.constant 0 : i32
    %c0_i32_1 = arith.constant 0 : i32
    %c0_i32_2 = arith.constant 0 : i32
    return %c0_i32, %c0_i32_0, %c0_i32_1 : i32, i32, i32
  }
  func.func @transform_11(%arg0: i32) -> (i32, i32, i32) {
    %c0_i32 = arith.constant 0 : i32
    %c0_i32_0 = arith.constant 0 : i32
    %c0_i32_1 = arith.constant 0 : i32
    return %arg0, %c0_i32, %c0_i32_0 : i32, i32, i32
  }
}

</mosaic_0001>

<bundles_post_ra>
// kernel: tpu_custom_call.1
= control target key start
LH: loop header
LB: loop body
LE: loop exit
PB: predicated region body
PF: predicated region fallthrough
CT: control target
= control target key end

     0   :  { %s9007_s0 = inlined_call_operand.hbm [shape: f32[2,8,64], index: 0, kind: input, shape index: {}]   ;;  %s9008_s1 = inlined_call_operand.vmem [shape: f32[2,8,256], index: 1, kind: input, shape index: {}]   ;;  %s9009_s2 = inlined_call_operand.hbm [shape: f32[8,8], index: 2, kind: input, shape index: {}]   ;;  %s9010_s3 = inlined_call_operand.vmem [shape: f32[8,1], index: 3, kind: input, shape index: {}]   ;;  %s9011_s4 = inlined_call_operand.vmem [shape: f32[8,1], index: 4, kind: input, shape index: {}]   ;;  %s9012_s5 = inlined_call_operand.hbm [shape: f32[64,256], index: 5, kind: input, shape index: {}]   ;;  %s9013_s6 = inlined_call_operand.vmem [shape: f32[2,8,72], index: 6, kind: input, shape index: {}]   ;;  %s9014_s7 = inlined_call_operand.vmem [shape: f32[2,8,1], index: 7, kind: input, shape index: {}]   ;;  %s9015_s8 = inlined_call_operand.vmem [shape: f32[2,8,1], index: 8, kind: input, shape index: {}]   ;;  %s9016_s9 = inlined_call_operand.vmem [shape: f32[8,8], index: 9, kind: input, shape index: {}]   ;;  %s9017_s10 = inlined_call_operand.vmem [shape: f32[9,1,256], index: 10, kind: input, shape index: {}]   ;;  %s9018_s11 = inlined_call_operand.hbm [shape: f32[2,8,256], index: 11, kind: output, shape index: {}]  }
   0x1   :  { %9061 = sst [smem:[#allocation14_spill]] %s9009_s2 }
   0x2   :  { %9062 = sst [smem:[#allocation15_spill]] %s9012_s5 }
   0x3   :  { %16 = vsyncpa [#allocation4], 0 }
   0x4   :  { %18 = vsyncpa [#allocation4 + $0x1], 0 }
   0x5   :  { %19 = vsyncpa [#allocation7], 0 }
   0x6   :  { %20 = vsyncpa [#allocation5], 0 }
   0x7   :  { %22 = vsyncpa [#allocation5 + $0x1], 0  ;;  %s7548_s17 = smov 0   ;;  %s7550_s18 = smov 0  }
   0x8   :  { %s7552_s19 = smov 0   ;;  %s7554_s20 = smov 0  }
   0x9 LB: > { %s7569_s21 = sadd.s32 4294967295, %s7465_s20   ;;  %s6500_s22 = sadd.s32 4294967294, %s7465_s20   ;;  %s7465_s20 = sphi %s7554_s20, %s9115_s20   ;;  %s7461_s19 = sphi %s7552_s19, %s9114_s19   ;;  %s7457_s18 = sphi %s7550_s18, %s9113_s18   ;;  %s7453_s17 = sphi %s7548_s17, %s9112_s17  }
   0xa   : > { %p48_p0 = scmp.ne.s32.totalorder %s7457_s18, %s7453_s17  ;;  %p9019_p1 = scmp.eq.s32.totalorder %s7569_s21, 0 }
   0xb   : > { %p293_p3 = scmp.eq.s32.totalorder %s6500_s22, 1  ;;  %p6501_p5 = scmp.ge.s32.totalorder %s7465_s20, 1 }
   0xc   : > { %p7578_p4 = por %p9019_p1, %p48_p0  ;;  %p300_p7 = scmp.lt.s32.totalorder %s7465_s20, 3 }
   0xd   : > { %p7583_p6 = por %p293_p3, %p48_p0  ;;  %s7467_s26 = smov [#allocation6]  }
   0xe   : > { %s9063_s23 = scalar_select %p7578_p4, 1, 0 }
   0xf   : > { %s9064_s24 = scalar_select %p7583_p6, 1, 0 }
  0x10   : > { %p7588_p8 = pnand %p6501_p5, %p300_p7  ;;  %s313_s27 = sshll.u32 %s7467_s26, 4  ;;  %s314_s27 = int_to_ptr.vmem [resolvable:$true] %s313_s27 }
  0x11   : > { %9065 = sst [smem:[#allocation13_spill]] %s9064_s24  ;;  %s7468_s28 = smov [#allocation8]  }
  0x12   : > { %s9066_s25 = scalar_select %p7588_p8, 1, 0 }
  0x13   : > { %p7229_p10 = pneg %p7588_p8  ;;  %s329_s29 = sshll.u32 %s7468_s28, 4  ;;  %s7601_s29 = int_to_ptr.vmem [resolvable:$true] %s329_s29 }
  0x14   : > { %s9068_s2 = sld [smem:[#allocation14_spill]] }
  0x15   : > { %p7597_p11 = pnand %p7229_p10, %p9019_p1 }
  0x17   : > { %p7311_p13 = pneg %p7597_p11 }
  0x1a   : > { %s7309_s14 = scalar_lea.hbm %s9068_s2, 128 }
  0x1b   : > { %p7310_p12 = scmp.ne.s32.totalorder %s9068_s2, %s7309_s14  ;;  %p7316_p5 = scmp.lt.u32.totalorder %s7309_s14, %s9068_s2 }
  0x1d   : > { %p7312_p0 = pnand %p7311_p13, %p7310_p12 }
  0x1f   : > { %p7313_p3 = pneg %p7312_p0 }
  0x21   : > { %p7318_p7 = pnand %p7316_p5, %p7313_p3 }
  0x23   : > { %7321 = shalt.err (!%p7318_p7)
}
  0x24   : > { %s7322_s28 = scalar_lea.vmem %s314_s27, 128  ;;  %p7330_p2 = scmp.lt.s32.totalorder %s314_s27, %s314_s27 }
  0x25   : > { %p7323_p10 = scmp.ne.s32.totalorder %s314_s27, %s7322_s28  ;;  %p7331_p6 = scmp.lt.s32.totalorder %s7322_s28, %s7322_s28 }
  0x27   : > { %p7325_p9 = pnand %p7323_p10, %p7311_p13  ;;  %p7332_p4 = por %p7331_p6, %p7330_p2 }
  0x29   : > { %p7326_p1 = pneg %p7325_p9 }
  0x2b   : > { %p7333_p8 = pnand %p7332_p4, %p7326_p1 }
  0x2d   : > { %7336 = shalt.err (!%p7333_p8)
}
  0x2e   : > { %7232 = dma.hbm_to_vmem [thread:$0]  (!%p7597_p11), %s9068_s2, 128, %s314_s27, [#allocation7]  }
  0x2f   : > { %s9069_s5 = sld [smem:[#allocation15_spill]] }
  0x35   : > { %s7337_s16 = scalar_lea.hbm %s9069_s5, 2048 }
  0x36   : > { %p7338_p9 = scmp.ne.s32.totalorder %s9069_s5, %s7337_s16  ;;  %p7344_p4 = scmp.lt.u32.totalorder %s7337_s16, %s9069_s5 }
  0x38   : > { %p7340_p2 = pnand %p7338_p9, %p7311_p13 }
  0x3a   : > { %p7341_p1 = pneg %p7340_p2 }
  0x3c   : > { %p7346_p6 = pnand %p7344_p4, %p7341_p1 }
  0x3e   : > { %7349 = shalt.err (!%p7346_p6)
}
  0x3f   : > { %s7350_s27 = scalar_lea.vmem %s7601_s29, 2048  ;;  %p7358_p3 = scmp.lt.s32.totalorder %s7601_s29, %s7601_s29 }
  0x40   : > { %p7351_p8 = scmp.ne.s32.totalorder %s7601_s29, %s7350_s27  ;;  %p7359_p5 = scmp.lt.s32.totalorder %s7350_s27, %s7350_s27 }
  0x42   : > { %p7353_p12 = pnand %p7351_p8, %p7311_p13  ;;  %p7360_p7 = por %p7359_p5, %p7358_p3 }
  0x44   : > { %p7354_p0 = pneg %p7353_p12 }
  0x46   : > { %p7361_p10 = pnand %p7360_p7, %p7354_p0 }
  0x48   : > { %7364 = shalt.err (!%p7361_p10)
}
  0x49   : > { %s7469_s24 = smov 256   ;;  %s7470_s12 = smov 16  }
  0x4a   : > { %7235 = dma.hbm_to_vmem [thread:$0]  (!%p7597_p11), %s9069_s5, 2048, %s7601_s29, [#allocation7], %s7469_s24, %s7469_s24, %s7470_s12  }
  0x4b   : > { %s7651_s15 = sadd.s32 1, %s7465_s20   ;;  %s35_s16 = sadd.s32 1, %s7461_s19 }
  0x4c   : > { %s32_s22 = ssub.s32 %s7465_s20, %s7651_s15  ;;  %p42_p13 = scmp.ne.s32.totalorder %s7461_s19, %s7457_s18 }
  0x4d   : > { %p33_p9 = scmp.eq.s32.totalorder %s32_s22, 0  ;;  %p43_p2 = scmp.eq.s32.totalorder %s7465_s20, 0 }
  0x4e   : > { %p9070_p1 = scmp.eq.s32.totalorder %s7569_s21, 1  ;;  %p7246_p6 = scmp.lt.s32.totalorder %s7465_s20, 2 }
  0x4f   : > { %s7667_s28 = scalar_select %p33_p9, %s7461_s19, %s35_s16  }
  0x50   : > { %p7661_p4 = por %p9070_p1, %p42_p13  ;;  %p44_p8 = por %p43_p2, %p42_p13 }
  0x51   : > { %s358_s30 = sand.u32 1, %s7461_s19   ;;  %s6506_s29 = sshll.u32 %s7465_s20, 7 }
  0x52   : > { %s6505_s27 = sshll.u32 %s358_s30, 3  ;;  %s7674_s13 = scalar_lea.hbm %s9007_s0, %s6506_s29 }
  0x53   : > { %s362_s14 = scalar_lea.vmem [#allocation3], %s6505_s27  ;;  %p7678_p11 = pnand %p7246_p6, %p44_p8 }
  0x54   : > { %s369_s22 = sshll.u32 %s362_s14, 4  ;;  %s359_s2 = scalar_lea.sflag [#allocation4], %s358_s30  ;;  %s7676_s22 = int_to_ptr.vmem [resolvable:$true] %s369_s22 }
  0x55   : > { %s7365_s5 = scalar_lea.hbm %s7674_s13, 128  ;;  %p7367_p0 = pneg %p7678_p11 }
  0x56   : > { %p7366_p12 = scmp.ne.s32.totalorder %s7674_s13, %s7365_s5  ;;  %s7370_s24 = scalar_lea.hbm %s9007_s0, 256 }
  0x57   : > { %p7371_p7 = scmp.lt.u32.totalorder %s7674_s13, %s9007_s0  ;;  %p7372_p10 = scmp.lt.u32.totalorder %s7370_s24, %s7365_s5 }
  0x58   : > { %p7368_p3 = pnand %p7367_p0, %p7366_p12  ;;  %p7374_p9 = scmp.lt.u32.totalorder %s7365_s5, %s7674_s13 }
  0x59   : > { %p7373_p13 = por %p7372_p10, %p7371_p7 }
  0x5a   : > { %p7369_p5 = pneg %p7368_p3 }
  0x5b   : > { %p7375_p2 = por %p7374_p9, %p7373_p13 }
  0x5d   : > { %p7376_p1 = pnand %p7375_p2, %p7369_p5 }
  0x5f   : > { %7379 = shalt.err (!%p7376_p1)
}
  0x60   : > { %s7380_s30 = scalar_lea.vmem %s7676_s22, 128  ;;  %s7471_s29 = smov [#allocation3]  }
  0x61   : > { %p7381_p6 = scmp.ne.s32.totalorder %s7676_s22, %s7380_s30  ;;  %s7385_s27 = sshll.u32 %s7471_s29, 4  ;;  %s7386_s27 = int_to_ptr.vmem [resolvable:$false] %s7385_s27 }
  0x62   : > { %s7387_s12 = scalar_lea.vmem %s7386_s27, 256  ;;  %p7388_p3 = scmp.lt.s32.totalorder %s7676_s22, %s7386_s27 }
  0x63   : > { %p7383_p8 = pnand %p7381_p6, %p7367_p0  ;;  %p7389_p7 = scmp.lt.s32.totalorder %s7387_s12, %s7380_s30 }
  0x65   : > { %p7384_p12 = pneg %p7383_p8  ;;  %p7390_p10 = por %p7389_p7, %p7388_p3 }
  0x67   : > { %p7391_p13 = pnand %p7390_p10, %p7384_p12 }
  0x69   : > { %7394 = shalt.err (!%p7391_p13)
}
  0x6a   : > { %7239 = dma.hbm_to_vmem [thread:$0]  (!%p7678_p11), %s7674_s13, 128, %s7676_s22, %s359_s2  }
  0x6b   : > { %p9073_p5 = scmp.ne.s32.totalorder %s9066_s25, 0 }
  0x6c   : > { %s7710_s5 = sand.u32 (!%p9073_p5), 1, %s7457_s18   ;;  %p9074_p0 = scmp.ne.s32.totalorder (!%p9073_p5), %s9063_s23, 0 }
  0x6d   : > { %386 = sbr.rel (%p9073_p5) target bundleno = 3652 (0xe44), region = 64  ;;  %s6508_s24 = sshll.u32 (!%p9073_p5), %s7710_s5, 3 }
  0x6e   : > { %s389_s14 = scalar_lea.sflag (!%p9073_p5), [#allocation4], %s7710_s5  ;;  %s392_s30 = scalar_lea.vmem (!%p9073_p5), [#allocation3], %s6508_s24 }
  0x74   : > { %7440 = dma.done.wait (%p9074_p0), %s389_s14, 128  }
  0x75   : > { %7442 = vsyncadd (%p9074_p0), %s389_s14, 4294967168  ;;  %p9075_p9 = scmp.eq.s32.totalorder %s7569_s21, 0 }
  0x77   : > { %7444 = dma.done.wait (%p9075_p9), [#allocation7], 2176   ;;  %p9076_p11 = pmov %p9075_p9 }
  0x78   : > { %v9023_v0 = vmov 0.0   ;;  %vm7473_vm0 = vmmov 0   ;;  %vm454_vm1 = vcmask 64512   ;;  %v449_v1 = vld [vmem:[%s392_s30] sm:$0xff]  ;;  %v453_v2 = vld [vmem:[#allocation6] sm:$0xff]  ;;  %vm906_vm2 = vcmask 523264  }
  0x79   : > { %7446 = vsyncadd (%p9076_p11), [#allocation7], 4294965120  ;;  %6623 = vmatprep.subr.mxu0 %v9023_v0  ;;  %6625 = vmatprep.mubr.msk.f32.mxu0 %vm7473_vm0, %v9023_v0  ;;  %v459_v3 = vand.u32 4294901760, %v449_v1  ;;  %v456_v4 = vsel %vm454_vm1, %v453_v2, 0  ;;  %v7474_v22 = vmov 0   ;;  %v452_v23 = vld [vmem:[%s9016_s9] sm:$0xff] }
  0x7a   : > { %6618 = vmatprep.subr.mxu1 %v9023_v0  ;;  %6620 = vmatprep.mubr.msk.f32.mxu1 %vm7473_vm0, %v9023_v0  ;;  %v524_v5 = vand.u32 4294901760, %v456_v4  ;;  %v918_v24 = vsel %vm454_vm1, %v452_v23, 0  ;;  %v904_v44 = vld [vmem:[%s9010_s3] sm:$0xff]  ;;  %v1845_v54 = vld [vmem:[#allocation8 + $0x18] sm:$0xff]  ;;  %v1842_v58 = vld [vmem:[#allocation8] sm:$0xff]  ;;  %s9031_s14 = smov 113  }
  0x7b   : > { %v536_v6 = vsub.f32 %v449_v1, %v459_v3  ;;  %6619 = vmatpush3.msra.mxu1 %v459_v3  ;;  %7302 = vset.pattern.permute.xlu1 %v7474_v22  ;;  %v7758_v25 = vand.u32 4294901760, %v918_v24  ;;  %v1843_v53 = vld [vmem:[#allocation8 + $0x8] sm:$0xff]  ;;  %v1865_v57 = vand.u32 4294901760, %v1845_v54  ;;  %v1844_v59 = vld [vmem:[#allocation8 + $0x10] sm:$0xff]  ;;  %v1863_v60 = vand.u32 4294901760, %v1842_v58  ;;  %s7476_s23 = smov 111  }
  0x7c   : > { %v525_v7 = vsub.f32 %v456_v4, %v524_v5  ;;  %6648 = vmatprep.subr.mxu1 %v9023_v0  ;;  %7301 = vset.pattern.permute.xlu0 %v7474_v22  ;;  %v1861_v56 = vand.u32 4294901760, %v1843_v53  ;;  %v1867_v61 = vand.u32 4294901760, %v1844_v59  ;;  %v905_v62 = vld [vmem:[%s9011_s4] sm:$0xff]  ;;  %v1849_v4 = vld [vmem:[#allocation8 + $0x38] sm:$0xff]  ;;  %v1852_v22 = vld [vmem:[#allocation8 + $0x50] sm:$0xff]  ;;  %s7477_s25 = smov 127  }
  0x7d   : > { %v537_v8 = vand.u32 4294901760, %v536_v6  ;;  %v7761_v26 = vsub.f32 %v918_v24, %v7758_v25  ;;  %v7824_v2 = vsub.f32 %v1842_v58, %v1863_v60  ;;  %v1883_v24 = vand.u32 4294901760, %v1852_v22  ;;  %s9029_s16 = smov 1   ;;  %s9027_s12 = smov 15  }
  0x7e   : > { %v526_v9 = vand.u32 4294901760, %v525_v7  ;;  %v7820_v63 = vpack.c.bf16 %v1865_v57, %v1861_v56  ;;  %v7822_v1 = vpack.c.bf16 %v1867_v61, %v1863_v60  ;;  %s9033_s2 = smov 17   ;;  %s9051_s13 = smov 126   ;;  %vm2552_vm3 = vcmask 924672  }
  0x7f   : > { %v538_v10 = vsub.f32 %v536_v6, %v537_v8  ;;  %v7764_v27 = vand.u32 4294901760, %v7761_v26  ;;  %s9049_s22 = smov 112   ;;  %s9047_s29 = smov 110   ;;  %vm2575_vm4 = vcmask 1039360   ;;  %vm2601_vm5 = vcmask 7168  }
  0x80   : > { %v527_v11 = vsub.f32 %v525_v7, %v526_v9  ;;  %s9045_s27 = smov 96   ;;  %p444_p2 = scmp.lt.s32.totalorder %s7569_s21, 1  ;;  %vm2624_vm6 = vcmask 121856   ;;  %vm2647_vm7 = vcmask 138240   ;;  %vm2529_vm8 = vcmask 908288  }
  0x81   : > { %v539_v12 = vand.u32 4294901760, %v538_v10  ;;  %v989_v28 = vsub.f32 %v7761_v26, %v7764_v27  ;;  %vm2728_vm9 = vcmask 777216   ;;  %vm2675_vm10 = vcmask 1031168  }
  0x82   : > { %v528_v13 = vand.u32 4294901760, %v527_v11  ;;  %s445_s24 = scalar_select %p444_p2, %s7569_s21, 1  ;;  %vm2687_vm11 = vcmask 916480   ;;  %vm2704_vm12 = vcmask 900096   ;;  %vm2716_vm13 = vcmask 785408  }
  0x83   : > { %6624 = vmatpush3.msra.mxu0 %v539_v12  ;;  %v7768_v31 = vand.u32 4294901760, %v989_v28  ;;  %vm2740_vm14 = vcmask 769024   ;;  %vm2837_vm15 = vcmask 588800  }
  0x84   : > { %6626 = vmatmul.mubr.f32.vlgmr.msra.gmra.mrb[0].mxu0 %v524_v5  ;;  %6628 = vmatprep.subr.mxu0 %v9023_v0  ;;  %s6532_s30 = sshll.u32 %s445_s24, 4  ;;  %s9094_s24 = smov 15  }
  0x85   : > { %6629 = vmatpush3.msra.mxu0 %v536_v6  ;;  %6630 = vmatprep.mubr.msk.f32.mxu0 %vm7473_vm0, %v9023_v0 }
  0x86   : > { %6633 = vmatprep.subr.mxu0 %v9023_v0  ;;  %6621 = vmatmul.mubr.f32.vlgmr.msra.gmra.mrb[0].mxu1 %v528_v13 }
  0x87   : > { %6650 = vmatprep.mubr.msk.f32.mxu1 %vm7473_vm0, %v9023_v0 }
  0x8c   : > { %6631 = vmatmul.mubr.f32.vlgmr.msra.gmra.mrb[0].mxu0 %v525_v7  ;;  %v1873_v7 = vand.u32 4294901760, %v1849_v4 }
  0x8d   : > { %6634 = vmatpush3.msra.mxu0 %v459_v3  ;;  %6635 = vmatprep.mubr.msk.f32.mxu0 %vm7473_vm0, %v9023_v0 }
  0x8e   : > { %6638 = vmatprep.subr.mxu0 %v9023_v0 }
  0x94   : > { %6636 = vmatmul.mubr.f32.vlgmr.msra.gmra.mrb[0].mxu0 %v526_v9  ;;  %v1848_v9 = vld [vmem:[#allocation8 + $0x30] sm:$0xff] }
  0x95   : > { %6639 = vmatpush3.msra.mxu0 %v537_v8  ;;  %6640 = vmatprep.mubr.msk.f32.mxu0 %vm7473_vm0, %v9023_v0  ;;  %v1846_v8 = vld [vmem:[#allocation8 + $0x20] sm:$0xff]  ;;  %v1875_v11 = vand.u32 4294901760, %v1848_v9 }
  0x96   : > { %6643 = vmatprep.subr.mxu0 %v9023_v0  ;;  %v1871_v10 = vand.u32 4294901760, %v1846_v8 }
  0x98   : > { %v7832_v13 = vpack.c.bf16 %v1875_v11, %v1871_v10 }
  0x9c   : > { %6641 = vmatmul.mubr.f32.vlgmr.msra.gmra.mrb[0].mxu0 %v524_v5 }
  0x9d   : > { %6644 = vmatpush3.msra.mxu0 %v459_v3  ;;  %6645 = vmatprep.mubr.msk.f32.mxu0 %vm7473_vm0, %v9023_v0  ;;  %v1847_v3 = vld [vmem:[#allocation8 + $0x28] sm:$0xff] }
  0x9e   : > { %6678 = vmatprep.subr.mxu0 %v9023_v0  ;;  %v1869_v6 = vand.u32 4294901760, %v1847_v3 }
  0xa0   : > { %v7830_v12 = vpack.c.bf16 %v1873_v7, %v1869_v6 }
  0xa4   : > { %6646 = vmatmul.mubr.f32.vlgmr.msra.gmra.mrb[0].mxu0 %v524_v5  ;;  %v7827_v5 = vsub.f32 %v1844_v59, %v1867_v61 }
  0xa5   : > { %6680 = vmatprep.mubr.msk.f32.mxu0 %vm7473_vm0, %v9023_v0 }
 0x159   : > { %v530_v14 = vpop.f32.mrb[0].mxu1 }
 0x15a   : > { %v6622_v15 = vpop.f32.mrb[1].mxu1 }
 0x15b   : > { %v1853_v15 = vld [vmem:[#allocation8 + $0x58] sm:$0xff] }
 0x177   : > { %v900_v16 = vpop.f32.mrb[0].mxu0 }
 0x178   : > { %v7747_v17 = vadd.f32 %v900_v16, %v530_v14  ;;  %v6647_v18 = vpop.f32.mrb[1].mxu0  ;;  %v1851_v14 = vld [vmem:[#allocation8 + $0x48] sm:$0xff]  ;;  %v7834_v16 = vsub.f32 %v1843_v53, %v1861_v56 }
 0x179   : > { %v7836_v18 = vsub.f32 %v1845_v54, %v1865_v57 }
 0x17a   : > { %v907_v19 = vsel %vm906_vm2, %v7747_v17, 0.0  ;;  %v912_v20 = vmul.f32 %v7747_v17, %v7747_v17 }
 0x17b   : > { %908 = vadd.xlane.f32.xlu0 %v907_v19  ;;  %v1877_v19 = vand.u32 4294901760, %v1851_v14 }
 0x17c   : > { %v913_v21 = vsel %vm906_vm2, %v912_v20, 0.0  ;;  %v1881_v20 = vand.u32 4294901760, %v1853_v15 }
 0x17e   : > { %v7840_v28 = vpack.c.bf16 %v1881_v20, %v1877_v19 }
 0x17f   : > { %914 = vadd.xlane.f32.xlu0 %v913_v21  ;;  %v1850_v21 = vld [vmem:[#allocation8 + $0x40] sm:$0xff] }
 0x180   : > { %v1879_v23 = vand.u32 4294901760, %v1850_v21 }
 0x195   : > { %1831 = vperm.xlu0 %7301, %v904_v44   ;;  %v7852_v44 = vsub.f32 %v1849_v4, %v1873_v7 }
 0x208   : > { %v909_v29 = vpop.xlane.xlu0 %908 }
 0x209   : > { %v911_v30 = vmul.f32 0.015625, %v909_v29  ;;  %v7842_v29 = vpack.c.bf16 %v1883_v24, %v1879_v23 }
 0x20b   : > { %v921_v32 = vand.u32 4294901760, %v911_v30 }
 0x20c   : > { %v915_v33 = vpop.xlane.xlu0 %914 }
 0x20d   : > { %v998_v34 = vsub.f32 %v911_v30, %v921_v32  ;;  %v916_v35 = vmul.f32 0.015625, %v915_v33  ;;  %6649 = vmatpush3.msra.mxu1 %v921_v32  ;;  %v1855_v30 = vld [vmem:[#allocation8 + $0x68] sm:$0xff] }
 0x20e   : > { %6651 = vmatmul.mubr.f32.vlgmr.msra.gmra.mrb[2].mxu1 %v7768_v31  ;;  %6653 = vmatprep.subr.mxu1 %v9023_v0  ;;  %v1885_v33 = vand.u32 4294901760, %v1855_v30 }
 0x20f   : > { %v999_v36 = vand.u32 4294901760, %v998_v34  ;;  %v1367_v37 = vand.u32 4294901760, %v916_v35  ;;  %6655 = vmatprep.mubr.msk.f32.mxu1 %vm7473_vm0, %v9023_v0 }
 0x211   : > { %v1444_v38 = vsub.f32 %v916_v35, %v1367_v37  ;;  %6679 = vmatpush3.msra.mxu0 %v1367_v37  ;;  %v1000_v39 = vsub.f32 %v998_v34, %v999_v36  ;;  %v1854_v35 = vld [vmem:[#allocation8 + $0x60] sm:$0xff] }
 0x212   : > { %6681 = vmatmul.mubr.f32.vlgmr.msra.gmra.mrb[2].mxu0 %v7768_v31  ;;  %6683 = vmatprep.subr.mxu0 %v9023_v0 }
 0x213   : > { %v1445_v40 = vand.u32 4294901760, %v1444_v38  ;;  %v1001_v41 = vand.u32 4294901760, %v1000_v39  ;;  %6685 = vmatprep.mubr.msk.f32.mxu0 %vm7473_vm0, %v9023_v0  ;;  %v1887_v39 = vand.u32 4294901760, %v1854_v35 }
 0x215   : > { %6654 = vmatpush3.msra.mxu1 %v1001_v41  ;;  %v1446_v42 = vsub.f32 %v1444_v38, %v1445_v40  ;;  %v9026_v41 = vand.u32 4294901760, %v7824_v2 }
 0x216   : > { %6656 = vmatmul.mubr.f32.vlgmr.msra.gmra.mrb[2].mxu1 %v7758_v25  ;;  %6658 = vmatprep.subr.mxu1 %v9023_v0 }
 0x217   : > { %6659 = vmatpush3.msra.mxu1 %v998_v34  ;;  %v1447_v43 = vand.u32 4294901760, %v1446_v42  ;;  %6660 = vmatprep.mubr.msk.f32.mxu1 %vm7473_vm0, %v9023_v0  ;;  %v9025_v42 = vand.u32 4294901760, %v7827_v5  ;;  %v1962_v59 = vsub.f32 %v7824_v2, %v9026_v41  ;;  %v6860_v41 = vpack.c.bf16 %v7836_v18, %v7834_v16 }
 0x218   : > { %6663 = vmatprep.subr.mxu1 %v9023_v0 }
 0x219   : > { %6684 = vmatpush3.msra.mxu0 %v1447_v43  ;;  %v7850_v43 = vsub.f32 %v1847_v3, %v1869_v6  ;;  %v1974_v60 = vsub.f32 %v7827_v5, %v9025_v42 }
 0x21a   : > { %6686 = vmatmul.mubr.f32.vlgmr.msra.gmra.mrb[2].mxu0 %v7758_v25  ;;  %6688 = vmatprep.subr.mxu0 %v9023_v0 }
 0x21b   : > { %6689 = vmatpush3.msra.mxu0 %v1444_v38  ;;  %6690 = vmatprep.mubr.msk.f32.mxu0 %vm7473_vm0, %v9023_v0  ;;  %v1967_v38 = vand.u32 4294901760, %v7836_v18  ;;  %v1979_v61 = vand.u32 4294901760, %v7850_v43 }
 0x21c   : > { %6693 = vmatprep.subr.mxu0 %v9023_v0 }
 0x21d   : > { %v1968_v58 = vsub.f32 %v7836_v18, %v1967_v38 }
 0x21e   : > { %6661 = vmatmul.mubr.f32.vlgmr.msra.gmra.mrb[2].mxu1 %v7761_v26 }
 0x21f   : > { %6664 = vmatpush3.msra.mxu1 %v921_v32  ;;  %6665 = vmatprep.mubr.msk.f32.mxu1 %vm7473_vm0, %v9023_v0  ;;  %v1969_v4 = vand.u32 4294901760, %v1968_v58 }
 0x220   : > { %6668 = vmatprep.subr.mxu1 %v9023_v0 }
 0x222   : > { %6691 = vmatmul.mubr.f32.vlgmr.msra.gmra.mrb[2].mxu0 %v7761_v26 }
 0x223   : > { %6694 = vmatpush3.msra.mxu0 %v1367_v37  ;;  %6695 = vmatprep.mubr.msk.f32.mxu0 %vm7473_vm0, %v9023_v0 }
 0x224   : > { %6698 = vmatprep.subr.mxu0 %v9023_v0 }
 0x226   : > { %6666 = vmatmul.mubr.f32.vlgmr.msra.gmra.mrb[2].mxu1 %v7764_v27 }
 0x227   : > { %6669 = vmatpush3.msra.mxu1 %v999_v36  ;;  %6670 = vmatprep.mubr.msk.f32.mxu1 %vm7473_vm0, %v9023_v0  ;;  %v1856_v36 = vld [vmem:[#allocation8 + $0x70] sm:$0xff] }
 0x228   : > { %6673 = vmatprep.subr.mxu1 %v9023_v0 }
 0x22a   : > { %6696 = vmatmul.mubr.f32.vlgmr.msra.gmra.mrb[2].mxu0 %v7764_v27 }
 0x22b   : > { %6699 = vmatpush3.msra.mxu0 %v1445_v40  ;;  %6700 = vmatprep.mubr.msk.f32.mxu0 %vm7473_vm0, %v9023_v0  ;;  %v1891_v40 = vand.u32 4294901760, %v1856_v36 }
 0x22c   : > { %6703 = vmatprep.subr.mxu0 %v9023_v0 }
 0x22d   : > { %v7872_v54 = vpack.c.bf16 %v1891_v40, %v1887_v39  ;;  %v7876_v56 = vsub.f32 %v1856_v36, %v1891_v40 }
 0x22e   : > { %6671 = vmatmul.mubr.f32.vlgmr.msra.gmra.mrb[2].mxu1 %v7758_v25 }
 0x22f   : > { %6674 = vmatpush3.msra.mxu1 %v921_v32  ;;  %6675 = vmatprep.mubr.msk.f32.mxu1 %vm7473_vm0, %v9023_v0  ;;  %v1857_v32 = vld [vmem:[#allocation8 + $0x78] sm:$0xff] }
 0x230   : > { %6829 = vmatprep.subr.bf16.mxu1 %v7820_v63  ;;  %v1889_v34 = vand.u32 4294901760, %v1857_v32 }
 0x232   : > { %6701 = vmatmul.mubr.f32.vlgmr.msra.gmra.mrb[2].mxu0 %v7758_v25  ;;  %v7870_v53 = vsub.f32 %v1857_v32, %v1889_v34 }
 0x233   : > { %6704 = vmatpush3.msra.mxu0 %v1367_v37  ;;  %6705 = vmatprep.mubr.msk.f32.mxu0 %vm7473_vm0, %v9023_v0  ;;  %v1955_v37 = vand.u32 4294901760, %v7834_v16 }
 0x235   : > { %v1956_v57 = vsub.f32 %v7834_v16, %v1955_v37 }
 0x236   : > { %6676 = vmatmul.mubr.f32.vlgmr.msra.gmra.mrb[2].mxu1 %v7758_v25 }
 0x237   : > { %1941 = vmatprep.mubr.f32.mxu1 %v9023_v0  ;;  %6831 = vmatpush1.bf16.msra.mxu1 %v7822_v1  ;;  %v1957_v3 = vand.u32 4294901760, %v1956_v57 }
 0x238   : > { %6833 = vmatprep.subr.bf16.mxu1 %v7830_v12 }
 0x23a   : > { %6706 = vmatmul.mubr.f32.vlgmr.msra.gmra.mrb[2].mxu0 %v7758_v25 }
 0x23b   : > { %3089 = vmatprep.mubr.f32.mxu0 %v9023_v0  ;;  %6835 = vmatpush1.bf16.msra.mxu1 %v7832_v13 }
 0x23c   : > { %6837 = vmatprep.subr.bf16.mxu1 %v7840_v28 }
 0x23f   : > { %6839 = vmatpush1.bf16.msra.mxu1 %v7842_v29 }
 0x309   : > { %v1362_v45 = vpop.f32.mrb[2].mxu1 }
 0x30a   : > { %1817 = vperm.xlu1 %7302, %v1362_v45   ;;  %v6677_v46 = vpop.f32.mrb[3].mxu1  ;;  %v1812_v47 = vmul.f32 %v1362_v45, %v1362_v45  ;;  %v7854_v45 = vsub.f32 %v1846_v8, %v1871_v10  ;;  %v1963_v8 = vand.u32 4294901760, %v1962_v59  ;;  %v1980_v10 = vsub.f32 %v7850_v43, %v1979_v61 }
 0x30b   : > { %v7856_v46 = vsub.f32 %v1848_v9, %v1875_v11  ;;  %v1975_v9 = vand.u32 4294901760, %v1974_v60  ;;  %v2039_v60 = vand.u32 4294901760, %v7870_v53 }
 0x30c   : > { %v1985_v6 = vand.u32 4294901760, %v7854_v45 }
 0x30d   : > { %v1808_v48 = vpop.f32.mrb[2].mxu0  ;;  %v1997_v7 = vand.u32 4294901760, %v7856_v46 }
 0x30e   : > { %v1813_v49 = vsub.f32 %v1808_v48, %v1812_v47  ;;  %v6707_v50 = vpop.f32.mrb[3].mxu0  ;;  %v7858_v47 = vsub.f32 %v1851_v14, %v1877_v19  ;;  %v7860_v48 = vsub.f32 %v1853_v15, %v1881_v20  ;;  %v6844_v14 = vpack.c.bf16 %v1969_v4, %v1957_v3 }
 0x30f   : > { %v7864_v50 = vsub.f32 %v1852_v22, %v1883_v24  ;;  %v1986_v15 = vsub.f32 %v7854_v45, %v1985_v6  ;;  %v1998_v19 = vsub.f32 %v7856_v46, %v1997_v7  ;;  %v1981_v22 = vand.u32 4294901760, %v1980_v10 }
 0x310   : > { %v1814_v51 = vmax.f32 %v1813_v49, 0.0  ;;  %v7862_v49 = vsub.f32 %v1850_v21, %v1879_v23  ;;  %v2003_v20 = vand.u32 4294901760, %v7858_v47  ;;  %v7901_v21 = vpack.c.bf16 %v1975_v9, %v1963_v8 }
 0x311   : > { %v2015_v24 = vand.u32 4294901760, %v7860_v48  ;;  %v1999_v32 = vand.u32 4294901760, %v1998_v19  ;;  %v9081_v16 = vpack.c.bf16 %v7860_v48, %v7858_v47 }
 0x312   : > { %v1821_v52 = vadd.f32 1e-05, %v1814_v51  ;;  %v7866_v51 = vpack.c.bf16 %v1889_v34, %v1885_v33  ;;  %v2009_v34 = vand.u32 4294901760, %v7862_v49  ;;  %v9082_v18 = vpack.c.bf16 %v7864_v50, %v7862_v49 }
 0x313   : > { %v2016_v36 = vsub.f32 %v7860_v48, %v2015_v24 }
 0x314   : > { %7303 = vrsqrt.f32 %v1821_v52  ;;  %v7868_v52 = vsub.f32 %v1855_v30, %v1885_v33  ;;  %6841 = vmatprep.subr.bf16.mxu1 %v7866_v51  ;;  %v1987_v30 = vand.u32 4294901760, %v1986_v15  ;;  %v2004_v33 = vsub.f32 %v7858_v47, %v2003_v20 }
 0x315   : > { %6843 = vmatpush1.bf16.msra.mxu1 %v7872_v54  ;;  %v2010_v59 = vsub.f32 %v7862_v49, %v2009_v34  ;;  %v2017_v3 = vand.u32 4294901760, %v2016_v36 }
 0x316   : > { %6845 = vmatprep.subr.bf16.mxu1 %v6844_v14  ;;  %v2027_v40 = vand.u32 4294901760, %v7868_v52  ;;  %v7911_v57 = vpack.c.bf16 %v1999_v32, %v1987_v30  ;;  %v2005_v58 = vand.u32 4294901760, %v2004_v33  ;;  %v2045_v14 = vand.u32 4294901760, %v7876_v56 }
 0x317   : > { %v2011_v10 = vand.u32 4294901760, %v2010_v59 }
 0x318   : > { %v2028_v8 = vsub.f32 %v7868_v52, %v2027_v40  ;;  %v7920_v15 = vpack.c.bf16 %v2017_v3, %v2005_v58  ;;  %v2046_v32 = vsub.f32 %v7876_v56, %v2045_v14  ;;  %v6862_v58 = vpack.c.bf16 %v7827_v5, %v7824_v2 }
 0x319   : > { %v6864_v3 = vpack.c.bf16 %v7852_v44, %v7850_v43 }
 0x31a   : > { %v2047_v42 = vand.u32 4294901760, %v2046_v32 }
 0x31e   : > { %v7304_v55 = vpop.eup %7303 }
 0x31f   : > { %1825 = vperm.xlu1 %7302, %v7304_v55   ;;  %v7874_v55 = vsub.f32 %v1854_v35, %v1887_v39  ;;  %v2021_v39 = vand.u32 4294901760, %v7864_v50 }
 0x321   : > { %v2022_v4 = vsub.f32 %v7864_v50, %v2021_v39  ;;  %v2033_v9 = vand.u32 4294901760, %v7874_v55 }
 0x323   : > { %1837 = vperm.xlu1 %7302, %v905_v62   ;;  %v1991_v62 = vand.u32 4294901760, %v7852_v44  ;;  %v2023_v19 = vand.u32 4294901760, %v2022_v4  ;;  %v6514_v4 = vld [vmem:[%s9017_s10 + $0x4] sm:$0x3] }
 0x325   : > { %v1992_v11 = vsub.f32 %v7852_v44, %v1991_v62  ;;  %v7924_v33 = vpack.c.bf16 %v2023_v19, %v2011_v10  ;;  %v7950_v19 = vpack.c.bf16 %v1967_v38, %v1955_v37  ;;  %v7958_v32 = vpack.c.bf16 %v1991_v62, %v1979_v61  ;;  %v2515_v62 = vld [vmem:[%s9017_s10] sm:$0x3] }
 0x326   : > { %v7964_v10 = vpack.c.bf16 %v2021_v39, %v2009_v34  ;;  %v2517_v37 = vlaneseq  ;;  %v9079_v39 = vmov 0.0  }
 0x327   : > { %v1993_v23 = vand.u32 4294901760, %v1992_v11  ;;  %v2040_v11 = vsub.f32 %v7870_v53, %v2039_v60 }
 0x328   : > { %v2518_v38 = vshrl.u32 %v2517_v37, 7 }
 0x329   : > { %v7906_v35 = vpack.c.bf16 %v1993_v23, %v1981_v22  ;;  %v2029_v22 = vand.u32 4294901760, %v2028_v8  ;;  %v2034_v23 = vsub.f32 %v7874_v55, %v2033_v9  ;;  %v2041_v30 = vand.u32 4294901760, %v2040_v11 }
 0x32a   : > { %v7966_v11 = vpack.c.bf16 %v2039_v60, %v2027_v40  ;;  %v7968_v8 = vpack.c.bf16 %v2045_v14, %v2033_v9  ;;  %v7975_v61 = vsub.s32 1, %v2518_v38  ;;  %v6516_v60 = vld [vmem:[%s9017_s10 + $0xa] sm:$0x3] }
 0x32b   : > { %v2035_v36 = vand.u32 4294901760, %v2034_v23  ;;  %v7926_v0 = vpack.c.bf16 %v2041_v30, %v2029_v22  ;;  %v9077_v22 = vand.u32 4294901760, %v7824_v2  ;;  %v9078_v23 = vand.u32 4294901760, %v7827_v5 }
 0x32c   : > { %v9083_v2 = vpack.c.bf16 %v7870_v53, %v7868_v52  ;;  %v9084_v5 = vpack.c.bf16 %v7876_v56, %v7874_v55 }
 0x32d   : > { %v7928_v59 = vpack.c.bf16 %v2047_v42, %v2035_v36  ;;  %v7956_v30 = vpack.c.bf16 %v9078_v23, %v9077_v22  ;;  %v7960_v36 = vpack.c.bf16 %v1997_v7, %v1985_v6  ;;  %v7962_v42 = vpack.c.bf16 %v2015_v24, %v2003_v20  ;;  %v6515_v24 = vld [vmem:[%s9017_s10 + $0x6] sm:$0x3]  ;;  %v6517_v23 = vld [vmem:[%s9017_s10 + $0xc] sm:$0x3] }
 0x32e   : > { %v7973_v22 = vsub.s32 0, %v2518_v38  ;;  %v2547_v7 = vrot.slane %v6514_v4, %v7975_v61  ;;  %v2570_v40 = vrot.slane %v6515_v24, %v7975_v61 }
 0x330   : > { %v2543_v6 = vrot.slane %v6514_v4, %v7973_v22  ;;  %v2520_v20 = vrot.slane %v2515_v62, %v7973_v22  ;;  %v2566_v34 = vrot.slane %v6515_v24, %v7973_v22  ;;  %v2592_v9 = vrot.slane %v6516_v60, %v7973_v22 }
 0x331   : > { %v2596_v4 = vrot.slane %v6516_v60, %v7975_v61 }
 0x332   : > { %2548 = vrot.lane.b32.xlu1 %v2543_v6, %s9031_s14  ;;  %2525 = vrot.lane.b32.xlu0 %v2520_v20, %s7476_s23  ;;  %v1832_v6 = vpop.permute.xlu0 %1831 }
 0x336   : > { %2550 = vrot.lane.b32.xlu1 %v2547_v7, %s9031_s14  ;;  %2658 = vrot.lane.b32.xlu0 %v9079_v39, %s7477_s25  ;;  %v2615_v7 = vrot.slane %v6517_v23, %v7973_v22  ;;  %s448_s14 = scalar_lea.vmem %s9008_s1, %s6532_s30 }
 0x337   : > { %v450_v48 = vld [vmem:[%s448_s14] sm:$0xff]  ;;  %v451_v52 = vld [vmem:[%s448_s14 + $0x8] sm:$0xff]  ;;  %s9041_s14 = smov 94  }
 0x33a   : > { %2571 = vrot.lane.b32.xlu1 %v2566_v34, %s7477_s25 }
 0x33e   : > { %2573 = vrot.lane.b32.xlu1 %v2570_v40, %s7477_s25  ;;  %v2619_v40 = vrot.slane %v6517_v23, %v7975_v61 }
 0x342   : > { %2597 = vrot.lane.b32.xlu1 %v2592_v9, %s9029_s16  ;;  %v6518_v9 = vld [vmem:[%s9017_s10 + $0x10] sm:$0x3] }
 0x343   : > { %v2642_v23 = vrot.slane %v6518_v9, %v7975_v61 }
 0x346   : > { %2599 = vrot.lane.b32.xlu1 %v2596_v4, %s9029_s16  ;;  %s9085_s16 = smov 17  }
 0x34a   : > { %2620 = vrot.lane.b32.xlu1 %v2615_v7, %s9027_s12 }
 0x34e   : > { %2622 = vrot.lane.b32.xlu1 %v2619_v40, %s9027_s12  ;;  %s9093_s12 = smov 1  }
 0x389   : > { %v1818_v14 = vpop.permute.xlu1 %1817 }
 0x38a   : > { %v1820_v37 = vsub.f32 %v7747_v17, %v1818_v14  ;;  %v2638_v14 = vrot.slane %v6518_v9, %v7973_v22 }
 0x38c   : > { %2643 = vrot.lane.b32.xlu1 %v2638_v14, %s9033_s2 }
 0x390   : > { %2645 = vrot.lane.b32.xlu1 %v2642_v23, %s9033_s2  ;;  %s9043_s2 = smov 95  }
 0x39e   : > { %v1826_v38 = vpop.permute.xlu1 %1825 }
 0x39f   : > { %v1828_v20 = vmul.f32 %v1826_v38, %v1820_v37 }
 0x3a1   : > { %v1834_v24 = vmul.f32 %v1832_v6, %v1828_v20  ;;  %v2524_v20 = vrot.slane %v2515_v62, %v7975_v61 }
 0x3a2   : > { %v1838_v34 = vpop.permute.xlu1 %1837 }
 0x3a3   : > { %v1840_v60 = vadd.f32 %v1838_v34, %v1834_v24  ;;  %2527 = vrot.lane.b32.xlu1 %v2524_v20, %s7476_s23 }
 0x3a5   : > { %v1841_v17 = vmax.f32 %v1840_v60, 0.0 }
 0x3a7   : > { %v1859_v4 = vsel %vm906_vm2, %v1841_v17, 0 }
 0x3a8   : > { %v8015_v37 = vand.u32 4294901760, %v1859_v4 }
 0x3aa   : > { %v1943_v38 = vsub.f32 %v1859_v4, %v8015_v37 }
 0x3ac   : > { %v1944_v6 = vand.u32 4294901760, %v1943_v38 }
 0x3ae   : > { %v1945_v7 = vsub.f32 %v1943_v38, %v1944_v6 }
 0x3b0   : > { %v1946_v24 = vand.u32 4294901760, %v1945_v7 }
 0x3b2   : > { %1947 = vmatmul.mubr.f32.vlgmr.msra.gmra.mrb[4].mxu1 %v1946_v24 }
 0x3b3   : > { %6847 = vmatpush1.bf16.msra.mxu1 %v7901_v21  ;;  %2097 = vmatprep.mubr.f32.mxu1 %v9079_v39 }
 0x3b4   : > { %6849 = vmatprep.subr.bf16.mxu1 %v7906_v35 }
 0x3b7   : > { %6851 = vmatpush1.bf16.msra.mxu1 %v7911_v57 }
 0x3b8   : > { %6853 = vmatprep.subr.bf16.mxu1 %v7920_v15 }
 0x3bb   : > { %6855 = vmatpush1.bf16.msra.mxu1 %v7924_v33 }
 0x3bc   : > { %6857 = vmatprep.subr.bf16.mxu1 %v7926_v0  ;;  %v9080_v0 = vpack.c.bf16 %v7856_v46, %v7854_v45 }
 0x3bf   : > { %6859 = vmatpush1.bf16.msra.mxu1 %v7928_v59 }
 0x3c0   : > { %6861 = vmatprep.subr.bf16.mxu1 %v6860_v41  ;;  %v2549_v41 = vpop.permute.xlu1 %2548 }
 0x3c1   : > { %v2557_v43 = vmul.f32 0.0, %v2549_v41 }
 0x3c2   : > { %2099 = vmatmul.mubr.f32.vlgmr.msra.gmra.mrb[4].mxu1 %v8015_v37 }
 0x3c3   : > { %6863 = vmatpush1.bf16.msra.mxu1 %v6862_v58  ;;  %2201 = vmatprep.mubr.f32.mxu1 %v9079_v39 }
 0x3c4   : > { %6865 = vmatprep.subr.bf16.mxu1 %v6864_v3  ;;  %2669 = vrot.lane.b32.xlu1 %v2557_v43, %s9051_s13 }
 0x3c7   : > { %6867 = vmatpush1.bf16.msra.mxu1 %v9080_v0 }
 0x3c8   : > { %6869 = vmatprep.subr.bf16.mxu1 %v9081_v16 }
 0x3cb   : > { %6871 = vmatpush1.bf16.msra.mxu1 %v9082_v18 }
 0x3cc   : > { %6873 = vmatprep.subr.bf16.mxu1 %v9083_v2 }
 0x3cf   : > { %6875 = vmatpush1.bf16.msra.mxu1 %v9084_v5 }
 0x3d0   : > { %6877 = vmatprep.subr.bf16.mxu1 %v7820_v63 }
 0x3d2   : > { %2204 = vmatmul.mubr.f32.vlgmr.msra.gmra.mrb[4].mxu1 %v1943_v38 }
 0x3d3   : > { %6879 = vmatpush1.bf16.msra.mxu1 %v7822_v1  ;;  %2290 = vmatprep.mubr.f32.mxu1 %v9079_v39 }
 0x3d4   : > { %6881 = vmatprep.subr.bf16.mxu1 %v7830_v12 }
 0x3d7   : > { %6883 = vmatpush1.bf16.msra.mxu1 %v7832_v13 }
 0x3d8   : > { %6885 = vmatprep.subr.bf16.mxu1 %v7840_v28 }
 0x3db   : > { %6887 = vmatpush1.bf16.msra.mxu1 %v7842_v29 }
 0x3dc   : > { %6889 = vmatprep.subr.bf16.mxu1 %v7866_v51 }
 0x3df   : > { %6891 = vmatpush1.bf16.msra.mxu1 %v7872_v54 }
 0x3e0   : > { %6893 = vmatprep.subr.bf16.mxu1 %v7950_v19 }
 0x3e2   : > { %2294 = vmatmul.mubr.f32.vlgmr.msra.gmra.mrb[4].mxu1 %v1944_v6 }
 0x3e3   : > { %6895 = vmatpush1.bf16.msra.mxu1 %v7956_v30  ;;  %2412 = vmatprep.mubr.f32.mxu1 %v9079_v39 }
 0x3e4   : > { %6897 = vmatprep.subr.bf16.mxu1 %v7958_v32  ;;  %v2526_v32 = vpop.permute.xlu0 %2525 }
 0x3e5   : > { %v2534_v9 = vmul.f32 0.0, %v2526_v32 }
 0x3e7   : > { %6899 = vmatpush1.bf16.msra.mxu1 %v7960_v36 }
 0x3e8   : > { %6901 = vmatprep.subr.bf16.mxu1 %v7962_v42  ;;  %v2659_v17 = vpop.permute.xlu0 %2658 }
 0x3eb   : > { %6903 = vmatpush1.bf16.msra.mxu1 %v7964_v10 }
 0x3ec   : > { %6905 = vmatprep.subr.bf16.mxu1 %v7966_v11 }
 0x3ef   : > { %6907 = vmatpush1.bf16.msra.mxu1 %v7968_v8 }
 0x3f0   : > { %6909 = vmatprep.subr.bf16.mxu1 %v7820_v63  ;;  %v2551_v63 = vpop.permute.xlu1 %2550 }
 0x3f1   : > { %v2553_v55 = vsel %vm2552_vm3, %v2549_v41, %v2551_v63 }
 0x3f2   : > { %2414 = vmatmul.mubr.f32.vlgmr.msra.gmra.mrb[4].mxu1 %v8015_v37 }
 0x3f3   : > { %6911 = vmatpush1.bf16.msra.mxu1 %v7822_v1  ;;  %2500 = vmatprep.mubr.f32.mxu1 %v9079_v39 }
 0x3f4   : > { %6913 = vmatprep.subr.bf16.mxu1 %v7830_v12  ;;  %v2572_v1 = vpop.permute.xlu1 %2571 }
 0x3f5   : > { %v2580_v12 = vmul.f32 0.0, %v2572_v1 }
 0x3f7   : > { %6915 = vmatpush1.bf16.msra.mxu1 %v7832_v13  ;;  %2681 = vrot.lane.b32.xlu0 %v2580_v12, %s9049_s22 }
 0x3f8   : > { %6917 = vmatprep.subr.bf16.mxu1 %v7840_v28  ;;  %v2574_v13 = vpop.permute.xlu1 %2573 }
 0x3f9   : > { %v2576_v35 = vsel %vm2575_vm4, %v2572_v1, %v2574_v13 }
 0x3fb   : > { %6919 = vmatpush1.bf16.msra.mxu1 %v7842_v29 }
 0x3fc   : > { %6921 = vmatprep.subr.bf16.mxu1 %v7866_v51  ;;  %v2598_v28 = vpop.permute.xlu1 %2597 }
 0x3ff   : > { %6923 = vmatpush1.bf16.msra.mxu1 %v7872_v54 }
 0x400   : > { %v2600_v29 = vpop.permute.xlu1 %2599 }
 0x401   : > { %v2608_v44 = vmul.f32 0.0, %v2600_v29  ;;  %v2602_v59 = vsel %vm2601_vm5, %v2598_v28, %v2600_v29 }
 0x402   : > { %2502 = vmatmul.mubr.f32.vlgmr.msra.gmra.mrb[4].mxu1 %v8015_v37 }
 0x403   : > { %2923 = vmatprep.mubr.f32.mxu1 %v9079_v39  ;;  %2702 = vrot.lane.b32.xlu1 %v2608_v44, %s9047_s29 }
 0x404   : > { %v2621_v45 = vpop.permute.xlu1 %2620 }
 0x408   : > { %v2623_v46 = vpop.permute.xlu1 %2622 }
 0x409   : > { %v2631_v47 = vmul.f32 0.0, %v2623_v46  ;;  %v2625_v8 = vsel %vm2624_vm6, %v2621_v45, %v2623_v46 }
 0x40b   : > { %2714 = vrot.lane.b32.xlu0 %v2631_v47, %s9045_s27 }
 0x40c   : > { %v2644_v33 = vpop.permute.xlu1 %2643 }
 0x410   : > { %v2646_v10 = vpop.permute.xlu1 %2645 }
 0x411   : > { %v2648_v19 = vsel %vm2647_vm7, %v2644_v33, %v2646_v10  ;;  %v2654_v30 = vmul.f32 0.0, %v2646_v10 }
 0x415   : > { %v2528_v36 = vpop.permute.xlu1 %2527 }
 0x416   : > { %v2530_v34 = vsel %vm2529_vm8, %v2526_v32, %v2528_v36 }
 0x436   : > { %v2670_v4 = vpop.permute.xlu1 %2669 }
 0x469   : > { %v2682_v14 = vpop.permute.xlu0 %2681 }
 0x475   : > { %v2703_v38 = vpop.permute.xlu1 %2702 }
 0x47d   : > { %v2715_v37 = vpop.permute.xlu0 %2714 }
 0x4d5   : > { %v2503_v49 = vpop.f32.mrb[4].mxu1 }
 0x4d6   : > { %v7117_v50 = vadd.f32 %v2503_v49, %v450_v48  ;;  %v2505_v51 = vpop.f32.mrb[5].mxu1 }
 0x4d7   : > { %v7118_v53 = vadd.f32 %v2505_v51, %v451_v52 }
 0x4d8   : > { %2690 = vrot.lane.b32.xlu1 %v7117_v50, %s7476_s23  ;;  %2660 = vrot.lane.b32.xlu0 %v7117_v50, %s7477_s25  ;;  %v2629_v54 = vmul.f32 %v7117_v50, %v2621_v45  ;;  %v2558_v21 = vmul.f32 %v7117_v50, %v2553_v55  ;;  %v2581_v15 = vmul.f32 %v7117_v50, %v2576_v35 }
 0x4d9   : > { %v2559_v56 = vmul.f32 %v7118_v53, %v2551_v63  ;;  %v2582_v57 = vmul.f32 %v7118_v53, %v2574_v13  ;;  %v2607_v58 = vmul.f32 %v7118_v53, %v2602_v59  ;;  %v2606_v3 = vmul.f32 %v7117_v50, %v2598_v28 }
 0x4da   : > { %v2630_v42 = vmul.f32 %v7118_v53, %v2625_v8  ;;  %v2652_v11 = vmul.f32 %v7117_v50, %v2644_v33  ;;  %v2653_v62 = vmul.f32 %v7118_v53, %v2648_v19  ;;  %v2536_v40 = vmul.f32 %v7118_v53, %v2528_v36 }
 0x4db   : > { %v2535_v60 = vmul.f32 %v7117_v50, %v2530_v34 }
 0x4dc   : > { %2722 = vrot.lane.b32.xlu1 %v7117_v50, %s9043_s2  ;;  %2692 = vrot.lane.b32.xlu0 %v7118_v53, %s7476_s23 }
 0x4e0   : > { %2662 = vrot.lane.b32.xlu1 %v7118_v53, %s7477_s25  ;;  %2710 = vrot.lane.b32.xlu0 %v2629_v54, %s9045_s27 }
 0x4e4   : > { %2673 = vrot.lane.b32.xlu0 %v2559_v56, %s9051_s13  ;;  %2671 = vrot.lane.b32.xlu1 %v2558_v21, %s9051_s13  ;;  %s7487_s13 = smov [#allocation9]  }
 0x4e8   : > { %2685 = vrot.lane.b32.xlu0 %v2582_v57, %s9049_s22  ;;  %2683 = vrot.lane.b32.xlu1 %v2581_v15, %s9049_s22  ;;  %s7399_s22 = sshll.u32 %s7487_s13, 4  ;;  %s7400_s22 = int_to_ptr.vmem [resolvable:$false] %s7399_s22 }
 0x4ec   : > { %2700 = vrot.lane.b32.xlu0 %v2607_v58, %s9047_s29  ;;  %2698 = vrot.lane.b32.xlu1 %v2606_v3, %s9047_s29  ;;  %s9092_s29 = smov 113  }
 0x4f0   : > { %2724 = vrot.lane.b32.xlu0 %v7118_v53, %s9043_s2  ;;  %2712 = vrot.lane.b32.xlu1 %v2630_v42, %s9045_s27  ;;  %s9098_s27 = smov 96  }
 0x4f4   : > { %2734 = vrot.lane.b32.xlu0 %v2652_v11, %s9041_s14  ;;  %2726 = vrot.lane.b32.xlu1 %v9079_v39, %s9043_s2  ;;  %s9097_s2 = smov 110  }
 0x4f8   : > { %2738 = vrot.lane.b32.xlu0 %v2654_v30, %s9041_s14  ;;  %2736 = vrot.lane.b32.xlu1 %v2653_v62, %s9041_s14  ;;  %s7401_s14 = scalar_lea.vmem %s7400_s22, 512 }
 0x4fc   : > { %2751 = vrot.lane.b32.xlu0 %v2536_v40, %s9085_s16  ;;  %2749 = vrot.lane.b32.xlu1 %v2535_v60, %s9085_s16 }
 0x500   : > { %2747 = vrot.lane.b32.xlu1 %v2534_v9, %s9085_s16 }
 0x54a   : > { %v2691_v23 = vpop.permute.xlu1 %2690  ;;  %v2661_v6 = vpop.permute.xlu0 %2660 }
 0x54b   : > { %2771 = vrot.lane.b32.xlu1 %v2691_v23, %s9085_s16  ;;  %v2664_v5 = vsel %vm2575_vm4, %v2659_v17, %v2661_v6 }
 0x54e   : > { %v2723_v7 = vpop.permute.xlu1 %2722  ;;  %v2693_v20 = vpop.permute.xlu0 %2692 }
 0x54f   : > { %v2694_v41 = vsel %vm2529_vm8, %v2691_v23, %v2693_v20 }
 0x552   : > { %v2663_v24 = vpop.permute.xlu1 %2662  ;;  %v2711_v0 = vpop.permute.xlu0 %2710 }
 0x553   : > { %2757 = vrot.lane.b32.xlu0 %v2663_v24, %s9085_s16  ;;  %v2665_v16 = vsel %vm2575_vm4, %v2661_v6, %v2663_v24 }
 0x554   : > { %2755 = vrot.lane.b32.xlu1 %v2665_v16, %s9085_s16 }
 0x556   : > { %v2674_v18 = vpop.permute.xlu0 %2673  ;;  %v2672_v2 = vpop.permute.xlu1 %2671 }
 0x557   : > { %2753 = vrot.lane.b32.xlu0 %v2664_v5, %s9085_s16  ;;  %v2676_v46 = vsel %vm2675_vm10, %v2670_v4, %v2672_v2  ;;  %v2677_v47 = vsel %vm2675_vm10, %v2672_v2, %v2674_v18 }
 0x558   : > { %2773 = vrot.lane.b32.xlu1 %v2694_v41, %s9085_s16 }
 0x55a   : > { %v2686_v43 = vpop.permute.xlu0 %2685  ;;  %v2684_v63 = vpop.permute.xlu1 %2683 }
 0x55b   : > { %2775 = vrot.lane.b32.xlu0 %v2693_v20, %s9085_s16  ;;  %v2688_v48 = vsel %vm2687_vm11, %v2682_v14, %v2684_v63  ;;  %v2689_v49 = vsel %vm2687_vm11, %v2684_v63, %v2686_v43 }
 0x55e   : > { %v2701_v1 = vpop.permute.xlu0 %2700  ;;  %v2699_v12 = vpop.permute.xlu1 %2698 }
 0x55f   : > { %2777 = vrot.lane.b32.xlu0 %v2699_v12, %s9085_s16  ;;  %v2706_v50 = vsel %vm2704_vm12, %v2701_v1, %v2703_v38  ;;  %v2705_v51 = vsel %vm2704_vm12, %v2699_v12, %v2701_v1 }
 0x562   : > { %v2725_v13 = vpop.permute.xlu0 %2724  ;;  %v2713_v28 = vpop.permute.xlu1 %2712 }
 0x563   : > { %v2729_v29 = vsel %vm2728_vm9, %v2723_v7, %v2725_v13  ;;  %v2718_v53 = vsel %vm2716_vm13, %v2713_v28, %v2715_v37  ;;  %v2717_v54 = vsel %vm2716_vm13, %v2711_v0, %v2713_v28 }
 0x564   : > { %2791 = vrot.lane.b32.xlu1 %v2729_v29, %s9085_s16 }
 0x566   : > { %v2727_v44 = vpop.permute.xlu1 %2726  ;;  %v2735_v52 = vpop.permute.xlu0 %2734 }
 0x567   : > { %v2730_v45 = vsel %vm2728_vm9, %v2725_v13, %v2727_v44 }
 0x568   : > { %2793 = vrot.lane.b32.xlu0 %v2730_v45, %s9085_s16  ;;  %2783 = vrot.lane.b32.xlu1 %v2711_v0, %s9085_s16 }
 0x56a   : > { %v2737_v55 = vpop.permute.xlu1 %2736  ;;  %v2739_v21 = vpop.permute.xlu0 %2738 }
 0x56b   : > { %v2741_v56 = vsel %vm2740_vm14, %v2735_v52, %v2737_v55  ;;  %v2742_v35 = vsel %vm2740_vm14, %v2737_v55, %v2739_v21 }
 0x56c   : > { %2763 = vrot.lane.b32.xlu0 %v2674_v18, %s9085_s16  ;;  %2759 = vrot.lane.b32.xlu1 %v2676_v46, %s9085_s16 }
 0x56e   : > { %v2750_v57 = vpop.permute.xlu1 %2749  ;;  %v2752_v15 = vpop.permute.xlu0 %2751 }
 0x56f   : > { %v2802_v33 = vsel %vm2647_vm7, %v2750_v57, %v2752_v15 }
 0x570   : > { %2769 = vrot.lane.b32.xlu0 %v2686_v43, %s9085_s16  ;;  %2761 = vrot.lane.b32.xlu1 %v2677_v47, %s9085_s16  ;;  %v2841_v58 = vand.u32 4294901760, %v2802_v33  ;;  %v2743_v47 = vld [vmem:[%s9013_s6] sm:$0xff] }
 0x572   : > { %v2748_v59 = vpop.permute.xlu1 %2747  ;;  %v8165_v42 = vsub.f32 %v2802_v33, %v2841_v58 }
 0x573   : > { %v2801_v3 = vsel %vm2647_vm7, %v2748_v59, %v2750_v57 }
 0x574   : > { %2765 = vrot.lane.b32.xlu0 %v2688_v48, %s9085_s16  ;;  %2767 = vrot.lane.b32.xlu1 %v2689_v49, %s9085_s16  ;;  %v2843_v10 = vand.u32 4294901760, %v2801_v3  ;;  %v2937_v62 = vand.u32 4294901760, %v8165_v42 }
 0x576   : > { %v8167_v30 = vsub.f32 %v2801_v3, %v2843_v10  ;;  %v2938_v37 = vsub.f32 %v8165_v42, %v2937_v62 }
 0x578   : > { %2781 = vrot.lane.b32.xlu0 %v2706_v50, %s9085_s16  ;;  %2779 = vrot.lane.b32.xlu1 %v2705_v51, %s9085_s16  ;;  %v2943_v17 = vand.u32 4294901760, %v8167_v30  ;;  %v2939_v0 = vand.u32 4294901760, %v2938_v37 }
 0x57c   : > { %2787 = vrot.lane.b32.xlu0 %v2718_v53, %s9085_s16  ;;  %2785 = vrot.lane.b32.xlu1 %v2717_v54, %s9085_s16 }
 0x580   : > { %2789 = vrot.lane.b32.xlu0 %v2723_v7, %s9085_s16  ;;  %2797 = vrot.lane.b32.xlu1 %v2741_v56, %s9085_s16  ;;  %v2944_v7 = vsub.f32 %v8167_v30, %v2943_v17 }
 0x582   : > { %v2945_v41 = vand.u32 4294901760, %v2944_v7 }
 0x584   : > { %2799 = vrot.lane.b32.xlu0 %v2742_v35, %s9085_s16  ;;  %2795 = vrot.lane.b32.xlu1 %v2735_v52, %s9085_s16  ;;  %v2839_v52 = vsel %vm2837_vm15, %v2743_v47, 0 }
 0x585   : > { %v8217_v57 = vand.u32 4294901760, %v2839_v52 }
 0x5bd   : > { %v2772_v8 = vpop.permute.xlu1 %2771 }
 0x5c5   : > { %v2758_v11 = vpop.permute.xlu0 %2757 }
 0x5c6   : > { %v2756_v19 = vpop.permute.xlu1 %2755 }
 0x5c7   : > { %v2804_v32 = vsel %vm2647_vm7, %v2756_v19, %v2758_v11  ;;  %v8230_v11 = vsub.f32 %v2839_v52, %v8217_v57 }
 0x5c8   : > { %v2845_v36 = vand.u32 4294901760, %v2804_v32 }
 0x5c9   : > { %v2754_v34 = vpop.permute.xlu0 %2753 }
 0x5ca   : > { %v8171_v40 = vsub.f32 %v2804_v32, %v2845_v36  ;;  %v2803_v60 = vsel %vm2647_vm7, %v2754_v34, %v2756_v19  ;;  %v8174_v9 = vpack.c.bf16 %v2845_v36, %v2841_v58  ;;  %v2774_v2 = vpop.permute.xlu1 %2773 }
 0x5cb   : > { %v2847_v14 = vand.u32 4294901760, %v2803_v60  ;;  %v2809_v29 = vsel %vm2647_vm7, %v2772_v8, %v2774_v2 }
 0x5cc   : > { %v2949_v4 = vand.u32 4294901760, %v8171_v40  ;;  %6925 = vmatprep.subr.bf16.mxu1 %v8174_v9  ;;  %v2859_v48 = vand.u32 4294901760, %v2809_v29 }
 0x5cd   : > { %v8182_v38 = vpack.c.bf16 %v2847_v14, %v2843_v10  ;;  %v8184_v23 = vsub.f32 %v2803_v60, %v2847_v14  ;;  %v2776_v24 = vpop.permute.xlu0 %2775 }
 0x5ce   : > { %v2950_v6 = vsub.f32 %v8171_v40, %v2949_v4  ;;  %v8203_v44 = vsel %vm2647_vm7, %v2774_v2, %v2776_v24  ;;  %v8212_v55 = vsub.f32 %v2809_v29, %v2859_v48 }
 0x5cf   : > { %v2955_v20 = vand.u32 4294901760, %v8184_v23  ;;  %6927 = vmatpush1.bf16.msra.mxu1 %v8182_v38  ;;  %v2857_v49 = vand.u32 4294901760, %v8203_v44 }
 0x5d0   : > { %v2951_v16 = vand.u32 4294901760, %v2950_v6  ;;  %v9035_v19 = vand.u32 4294901760, %v8212_v55  ;;  %v2926_v6 = vand.u32 4294901760, %v8230_v11 }
 0x5d1   : > { %v2956_v18 = vsub.f32 %v8184_v23, %v2955_v20  ;;  %v2778_v1 = vpop.permute.xlu0 %2777  ;;  %v8215_v35 = vsub.f32 %v8203_v44, %v2857_v49 }
 0x5d2   : > { %v6940_v5 = vpack.c.bf16 %v2951_v16, %v2939_v0  ;;  %v8261_v44 = vsub.f32 %v8230_v11, %v2926_v6 }
 0x5d3   : > { %v2957_v43 = vand.u32 4294901760, %v2956_v18  ;;  %v9036_v60 = vand.u32 4294901760, %v8215_v35 }
 0x5d4   : > { %6941 = vmatprep.subr.bf16.mxu0 %v6940_v5 }
 0x5d5   : > { %v6942_v63 = vpack.c.bf16 %v2957_v43, %v2945_v41  ;;  %v2986_v47 = vsub.f32 %v8215_v35, %v9036_v60 }
 0x5d6   : > { %v8197_v12 = vpop.permute.xlu1 %2791 }
 0x5d7   : > { %6943 = vmatpush1.bf16.msra.mxu0 %v6942_v63  ;;  %v8254_v63 = vsub.f32 %v8212_v55, %v9035_v19 }
 0x5da   : > { %v2794_v13 = vpop.permute.xlu0 %2793  ;;  %v8199_v28 = vpop.permute.xlu1 %2783 }
 0x5db   : > { %v8221_v15 = vsel %vm2647_vm7, %v8197_v12, %v2794_v13 }
 0x5dc   : > { %v2869_v14 = vand.u32 4294901760, %v8221_v15 }
 0x5de   : > { %v2764_v45 = vpop.permute.xlu0 %2763  ;;  %v2760_v46 = vpop.permute.xlu1 %2759 }
 0x5e2   : > { %v2770_v50 = vpop.permute.xlu0 %2769  ;;  %v2762_v51 = vpop.permute.xlu1 %2761 }
 0x5e3   : > { %v2805_v53 = vsel %vm2647_vm7, %v2760_v46, %v2762_v51  ;;  %v2806_v54 = vsel %vm2647_vm7, %v2762_v51, %v2764_v45 }
 0x5e4   : > { %v2849_v56 = vand.u32 4294901760, %v2806_v54  ;;  %v2851_v21 = vand.u32 4294901760, %v2805_v53 }
 0x5e6   : > { %v8223_v33 = vsub.f32 %v2806_v54, %v2849_v56  ;;  %v8225_v59 = vsub.f32 %v2805_v53, %v2851_v21  ;;  %v2766_v58 = vpop.permute.xlu0 %2765  ;;  %v2768_v3 = vpop.permute.xlu1 %2767 }
 0x5e7   : > { %v2807_v8 = vsel %vm2647_vm7, %v2766_v58, %v2768_v3  ;;  %v2808_v10 = vsel %vm2647_vm7, %v2768_v3, %v2770_v50 }
 0x5e8   : > { %v2967_v32 = vand.u32 4294901760, %v8225_v59  ;;  %v2853_v36 = vand.u32 4294901760, %v2808_v10  ;;  %v2855_v34 = vand.u32 4294901760, %v2807_v8  ;;  %v2961_v37 = vand.u32 4294901760, %v8223_v33 }
 0x5ea   : > { %v2968_v7 = vsub.f32 %v8225_v59, %v2967_v32  ;;  %v8241_v24 = vpack.c.bf16 %v2855_v34, %v2851_v21  ;;  %v8243_v0 = vsub.f32 %v2808_v10, %v2853_v36  ;;  %v8245_v16 = vsub.f32 %v2807_v8, %v2855_v34  ;;  %v2782_v18 = vpop.permute.xlu0 %2781  ;;  %v2780_v2 = vpop.permute.xlu1 %2779 }
 0x5eb   : > { %v2811_v5 = vsel %vm2647_vm7, %v2778_v1, %v2780_v2  ;;  %v2812_v41 = vsel %vm2647_vm7, %v2780_v2, %v2782_v18  ;;  %v8249_v43 = vpack.c.bf16 %v2853_v36, %v2849_v56  ;;  %v8264_v1 = vsub.f32 %v8221_v15, %v2869_v14 }
 0x5ec   : > { %v2973_v13 = vand.u32 4294901760, %v8243_v0  ;;  %v9037_v29 = vand.u32 4294901760, %v8245_v16  ;;  %v2861_v45 = vand.u32 4294901760, %v2812_v41  ;;  %v2863_v46 = vand.u32 4294901760, %v2811_v5 }
 0x5ed   : > { %6929 = vmatprep.subr.bf16.mxu1 %v8249_v43  ;;  %v2969_v50 = vand.u32 4294901760, %v2968_v7  ;;  %v2962_v54 = vsub.f32 %v8223_v33, %v2961_v37  ;;  %v3021_v7 = vand.u32 4294901760, %v8264_v1 }
 0x5ee   : > { %v2980_v51 = vsub.f32 %v8245_v16, %v9037_v29  ;;  %6931 = vmatpush1.bf16.msra.mxu1 %v8241_v24  ;;  %v2788_v52 = vpop.permute.xlu0 %2787  ;;  %v2786_v53 = vpop.permute.xlu1 %2785  ;;  %v2974_v56 = vsub.f32 %v8243_v0, %v2973_v13  ;;  %v8280_v21 = vpack.c.bf16 %v2863_v46, %v2859_v48  ;;  %v8282_v15 = vsub.f32 %v2812_v41, %v2861_v45 }
 0x5ef   : > { %v8284_v58 = vsub.f32 %v2811_v5, %v2863_v46  ;;  %v2813_v3 = vsel %vm2647_vm7, %v8199_v28, %v2786_v53  ;;  %v2814_v10 = vsel %vm2647_vm7, %v2786_v53, %v2788_v52  ;;  %v8289_v34 = vpack.c.bf16 %v2861_v45, %v2857_v49 }
 0x5f0   : > { %v2981_v8 = vand.u32 4294901760, %v2980_v51  ;;  %v2867_v36 = vand.u32 4294901760, %v2813_v3  ;;  %v9039_v18 = vand.u32 4294901760, %v8282_v15  ;;  %v2865_v2 = vand.u32 4294901760, %v2814_v10 }
 0x5f1   : > { %v9038_v48 = vand.u32 4294901760, %v8284_v58  ;;  %6933 = vmatprep.subr.bf16.mxu1 %v8289_v34  ;;  %v2963_v28 = vand.u32 4294901760, %v2962_v54  ;;  %v2975_v51 = vand.u32 4294901760, %v2974_v56 }
 0x5f2   : > { %v8294_v41 = vsub.f32 %v2813_v3, %v2867_v36  ;;  %v2790_v5 = vpop.permute.xlu0 %2789  ;;  %v2798_v46 = vpop.permute.xlu1 %2797  ;;  %v6946_v19 = vpack.c.bf16 %v2981_v8, %v2969_v50  ;;  %v8300_v45 = vsub.f32 %v2814_v10, %v2865_v2  ;;  %6935 = vmatpush1.bf16.msra.mxu1 %v8280_v21  ;;  %v8305_v53 = vpack.c.bf16 %v2869_v14, %v2865_v2 }
 0x5f3   : > { %v3004_v49 = vsub.f32 %v8284_v58, %v9038_v48  ;;  %v2815_v52 = vsel %vm2647_vm7, %v2790_v5, %v8197_v12  ;;  %v6944_v29 = vpack.c.bf16 %v2975_v51, %v2963_v28  ;;  %v2998_v50 = vsub.f32 %v8282_v15, %v9039_v18 }
 0x5f4   : > { %v9040_v3 = vand.u32 4294901760, %v8294_v41  ;;  %v2871_v60 = vand.u32 4294901760, %v2815_v52  ;;  %v3009_v56 = vand.u32 4294901760, %v8300_v45  ;;  %6937 = vmatprep.subr.bf16.mxu1 %v8305_v53  ;;  %v3022_v8 = vsub.f32 %v8264_v1, %v3021_v7 }
 0x5f5   : > { %v3005_v54 = vand.u32 4294901760, %v3004_v49  ;;  %v2928_v12 = vand.u32 4294901760, %v8261_v44  ;;  %v2993_v14 = vand.u32 4294901760, %v8254_v63  ;;  %6945 = vmatprep.subr.bf16.mxu0 %v6944_v29  ;;  %v2999_v51 = vand.u32 4294901760, %v2998_v50 }
 0x5f6   : > { %v8318_v10 = vpack.c.bf16 %v2871_v60, %v2867_v36  ;;  %v8320_v2 = vsub.f32 %v2815_v52, %v2871_v60  ;;  %v2800_v5 = vpop.permute.xlu0 %2799  ;;  %v2796_v28 = vpop.permute.xlu1 %2795  ;;  %6947 = vmatpush1.bf16.msra.mxu0 %v6946_v19  ;;  %v2987_v18 = vand.u32 4294901760, %v2986_v47  ;;  %v3010_v44 = vsub.f32 %v8300_v45, %v3009_v56 }
 0x5f7   : > { %v2818_v49 = vsel %vm2647_vm7, %v2798_v46, %v2800_v5  ;;  %v2817_v48 = vsel %vm2647_vm7, %v2796_v28, %v2798_v46  ;;  %v3016_v63 = vsub.f32 %v8294_v41, %v9040_v3  ;;  %v6950_v19 = vpack.c.bf16 %v3005_v54, %v2993_v14 }
 0x5f8   : > { %v3027_v60 = vand.u32 4294901760, %v8320_v2  ;;  %v8331_v29 = vand.u32 4294901760, %v2818_v49  ;;  %6939 = vmatpush1.bf16.msra.mxu1 %v8318_v10  ;;  %v8334_v36 = vand.u32 4294901760, %v2817_v48  ;;  %v6948_v52 = vpack.c.bf16 %v2999_v51, %v2987_v18 }
 0x5f9   : > { %v3011_v46 = vand.u32 4294901760, %v3010_v44  ;;  %v3023_v47 = vand.u32 4294901760, %v3022_v8  ;;  %v3017_v54 = vand.u32 4294901760, %v3016_v63 }
 0x5fa   : > { %v3028_v50 = vsub.f32 %v8320_v2, %v3027_v60  ;;  %v8340_v5 = vsub.f32 %v2818_v49, %v8331_v29  ;;  %2874 = vmatprep.subr.mxu1 %v8331_v29  ;;  %v8344_v28 = vsub.f32 %v2817_v48, %v8334_v36  ;;  %6949 = vmatprep.subr.bf16.mxu0 %v6948_v52 }
 0x5fb   : > { %v6952_v3 = vpack.c.bf16 %v3023_v47, %v3011_v46  ;;  %6951 = vmatpush1.bf16.msra.mxu0 %v6950_v19  ;;  %v6960_v19 = vpack.c.bf16 %v8243_v0, %v8223_v33  ;;  %v6962_v52 = vpack.c.bf16 %v8245_v16, %v8225_v59  ;;  %v6964_v46 = vpack.c.bf16 %v8282_v15, %v8215_v35 }
 0x5fc   : > { %v3029_v14 = vand.u32 4294901760, %v3028_v50  ;;  %2876 = vmatpush1.msra.mxu1 %v8334_v36  ;;  %v3033_v18 = vand.u32 4294901760, %v8340_v5  ;;  %v3039_v8 = vand.u32 4294901760, %v8344_v28  ;;  %v6966_v47 = vpack.c.bf16 %v8284_v58, %v8212_v55 }
 0x5fd   : > { %6953 = vmatprep.subr.bf16.mxu0 %v6952_v3  ;;  %2929 = vmatmul.mubr.f32.vlgmr.msra.gmra.mrb[6].mxu1 %v2928_v12  ;;  %v6956_v3 = vpack.c.bf16 %v8171_v40, %v8165_v42  ;;  %v6958_v12 = vpack.c.bf16 %v8184_v23, %v8167_v30  ;;  %v6968_v50 = vpack.c.bf16 %v8264_v1, %v8300_v45  ;;  %v9086_v42 = vand.u32 4294901760, %v8245_v16 }
 0x5fe   : > { %v6954_v51 = vpack.c.bf16 %v3029_v14, %v3017_v54  ;;  %v3034_v49 = vsub.f32 %v8340_v5, %v3033_v18  ;;  %6708 = vmatprep.subr.mxu1 %v9079_v39  ;;  %6710 = vmatprep.mubr.msk.f32.mxu1 %vm7473_vm0, %v9079_v39  ;;  %v3040_v48 = vsub.f32 %v8344_v28, %v3039_v8  ;;  %v9088_v40 = vand.u32 4294901760, %v8282_v15 }
 0x5ff   : > { %v6970_v54 = vpack.c.bf16 %v8320_v2, %v8294_v41  ;;  %v6988_v14 = vpack.c.bf16 %v2949_v4, %v2937_v62  ;;  %v6994_v30 = vpack.c.bf16 %v9086_v42, %v2967_v32  ;;  %v9087_v62 = vand.u32 4294901760, %v8215_v35  ;;  %v3515_v42 = vld [vmem:[%s9015_s8] sm:$0xff] }
 0x600   : > { %6955 = vmatpush1.bf16.msra.mxu0 %v6954_v51  ;;  %v3035_v44 = vand.u32 4294901760, %v3034_v49  ;;  %v3041_v63 = vand.u32 4294901760, %v3040_v48  ;;  %v6990_v51 = vpack.c.bf16 %v2955_v20, %v2943_v17  ;;  %v6992_v49 = vpack.c.bf16 %v2973_v13, %v2961_v37 }
 0x601   : > { %v6996_v17 = vpack.c.bf16 %v9088_v40, %v9087_v62  ;;  %v9089_v4 = vand.u32 4294901760, %v8212_v55  ;;  %v9090_v23 = vand.u32 4294901760, %v8284_v58  ;;  %v7000_v33 = vpack.c.bf16 %v3021_v7, %v3009_v56 }
 0x602   : > { %3036 = vmatprep.subr.mxu0 %v3035_v44  ;;  %v9091_v59 = vand.u32 4294901760, %v8294_v41  ;;  %v6522_v44 = vld [vmem:[%s9017_s10 + $0xc] sm:$0x3] }
 0x603   : > { %v6998_v20 = vpack.c.bf16 %v9090_v23, %v9089_v4  ;;  %v4555_v40 = vrot.slane %v6522_v44, %v7975_v61 }
 0x604   : > { %3042 = vmatpush1.msra.mxu0 %v3041_v63  ;;  %v7002_v35 = vpack.c.bf16 %v3027_v60, %v9091_v59  ;;  %v4551_v63 = vrot.slane %v6522_v44, %v7973_v22 }
 0x605   : > { %6957 = vmatprep.subr.bf16.mxu0 %v6956_v3  ;;  %3091 = vmatmul.mubr.f32.vlgmr.msra.gmra.mrb[4].mxu0 %v8217_v57  ;;  %v6523_v3 = vld [vmem:[%s9017_s10 + $0x10] sm:$0x3] }
 0x606   : > { %6959 = vmatpush1.bf16.msra.mxu0 %v6958_v12  ;;  %3197 = vmatprep.mubr.f32.mxu0 %v9079_v39  ;;  %v4572_v12 = vrot.slane %v6523_v3, %v7973_v22 }
 0x607   : > { %6961 = vmatprep.subr.bf16.mxu0 %v6960_v19  ;;  %v4459_v19 = vld [vmem:[%s9017_s10] sm:$0x3] }
 0x608   : > { %v4468_v4 = vrot.slane %v4459_v19, %v7975_v61 }
 0x60a   : > { %6963 = vmatpush1.bf16.msra.mxu0 %v6962_v52  ;;  %v4464_v52 = vrot.slane %v4459_v19, %v7973_v22 }
 0x60b   : > { %6965 = vmatprep.subr.bf16.mxu0 %v6964_v46 }
 0x60e   : > { %6967 = vmatpush1.bf16.msra.mxu0 %v6966_v47 }
 0x60f   : > { %6969 = vmatprep.subr.bf16.mxu0 %v6968_v50 }
 0x612   : > { %6971 = vmatpush1.bf16.msra.mxu0 %v6970_v54 }
 0x613   : > { %3147 = vmatprep.subr.mxu0 %v8340_v5 }
 0x616   : > { %3150 = vmatpush1.msra.mxu0 %v8344_v28  ;;  %v6520_v28 = vld [vmem:[%s9017_s10 + $0x6] sm:$0x3] }
 0x617   : > { %6973 = vmatprep.subr.bf16.mxu0 %v8174_v9  ;;  %3200 = vmatmul.mubr.f32.vlgmr.msra.gmra.mrb[4].mxu0 %v8230_v11 }
 0x618   : > { %6975 = vmatpush1.bf16.msra.mxu0 %v8182_v38  ;;  %3288 = vmatprep.mubr.f32.mxu0 %v9079_v39 }
 0x619   : > { %6977 = vmatprep.subr.bf16.mxu0 %v8249_v43 }
 0x61c   : > { %6979 = vmatpush1.bf16.msra.mxu0 %v8241_v24 }
 0x61d   : > { %6981 = vmatprep.subr.bf16.mxu0 %v8289_v34 }
 0x620   : > { %6983 = vmatpush1.bf16.msra.mxu0 %v8280_v21 }
 0x621   : > { %6985 = vmatprep.subr.bf16.mxu0 %v8305_v53 }
 0x624   : > { %6987 = vmatpush1.bf16.msra.mxu0 %v8318_v10 }
 0x625   : > { %3239 = vmatprep.subr.mxu0 %v8331_v29 }
 0x628   : > { %3241 = vmatpush1.msra.mxu0 %v8334_v36 }
 0x629   : > { %6989 = vmatprep.subr.bf16.mxu0 %v6988_v14  ;;  %3292 = vmatmul.mubr.f32.vlgmr.msra.gmra.mrb[4].mxu0 %v2926_v6 }
 0x62a   : > { %6991 = vmatpush1.bf16.msra.mxu0 %v6990_v51  ;;  %3416 = vmatprep.mubr.f32.mxu0 %v9079_v39 }
 0x62b   : > { %6993 = vmatprep.subr.bf16.mxu0 %v6992_v49 }
 0x62e   : > { %6995 = vmatpush1.bf16.msra.mxu0 %v6994_v30  ;;  %v4510_v30 = vrot.slane %v6520_v28, %v7975_v61 }
 0x62f   : > { %6997 = vmatprep.subr.bf16.mxu0 %v6996_v17  ;;  %v4576_v17 = vrot.slane %v6523_v3, %v7975_v61 }
 0x632   : > { %6999 = vmatpush1.bf16.msra.mxu0 %v6998_v20 }
 0x633   : > { %7001 = vmatprep.subr.bf16.mxu0 %v7000_v33 }
 0x636   : > { %7003 = vmatpush1.bf16.msra.mxu0 %v7002_v35 }
 0x637   : > { %3365 = vmatprep.subr.mxu0 %v3033_v18  ;;  %v4506_v18 = vrot.slane %v6520_v28, %v7973_v22 }
 0x63a   : > { %3369 = vmatpush1.msra.mxu0 %v3039_v8  ;;  %v6521_v8 = vld [vmem:[%s9017_s10 + $0xa] sm:$0x3] }
 0x63b   : > { %7005 = vmatprep.subr.bf16.mxu0 %v8174_v9  ;;  %3418 = vmatmul.mubr.f32.vlgmr.msra.gmra.mrb[4].mxu0 %v8217_v57  ;;  %v4530_v48 = vrot.slane %v6521_v8, %v7973_v22  ;;  %v4534_v62 = vrot.slane %v6521_v8, %v7975_v61 }
 0x63c   : > { %7007 = vmatpush1.bf16.msra.mxu0 %v8182_v38  ;;  %3506 = vmatprep.mubr.f32.mxu0 %v9079_v39 }
 0x63d   : > { %7009 = vmatprep.subr.bf16.mxu0 %v8249_v43 }
 0x640   : > { %7011 = vmatpush1.bf16.msra.mxu0 %v8241_v24 }
 0x641   : > { %7013 = vmatprep.subr.bf16.mxu0 %v8289_v34 }
 0x644   : > { %7015 = vmatpush1.bf16.msra.mxu0 %v8280_v21 }
 0x645   : > { %7017 = vmatprep.subr.bf16.mxu0 %v8305_v53 }
 0x648   : > { %7019 = vmatpush1.bf16.msra.mxu0 %v8318_v10 }
 0x649   : > { %3457 = vmatprep.subr.mxu0 %v8331_v29  ;;  %v3514_v29 = vld [vmem:[%s9014_s7] sm:$0xff] }
 0x64c   : > { %3459 = vmatpush1.msra.mxu0 %v8334_v36  ;;  %v6519_v36 = vld [vmem:[%s9017_s10 + $0x4] sm:$0x3] }
 0x64d   : > { %3508 = vmatmul.mubr.f32.vlgmr.msra.gmra.mrb[4].mxu0 %v8217_v57  ;;  %v4485_v5 = vrot.slane %v6519_v36, %v7973_v22  ;;  %v4489_v22 = vrot.slane %v6519_v36, %v7975_v61 }
 0x64e   : > { %4850 = vmatprep.mubr.f32.mxu0 %v9079_v39 }
 0x6d0   : > { %v2930_v9 = vpop.f32.mrb[6].mxu1 }
 0x6d1   : > { %v2932_v38 = vpop.f32.mrb[7].mxu1 }
 0x720   : > { %v3509_v55 = vpop.f32.mrb[4].mxu0 }
 0x721   : > { %v8443_v11 = vadd.f32 %v3509_v55, %v2930_v9  ;;  %v3511_v32 = vpop.f32.mrb[5].mxu0 }
 0x722   : > { %v8445_v37 = vadd.f32 %v3511_v32, %v2932_v38 }
 0x723   : > { %v3521_v6 = vmul.f32 %v8443_v11, %v8443_v11 }
 0x724   : > { %v3516_v24 = vadd.f32 %v8445_v37, %v8443_v11  ;;  %v3522_v0 = vmul.f32 %v8445_v37, %v8445_v37 }
 0x726   : > { %3517 = vadd.xlane.f32.xlu0 %v3516_v24  ;;  %v3523_v57 = vadd.f32 %v3522_v0, %v3521_v6 }
 0x728   : > { %3524 = vadd.xlane.f32.xlu1 %v3523_v57 }
 0x7b3   : > { %v3518_v16 = vpop.xlane.xlu0 %3517 }
 0x7b4   : > { %v3520_v43 = vmul.f32 0.00390625, %v3518_v16 }
 0x7b5   : > { %v3525_v34 = vpop.xlane.xlu1 %3524 }
 0x7b6   : > { %v3528_v13 = vand.u32 4294901760, %v3520_v43  ;;  %v3526_v7 = vmul.f32 0.00390625, %v3525_v34 }
 0x7b8   : > { %v3605_v1 = vsub.f32 %v3520_v43, %v3528_v13  ;;  %6709 = vmatpush3.msra.mxu1 %v3528_v13  ;;  %v3974_v41 = vand.u32 4294901760, %v3526_v7 }
 0x7b9   : > { %6711 = vmatmul.mubr.f32.vlgmr.msra.gmra.mrb[8].mxu1 %v7768_v31  ;;  %6713 = vmatprep.subr.mxu1 %v9079_v39 }
 0x7ba   : > { %v3606_v21 = vand.u32 4294901760, %v3605_v1  ;;  %6715 = vmatprep.mubr.msk.f32.mxu1 %vm7473_vm0, %v9079_v39  ;;  %v4051_v45 = vsub.f32 %v3526_v7, %v3974_v41 }
 0x7bc   : > { %v3607_v15 = vsub.f32 %v3605_v1, %v3606_v21  ;;  %v4052_v53 = vand.u32 4294901760, %v4051_v45 }
 0x7be   : > { %v3608_v58 = vand.u32 4294901760, %v3607_v15  ;;  %v4053_v56 = vsub.f32 %v4051_v45, %v4052_v53 }
 0x7c0   : > { %6714 = vmatpush3.msra.mxu1 %v3608_v58  ;;  %v4054_v10 = vand.u32 4294901760, %v4053_v56 }
 0x7c1   : > { %6716 = vmatmul.mubr.f32.vlgmr.msra.gmra.mrb[8].mxu1 %v7758_v25  ;;  %6718 = vmatprep.subr.mxu1 %v9079_v39 }
 0x7c2   : > { %6719 = vmatpush3.msra.mxu1 %v3605_v1  ;;  %6720 = vmatprep.mubr.msk.f32.mxu1 %vm7473_vm0, %v9079_v39 }
 0x7c3   : > { %6723 = vmatprep.subr.mxu1 %v9079_v39 }
 0x7c9   : > { %6721 = vmatmul.mubr.f32.vlgmr.msra.gmra.mrb[8].mxu1 %v7761_v26 }
 0x7ca   : > { %6724 = vmatpush3.msra.mxu1 %v3528_v13  ;;  %6725 = vmatprep.mubr.msk.f32.mxu1 %vm7473_vm0, %v9079_v39 }
 0x7cb   : > { %6728 = vmatprep.subr.mxu1 %v9079_v39 }
 0x7d1   : > { %6726 = vmatmul.mubr.f32.vlgmr.msra.gmra.mrb[8].mxu1 %v7764_v27 }
 0x7d2   : > { %6729 = vmatpush3.msra.mxu1 %v3606_v21  ;;  %6730 = vmatprep.mubr.msk.f32.mxu1 %vm7473_vm0, %v9079_v39 }
 0x7d3   : > { %6733 = vmatprep.subr.mxu1 %v9079_v39 }
 0x7d9   : > { %6731 = vmatmul.mubr.f32.vlgmr.msra.gmra.mrb[8].mxu1 %v7758_v25 }
 0x7da   : > { %6734 = vmatpush3.msra.mxu1 %v3528_v13  ;;  %6735 = vmatprep.mubr.msk.f32.mxu1 %vm7473_vm0, %v9079_v39 }
 0x7db   : > { %6738 = vmatprep.subr.mxu1 %v9079_v39 }
 0x7e1   : > { %6736 = vmatmul.mubr.f32.vlgmr.msra.gmra.mrb[8].mxu1 %v7758_v25 }
 0x7e2   : > { %6739 = vmatpush3.msra.mxu1 %v3974_v41  ;;  %6740 = vmatprep.mubr.msk.f32.mxu1 %vm7473_vm0, %v9079_v39 }
 0x7e3   : > { %6743 = vmatprep.subr.mxu1 %v9079_v39 }
 0x7e5   : > { %6741 = vmatmul.mubr.f32.vlgmr.msra.gmra.mrb[10].mxu1 %v7768_v31 }
 0x7e6   : > { %6744 = vmatpush3.msra.mxu1 %v4054_v10  ;;  %6745 = vmatprep.mubr.msk.f32.mxu1 %vm7473_vm0, %v9079_v39 }
 0x7e7   : > { %6748 = vmatprep.subr.mxu1 %v9079_v39 }
 0x7ed   : > { %6746 = vmatmul.mubr.f32.vlgmr.msra.gmra.mrb[10].mxu1 %v7758_v25 }
 0x7ee   : > { %6749 = vmatpush3.msra.mxu1 %v4051_v45  ;;  %6750 = vmatprep.mubr.msk.f32.mxu1 %vm7473_vm0, %v9079_v39 }
 0x7ef   : > { %6753 = vmatprep.subr.mxu1 %v9079_v39 }
 0x7f5   : > { %6751 = vmatmul.mubr.f32.vlgmr.msra.gmra.mrb[10].mxu1 %v7761_v26 }
 0x7f6   : > { %6754 = vmatpush3.msra.mxu1 %v3974_v41  ;;  %6755 = vmatprep.mubr.msk.f32.mxu1 %vm7473_vm0, %v9079_v39 }
 0x7f7   : > { %6758 = vmatprep.subr.mxu1 %v9079_v39 }
 0x7fd   : > { %6756 = vmatmul.mubr.f32.vlgmr.msra.gmra.mrb[10].mxu1 %v7764_v27 }
 0x7fe   : > { %6759 = vmatpush3.msra.mxu1 %v4052_v53  ;;  %6760 = vmatprep.mubr.msk.f32.mxu1 %vm7473_vm0, %v9079_v39 }
 0x7ff   : > { %6763 = vmatprep.subr.mxu1 %v9079_v39 }
 0x805   : > { %6761 = vmatmul.mubr.f32.vlgmr.msra.gmra.mrb[10].mxu1 %v7758_v25 }
 0x806   : > { %6764 = vmatpush3.msra.mxu1 %v3974_v41  ;;  %6765 = vmatprep.mubr.msk.f32.mxu1 %vm7473_vm0, %v9079_v39 }
 0x807   : > { %6768 = vmatprep.subr.mxu1 %v9079_v39 }
 0x80d   : > { %6766 = vmatmul.mubr.f32.vlgmr.msra.gmra.mrb[10].mxu1 %v7758_v25 }
 0x80e   : > { %6770 = vmatprep.mubr.msk.f32.mxu1 %vm7473_vm0, %v9079_v39 }
 0x8b4   : > { %v3969_v2 = vpop.f32.mrb[8].mxu1 }
 0x8b5   : > { %4424 = vperm.xlu0 %7301, %v3969_v2   ;;  %v6737_v60 = vpop.f32.mrb[9].mxu1  ;;  %v4419_v46 = vmul.f32 %v3969_v2, %v3969_v2 }
 0x8b9   : > { %4440 = vperm.xlu0 %7301, %v3514_v29  }
 0x8bd   : > { %4490 = vrot.lane.b32.xlu0 %v4485_v5, %s9092_s29 }
 0x8c1   : > { %4511 = vrot.lane.b32.xlu0 %v4506_v18, %s7477_s25 }
 0x8c5   : > { %4535 = vrot.lane.b32.xlu0 %v4530_v48, %s9093_s12 }
 0x8c9   : > { %4556 = vrot.lane.b32.xlu0 %v4551_v63, %s9094_s24 }
 0x8cd   : > { %4577 = vrot.lane.b32.xlu0 %v4572_v12, %s9085_s16 }
 0x8d1   : > { %4469 = vrot.lane.b32.xlu0 %v4464_v52, %s7476_s23 }
 0x8d5   : > { %4591 = vrot.lane.b32.xlu0 %v9079_v39, %s7477_s25 }
 0x8e0   : > { %v4415_v47 = vpop.f32.mrb[10].mxu1 }
 0x8e1   : > { %v4420_v50 = vsub.f32 %v4415_v47, %v4419_v46  ;;  %v6767_v54 = vpop.f32.mrb[11].mxu1 }
 0x8e3   : > { %v4421_v14 = vmax.f32 %v4420_v50, 0.0 }
 0x8e5   : > { %v4429_v51 = vadd.f32 1e-05, %v4421_v14 }
 0x8e7   : > { %7305 = vrsqrt.f32 %v4429_v51 }
 0x8f1   : > { %v7306_v49 = vpop.eup %7305 }
 0x8f2   : > { %4433 = vperm.xlu1 %7302, %v7306_v49  }
 0x8f6   : > { %4447 = vperm.xlu1 %7302, %v3515_v42  }
 0x8fa   : > { %4492 = vrot.lane.b32.xlu1 %v4489_v22, %s9092_s29  ;;  %s9095_s29 = smov 126  }
 0x8fe   : > { %4513 = vrot.lane.b32.xlu1 %v4510_v30, %s7477_s25 }
 0x902   : > { %4537 = vrot.lane.b32.xlu1 %v4534_v62, %s9093_s12  ;;  %s9096_s12 = smov 112  }
 0x906   : > { %4558 = vrot.lane.b32.xlu1 %v4555_v40, %s9094_s24  ;;  %s9099_s24 = smov 95  }
 0x90a   : > { %4579 = vrot.lane.b32.xlu1 %v4576_v17, %s9085_s16 }
 0x90e   : > { %4471 = vrot.lane.b32.xlu1 %v4468_v4, %s7476_s23 }
 0x934   : > { %v4425_v23 = vpop.permute.xlu0 %4424 }
 0x935   : > { %v4427_v38 = vsub.f32 %v8443_v11, %v4425_v23  ;;  %v4428_v55 = vsub.f32 %v8445_v37, %v4425_v23 }
 0x938   : > { %v4441_v20 = vpop.permute.xlu0 %4440 }
 0x93c   : > { %v4491_v33 = vpop.permute.xlu0 %4490 }
 0x93d   : > { %v4498_v59 = vmul.f32 0.0, %v4491_v33 }
 0x93f   : > { %4602 = vrot.lane.b32.xlu1 %v4498_v59, %s9095_s29 }
 0x940   : > { %v4512_v35 = vpop.permute.xlu0 %4511 }
 0x941   : > { %v4519_v9 = vmul.f32 0.0, %v4512_v35 }
 0x943   : > { %4613 = vrot.lane.b32.xlu0 %v4519_v9, %s9096_s12 }
 0x944   : > { %v4536_v56 = vpop.permute.xlu0 %4535 }
 0x948   : > { %v4557_v2 = vpop.permute.xlu0 %4556 }
 0x94c   : > { %v4578_v48 = vpop.permute.xlu0 %4577 }
 0x950   : > { %v4470_v19 = vpop.permute.xlu0 %4469 }
 0x951   : > { %v4477_v46 = vmul.f32 0.0, %v4470_v19 }
 0x954   : > { %v4592_v51 = vpop.permute.xlu0 %4591 }
 0x971   : > { %v4434_v32 = vpop.permute.xlu1 %4433 }
 0x972   : > { %v4436_v6 = vmul.f32 %v4434_v32, %v4427_v38  ;;  %v4437_v24 = vmul.f32 %v4434_v32, %v4428_v55 }
 0x974   : > { %v4443_v61 = vmul.f32 %v4441_v20, %v4436_v6  ;;  %v4444_v0 = vmul.f32 %v4441_v20, %v4437_v24 }
 0x975   : > { %v4448_v57 = vpop.permute.xlu1 %4447 }
 0x976   : > { %v4450_v16 = vadd.f32 %v4448_v57, %v4443_v61  ;;  %v4451_v11 = vadd.f32 %v4448_v57, %v4444_v0 }
 0x978   : > { %v4452_v43 = vmax.f32 %v4450_v16, 0.0  ;;  %v4453_v45 = vmax.f32 %v4451_v11, 0.0 }
 0x979   : > { %v4493_v13 = vpop.permute.xlu1 %4492 }
 0x97a   : > { %v4494_v1 = vsel %vm2552_vm3, %v4491_v33, %v4493_v13  ;;  %v4500_v10 = vmul.f32 %v4493_v13, %v4453_v45  ;;  %v4543_v29 = vmul.f32 %v4536_v56, %v4452_v43  ;;  %v4564_v44 = vmul.f32 %v4557_v2, %v4452_v43 }
 0x97b   : > { %v4499_v21 = vmul.f32 %v4494_v1, %v4452_v43  ;;  %v4585_v3 = vmul.f32 %v4578_v48, %v4452_v43 }
 0x97d   : > { %v4514_v15 = vpop.permute.xlu1 %4513 }
 0x97e   : > { %v4515_v58 = vsel %vm2575_vm4, %v4512_v35, %v4514_v15  ;;  %v4521_v60 = vmul.f32 %v4514_v15, %v4453_v45 }
 0x97f   : > { %v4520_v34 = vmul.f32 %v4515_v58, %v4452_v43 }
 0x981   : > { %v4538_v7 = vpop.permute.xlu1 %4537 }
 0x982   : > { %v4545_v41 = vmul.f32 0.0, %v4538_v7  ;;  %v4539_v36 = vsel %vm2601_vm5, %v4536_v56, %v4538_v7 }
 0x983   : > { %v4544_v28 = vmul.f32 %v4539_v36, %v4453_v45 }
 0x984   : > { %4633 = vrot.lane.b32.xlu1 %v4545_v41, %s9097_s2 }
 0x985   : > { %v4559_v37 = vpop.permute.xlu1 %4558 }
 0x986   : > { %v4566_v53 = vmul.f32 0.0, %v4559_v37  ;;  %v4560_v5 = vsel %vm2624_vm6, %v4557_v2, %v4559_v37 }
 0x987   : > { %v4565_v18 = vmul.f32 %v4560_v5, %v4453_v45 }
 0x988   : > { %4595 = vrot.lane.b32.xlu1 %v4453_v45, %s7477_s25  ;;  %4644 = vrot.lane.b32.xlu0 %v4566_v53, %s9098_s27 }
 0x989   : > { %v4580_v8 = vpop.permute.xlu1 %4579 }
 0x98a   : > { %v4581_v63 = vsel %vm2647_vm7, %v4578_v48, %v4580_v8  ;;  %v4587_v52 = vmul.f32 0.0, %v4580_v8 }
 0x98b   : > { %v4586_v12 = vmul.f32 %v4581_v63, %v4453_v45 }
 0x98c   : > { %4621 = vrot.lane.b32.xlu1 %v4452_v43, %s7476_s23  ;;  %4593 = vrot.lane.b32.xlu0 %v4452_v43, %s7477_s25 }
 0x98d   : > { %v4472_v47 = vpop.permute.xlu1 %4471 }
 0x98e   : > { %v4473_v50 = vsel %vm2529_vm8, %v4470_v19, %v4472_v47  ;;  %v4479_v14 = vmul.f32 %v4472_v47, %v4453_v45 }
 0x98f   : > { %v4478_v54 = vmul.f32 %v4473_v50, %v4452_v43 }
 0x990   : > { %4651 = vrot.lane.b32.xlu1 %v4452_v43, %s9099_s24  ;;  %4623 = vrot.lane.b32.xlu0 %v4453_v45, %s7476_s23  ;;  %s9100_s23 = smov 94  }
 0x994   : > { %4604 = vrot.lane.b32.xlu1 %v4499_v21, %s9095_s29  ;;  %4653 = vrot.lane.b32.xlu0 %v4453_v45, %s9099_s24 }
 0x998   : > { %4615 = vrot.lane.b32.xlu1 %v4520_v34, %s9096_s12  ;;  %4606 = vrot.lane.b32.xlu0 %v4500_v10, %s9095_s29  ;;  %s6511_s29 = sshll.u32 %s7710_s5, 4 }
 0x99c   : > { %4629 = vrot.lane.b32.xlu1 %v4543_v29, %s9097_s2  ;;  %4617 = vrot.lane.b32.xlu0 %v4521_v60, %s9096_s12  ;;  %s6533_s12 = sshll.u32 %s7569_s21, 8 }
 0x99d   : > { %s8963_s25 = scalar_lea.hbm %s9018_s11, %s6533_s12 }
 0x9a0   : > { %4631 = vrot.lane.b32.xlu0 %v4544_v28, %s9097_s2  ;;  %4642 = vrot.lane.b32.xlu1 %v4565_v18, %s9098_s27  ;;  %s443_s2 = scalar_lea.vmem [#allocation9], %s6511_s29 }
 0x9a4   : > { %4640 = vrot.lane.b32.xlu0 %v4564_v44, %s9098_s27  ;;  %4655 = vrot.lane.b32.xlu1 %v9079_v39, %s9099_s24  ;;  %s6399_s27 = sshll.u32 %s443_s2, 4  ;;  %s8965_s27 = int_to_ptr.vmem [resolvable:$true] %s6399_s27 }
 0x9a5   : > { %s7395_s21 = scalar_lea.vmem %s8965_s27, 256  ;;  %p7402_p12 = scmp.lt.s32.totalorder %s8965_s27, %s7400_s22 }
 0x9a6   : > { %p7396_p1 = scmp.ne.s32.totalorder %s8965_s27, %s7395_s21  ;;  %p7403_p3 = scmp.lt.s32.totalorder %s7401_s14, %s7395_s21 }
 0x9a8   : > { %4662 = vrot.lane.b32.xlu0 %v4585_v3, %s9100_s23  ;;  %4664 = vrot.lane.b32.xlu1 %v4586_v12, %s9100_s23  ;;  %p7397_p6 = pnand %p7396_p1, %p7661_p4  ;;  %p7404_p7 = por %p7403_p3, %p7402_p12 }
 0x9aa   : > { %p7398_p8 = pneg %p7397_p6 }
 0x9ac   : > { %4666 = vrot.lane.b32.xlu0 %v4587_v52, %s9100_s23  ;;  %4675 = vrot.lane.b32.xlu1 %v4477_v46, %s9085_s16  ;;  %p7405_p10 = pnand %p7404_p7, %p7398_p8 }
 0x9b0   : > { %4679 = vrot.lane.b32.xlu0 %v4479_v14, %s9085_s16  ;;  %4677 = vrot.lane.b32.xlu1 %v4478_v54, %s9085_s16 }
 0x9b1   : > { %v4603_v49 = vpop.permute.xlu1 %4602 }
 0x9b5   : > { %v4614_v42 = vpop.permute.xlu0 %4613 }
 0x9f6   : > { %v4634_v22 = vpop.permute.xlu1 %4633 }
 0x9fa   : > { %v4645_v30 = vpop.permute.xlu0 %4644  ;;  %v4596_v62 = vpop.permute.xlu1 %4595 }
 0x9fb   : > { %4685 = vrot.lane.b32.xlu0 %v4596_v62, %s9085_s16 }
 0x9fe   : > { %v4594_v40 = vpop.permute.xlu0 %4593  ;;  %v4622_v17 = vpop.permute.xlu1 %4621 }
 0x9ff   : > { %4699 = vrot.lane.b32.xlu1 %v4622_v17, %s9085_s16  ;;  %v4598_v4 = vsel %vm2575_vm4, %v4594_v40, %v4596_v62  ;;  %v4597_v33 = vsel %vm2575_vm4, %v4592_v51, %v4594_v40  ;;  %v6524_v40 = vld [vmem:[%s9013_s6 + $0x8] sm:$0xff] }
 0xa02   : > { %v4624_v23 = vpop.permute.xlu0 %4623  ;;  %v4652_v20 = vpop.permute.xlu1 %4651 }
 0xa03   : > { %4703 = vrot.lane.b32.xlu0 %v4624_v23, %s9085_s16  ;;  %4683 = vrot.lane.b32.xlu1 %v4598_v4, %s9085_s16  ;;  %v4625_v59 = vsel %vm2529_vm8, %v4622_v17, %v4624_v23 }
 0xa06   : > { %v4654_v35 = vpop.permute.xlu0 %4653  ;;  %v4605_v9 = vpop.permute.xlu1 %4604 }
 0xa07   : > { %4681 = vrot.lane.b32.xlu0 %v4597_v33, %s9085_s16  ;;  %4701 = vrot.lane.b32.xlu1 %v4625_v59, %s9085_s16  ;;  %v4657_v38 = vsel %vm2728_vm9, %v4652_v20, %v4654_v35  ;;  %v4608_v21 = vsel %vm2675_vm10, %v4603_v49, %v4605_v9 }
 0xa0a   : > { %v4607_v55 = vpop.permute.xlu0 %4606  ;;  %v4616_v32 = vpop.permute.xlu1 %4615 }
 0xa0b   : > { %4719 = vrot.lane.b32.xlu1 %v4657_v38, %s9085_s16  ;;  %v4609_v13 = vsel %vm2675_vm10, %v4605_v9, %v4607_v55  ;;  %v4619_v58 = vsel %vm2687_vm11, %v4614_v42, %v4616_v32 }
 0xa0e   : > { %v4618_v6 = vpop.permute.xlu0 %4617  ;;  %v4630_v24 = vpop.permute.xlu1 %4629 }
 0xa0f   : > { %v4620_v1 = vsel %vm2687_vm11, %v4616_v32, %v4618_v6 }
 0xa12   : > { %v4632_v61 = vpop.permute.xlu0 %4631  ;;  %v4643_v0 = vpop.permute.xlu1 %4642 }
 0xa13   : > { %v4635_v15 = vsel %vm2704_vm12, %v4630_v24, %v4632_v61  ;;  %v4636_v7 = vsel %vm2704_vm12, %v4632_v61, %v4634_v22  ;;  %v4647_v45 = vsel %vm2716_vm13, %v4643_v0, %v4645_v30 }
 0xa16   : > { %v4641_v57 = vpop.permute.xlu0 %4640  ;;  %v4656_v16 = vpop.permute.xlu1 %4655 }
 0xa17   : > { %v4658_v43 = vsel %vm2728_vm9, %v4654_v35, %v4656_v16  ;;  %4711 = vrot.lane.b32.xlu1 %v4641_v57, %s9085_s16  ;;  %v4646_v34 = vsel %vm2716_vm13, %v4641_v57, %v4643_v0  ;;  %v4766_v35 = vsel %vm2837_vm15, %v6524_v40, 0 }
 0xa18   : > { %4721 = vrot.lane.b32.xlu0 %v4658_v43, %s9085_s16  ;;  %v8652_v32 = vand.u32 4294901760, %v4766_v35 }
 0xa1a   : > { %v4663_v11 = vpop.permute.xlu0 %4662  ;;  %v4665_v41 = vpop.permute.xlu1 %4664 }
 0xa1b   : > { %4689 = vrot.lane.b32.xlu1 %v4609_v13, %s9085_s16  ;;  %v4668_v37 = vsel %vm2740_vm14, %v4663_v11, %v4665_v41 }
 0xa1c   : > { %4691 = vrot.lane.b32.xlu0 %v4607_v55, %s9085_s16 }
 0xa1e   : > { %v4667_v53 = vpop.permute.xlu0 %4666  ;;  %v4676_v10 = vpop.permute.xlu1 %4675 }
 0xa1f   : > { %4695 = vrot.lane.b32.xlu1 %v4620_v1, %s9085_s16  ;;  %v4669_v56 = vsel %vm2740_vm14, %v4665_v41, %v4667_v53 }
 0xa20   : > { %4697 = vrot.lane.b32.xlu0 %v4618_v6, %s9085_s16 }
 0xa22   : > { %v4680_v2 = vpop.permute.xlu0 %4679  ;;  %v4678_v60 = vpop.permute.xlu1 %4677 }
 0xa23   : > { %4687 = vrot.lane.b32.xlu1 %v4608_v21, %s9085_s16  ;;  %v4730_v5 = vsel %vm2647_vm7, %v4678_v60, %v4680_v2  ;;  %v4729_v63 = vsel %vm2647_vm7, %v4676_v10, %v4678_v60  ;;  %v8664_v21 = vsub.f32 %v4766_v35, %v8652_v32 }
 0xa24   : > { %4705 = vrot.lane.b32.xlu0 %v4630_v24, %s9085_s16  ;;  %v4768_v48 = vand.u32 4294901760, %v4730_v5  ;;  %v4770_v52 = vand.u32 4294901760, %v4729_v63 }
 0xa26   : > { %v8643_v4 = vsub.f32 %v4729_v63, %v4770_v52  ;;  %v8645_v33 = vsub.f32 %v4730_v5, %v4768_v48 }
 0xa27   : > { %4707 = vrot.lane.b32.xlu1 %v4635_v15, %s9085_s16 }
 0xa28   : > { %4693 = vrot.lane.b32.xlu0 %v4619_v58, %s9085_s16  ;;  %v4870_v55 = vand.u32 4294901760, %v8643_v4  ;;  %v4864_v6 = vand.u32 4294901760, %v8645_v33 }
 0xa2a   : > { %v8660_v16 = vsub.f32 %v8643_v4, %v4870_v55  ;;  %v8669_v58 = vsub.f32 %v8645_v33, %v4864_v6 }
 0xa2b   : > { %4713 = vrot.lane.b32.xlu1 %v4646_v34, %s9085_s16 }
 0xa2c   : > { %4709 = vrot.lane.b32.xlu0 %v4636_v7, %s9085_s16  ;;  %v4872_v53 = vand.u32 4294901760, %v8660_v16 }
 0xa2f   : > { %4725 = vrot.lane.b32.xlu1 %v4668_v37, %s9085_s16 }
 0xa30   : > { %4715 = vrot.lane.b32.xlu0 %v4647_v45, %s9085_s16 }
 0xa33   : > { %4723 = vrot.lane.b32.xlu1 %v4663_v11, %s9085_s16 }
 0xa34   : > { %4717 = vrot.lane.b32.xlu0 %v4652_v20, %s9085_s16 }
 0xa38   : > { %4727 = vrot.lane.b32.xlu0 %v4669_v56, %s9085_s16  ;;  %s6385_s16 = scalar_lea.sflag [#allocation5], %s7710_s5 }
 0xa6d   : > { %v4686_v29 = vpop.permute.xlu0 %4685 }
 0xa71   : > { %v4700_v36 = vpop.permute.xlu1 %4699 }
 0xa75   : > { %v4704_v28 = vpop.permute.xlu0 %4703  ;;  %v4684_v18 = vpop.permute.xlu1 %4683 }
 0xa76   : > { %v4732_v8 = vsel %vm2647_vm7, %v4684_v18, %v4686_v29 }
 0xa77   : > { %v4772_v44 = vand.u32 4294901760, %v4732_v8 }
 0xa79   : > { %v4682_v3 = vpop.permute.xlu0 %4681  ;;  %v8627_v12 = vpack.c.bf16 %v4772_v44, %v4768_v48  ;;  %v4702_v50 = vpop.permute.xlu1 %4701  ;;  %v8671_v34 = vsub.f32 %v4732_v8, %v4772_v44  ;;  %v4866_v44 = vand.u32 4294901760, %v8669_v58 }
 0xa7a   : > { %v4731_v19 = vsel %vm2647_vm7, %v4682_v3, %v4684_v18  ;;  %v4738_v43 = vsel %vm2647_vm7, %v4702_v50, %v4704_v28  ;;  %v4737_v56 = vsel %vm2647_vm7, %v4700_v36, %v4702_v50  ;;  %v4853_v36 = vand.u32 4294901760, %v8664_v21 }
 0xa7b   : > { %v4774_v46 = vand.u32 4294901760, %v4731_v19  ;;  %7021 = vmatprep.subr.bf16.mxu0 %v8627_v12  ;;  %v4784_v45 = vand.u32 4294901760, %v4738_v43  ;;  %v4876_v28 = vand.u32 4294901760, %v8671_v34  ;;  %v4786_v63 = vand.u32 4294901760, %v4737_v56 }
 0xa7d   : > { %v8631_v47 = vpack.c.bf16 %v4774_v46, %v4770_v52  ;;  %v8634_v54 = vpop.permute.xlu1 %4719  ;;  %v8673_v7 = vsub.f32 %v4731_v19, %v4774_v46  ;;  %v8690_v3 = vsub.f32 %v4738_v43, %v4784_v45  ;;  %v8717_v35 = vsub.f32 %v4737_v56, %v4786_v63 }
 0xa7f   : > { %7023 = vmatpush1.bf16.msra.mxu0 %v8631_v47  ;;  %v4882_v18 = vand.u32 4294901760, %v8673_v7 }
 0xa89   : > { %v8636_v14 = vpop.permute.xlu1 %4711 }
 0xa8a   : > { %v4722_v51 = vpop.permute.xlu0 %4721 }
 0xa8b   : > { %v4744_v2 = vsel %vm2647_vm7, %v8634_v54, %v4722_v51 }
 0xa8c   : > { %v4796_v46 = vand.u32 4294901760, %v4744_v2 }
 0xa8d   : > { %v4690_v49 = vpop.permute.xlu1 %4689 }
 0xa8e   : > { %v4692_v42 = vpop.permute.xlu0 %4691 }
 0xa8f   : > { %v4734_v22 = vsel %vm2647_vm7, %v4690_v49, %v4692_v42 }
 0xa90   : > { %v4776_v23 = vand.u32 4294901760, %v4734_v22 }
 0xa91   : > { %v4696_v30 = vpop.permute.xlu1 %4695 }
 0xa92   : > { %v4698_v62 = vpop.permute.xlu0 %4697  ;;  %v8692_v19 = vsub.f32 %v4734_v22, %v4776_v23  ;;  %v4883_v22 = vsub.f32 %v8673_v7, %v4882_v18 }
 0xa93   : > { %v4736_v17 = vsel %vm2647_vm7, %v4696_v30, %v4698_v62 }
 0xa94   : > { %v4780_v20 = vand.u32 4294901760, %v4736_v17 }
 0xa95   : > { %v4688_v59 = vpop.permute.xlu1 %4687 }
 0xa96   : > { %v4706_v9 = vpop.permute.xlu0 %4705  ;;  %v8648_v38 = vpack.c.bf16 %v4780_v20, %v4776_v23  ;;  %v4733_v24 = vsel %vm2647_vm7, %v4688_v59, %v4690_v49  ;;  %v8684_v60 = vsub.f32 %v4736_v17, %v4780_v20  ;;  %v4877_v59 = vsub.f32 %v8671_v34, %v4876_v28 }
 0xa97   : > { %v4778_v13 = vand.u32 4294901760, %v4733_v24 }
 0xa98   : > { %7025 = vmatprep.subr.bf16.mxu0 %v8648_v38  ;;  %v9055_v42 = vand.u32 4294901760, %v8684_v60 }
 0xa99   : > { %v4708_v61 = vpop.permute.xlu1 %4707  ;;  %v8709_v17 = vsub.f32 %v4733_v24, %v4778_v13  ;;  %v4854_v24 = vsub.f32 %v8664_v21, %v4853_v36 }
 0xa9a   : > { %v4694_v0 = vpop.permute.xlu0 %4693  ;;  %v4739_v11 = vsel %vm2647_vm7, %v4706_v9, %v4708_v61 }
 0xa9b   : > { %v4735_v57 = vsel %vm2647_vm7, %v4694_v0, %v4696_v30  ;;  %v4790_v29 = vand.u32 4294901760, %v4739_v11 }
 0xa9c   : > { %v4782_v1 = vand.u32 4294901760, %v4735_v57 }
 0xa9d   : > { %v4714_v15 = vpop.permute.xlu1 %4713  ;;  %v8700_v30 = vpack.c.bf16 %v4790_v29, %v4786_v63 }
 0xa9e   : > { %v8676_v41 = vpack.c.bf16 %v4782_v1, %v4778_v13  ;;  %v4710_v37 = vpop.permute.xlu0 %4709  ;;  %v8695_v50 = vsub.f32 %v4735_v57, %v4782_v1  ;;  %v4741_v62 = vsel %vm2647_vm7, %v8636_v14, %v4714_v15  ;;  %v9056_v14 = vand.u32 4294901760, %v8692_v19 }
 0xa9f   : > { %v4740_v10 = vsel %vm2647_vm7, %v4708_v61, %v4710_v37  ;;  %v8726_v61 = vsub.f32 %v4739_v11, %v4790_v29  ;;  %v4794_v57 = vand.u32 4294901760, %v4741_v62  ;;  %v9059_v1 = vand.u32 4294901760, %v8690_v3 }
 0xaa0   : > { %7027 = vmatpush1.bf16.msra.mxu0 %v8676_v41  ;;  %v4788_v5 = vand.u32 4294901760, %v4740_v10  ;;  %v9053_v0 = vand.u32 4294901760, %v8695_v50  ;;  %v4884_v37 = vand.u32 4294901760, %v4883_v22  ;;  %v9057_v11 = vand.u32 4294901760, %v8709_v17 }
 0xaa1   : > { %v4726_v8 = vpop.permute.xlu1 %4725  ;;  %v8740_v29 = vsub.f32 %v4744_v2, %v4796_v46  ;;  %v4889_v63 = vsub.f32 %v8692_v19, %v9056_v14 }
 0xaa2   : > { %v4716_v48 = vpop.permute.xlu0 %4715  ;;  %v8697_v49 = vpack.c.bf16 %v4788_v5, %v4784_v45  ;;  %v8704_v40 = vsub.f32 %v4740_v10, %v4788_v5  ;;  %v4878_v10 = vand.u32 4294901760, %v4877_v59 }
 0xaa3   : > { %v4742_v52 = vsel %vm2647_vm7, %v4714_v15, %v4716_v48 }
 0xaa4   : > { %v4792_v51 = vand.u32 4294901760, %v4742_v52  ;;  %7029 = vmatprep.subr.bf16.mxu0 %v8697_v49  ;;  %v9054_v15 = vand.u32 4294901760, %v8704_v40 }
 0xaa5   : > { %7031 = vmatpush1.bf16.msra.mxu0 %v8700_v30  ;;  %v4724_v43 = vpop.permute.xlu1 %4723 }
 0xaa6   : > { %v4718_v23 = vpop.permute.xlu0 %4717  ;;  %v8712_v20 = vpack.c.bf16 %v4796_v46, %v4792_v51  ;;  %v8732_v58 = vsub.f32 %v4742_v52, %v4792_v51  ;;  %v4745_v5 = vsel %vm2647_vm7, %v4724_v43, %v4726_v8  ;;  %v9058_v52 = vand.u32 4294901760, %v8726_v61 }
 0xaa7   : > { %v4743_v9 = vsel %vm2647_vm7, %v4718_v23, %v8634_v54  ;;  %v4901_v54 = vsub.f32 %v8684_v60, %v9055_v42  ;;  %v4907_v51 = vsub.f32 %v8695_v50, %v9053_v0  ;;  %v4855_v46 = vand.u32 4294901760, %v4854_v24 }
 0xaa8   : > { %v4798_v13 = vand.u32 4294901760, %v4743_v9  ;;  %7033 = vmatprep.subr.bf16.mxu0 %v8712_v20  ;;  %v4936_v2 = vand.u32 4294901760, %v8732_v58  ;;  %v4925_v59 = vsub.f32 %v8704_v40, %v9054_v15  ;;  %v4918_v43 = vand.u32 4294901760, %v8717_v35 }
 0xaa9   : > { %v9060_v0 = vand.u32 4294901760, %v8740_v29  ;;  %v7036_v24 = vpack.c.bf16 %v4878_v10, %v4866_v44  ;;  %v4913_v15 = vsub.f32 %v8690_v3, %v9059_v1  ;;  %v4931_v42 = vsub.f32 %v8726_v61, %v9058_v52 }
 0xaaa   : > { %v8738_v45 = vpack.c.bf16 %v4798_v13, %v4794_v57  ;;  %v4728_v56 = vpop.permute.xlu0 %4727  ;;  %v8751_v22 = vsub.f32 %v4743_v9, %v4798_v13  ;;  %v8764_v9 = vsub.f32 %v4741_v62, %v4794_v57  ;;  %v8766_v13 = vand.u32 4294901760, %v4745_v5 }
 0xaab   : > { %v4746_v48 = vsel %vm2647_vm7, %v4726_v8, %v4728_v56  ;;  %v4902_v8 = vand.u32 4294901760, %v4901_v54  ;;  %v4895_v56 = vsub.f32 %v8709_v17, %v9057_v11  ;;  %v4890_v54 = vand.u32 4294901760, %v4889_v63 }
 0xaac   : > { %v8753_v23 = vand.u32 4294901760, %v4746_v48  ;;  %7035 = vmatpush1.bf16.msra.mxu0 %v8738_v45  ;;  %v4908_v14 = vand.u32 4294901760, %v4907_v51  ;;  %v4954_v62 = vand.u32 4294901760, %v8751_v22  ;;  %v7038_v57 = vpack.c.bf16 %v4884_v37, %v4872_v53 }
 0xaad   : > { %v7040_v44 = vpack.c.bf16 %v4902_v8, %v4890_v54  ;;  %v4926_v10 = vand.u32 4294901760, %v4925_v59  ;;  %v4937_v63 = vsub.f32 %v8732_v58, %v4936_v2  ;;  %v4919_v51 = vsub.f32 %v8717_v35, %v4918_v43 }
 0xaae   : > { %4801 = vmatprep.subr.mxu0 %v8753_v23  ;;  %v8781_v11 = vsub.f32 %v4746_v48, %v8753_v23  ;;  %v4896_v52 = vand.u32 4294901760, %v4895_v56  ;;  %v4942_v1 = vand.u32 4294901760, %v8764_v9  ;;  %v4914_v16 = vand.u32 4294901760, %v4913_v15 }
 0xaaf   : > { %v4949_v53 = vsub.f32 %v8740_v29, %v9060_v0  ;;  %v4932_v37 = vand.u32 4294901760, %v4931_v42  ;;  %v8795_v48 = vsub.f32 %v4745_v5, %v8766_v13  ;;  %v4938_v56 = vand.u32 4294901760, %v4937_v63 }
 0xab0   : > { %4803 = vmatpush1.msra.mxu0 %v8766_v13  ;;  %v7042_v8 = vpack.c.bf16 %v4908_v14, %v4896_v52  ;;  %v7044_v59 = vpack.c.bf16 %v4926_v10, %v4914_v16  ;;  %v4920_v54 = vand.u32 4294901760, %v4919_v51  ;;  %v4943_v15 = vsub.f32 %v8764_v9, %v4942_v1 }
 0xab1   : > { %7037 = vmatprep.subr.bf16.mxu0 %v7036_v24  ;;  %4856 = vmatmul.mubr.f32.vlgmr.msra.gmra.mrb[6].mxu0 %v4855_v46  ;;  %v4955_v46 = vsub.f32 %v8751_v22, %v4954_v62  ;;  %v4960_v24 = vand.u32 4294901760, %v8781_v11  ;;  %v4950_v42 = vand.u32 4294901760, %v4949_v53  ;;  %v4966_v5 = vand.u32 4294901760, %v8795_v48 }
 0xab2   : > { %7039 = vmatpush1.bf16.msra.mxu0 %v7038_v57  ;;  %5016 = vmatprep.mubr.f32.mxu0 %v9079_v39  ;;  %v4944_v52 = vand.u32 4294901760, %v4943_v15  ;;  %v7052_v53 = vpack.c.bf16 %v8671_v34, %v8645_v33  ;;  %v7084_v15 = vpack.c.bf16 %v4876_v28, %v4864_v6  ;;  %v9103_v33 = vand.u32 4294901760, %v8709_v17 }
 0xab3   : > { %7041 = vmatprep.subr.bf16.mxu0 %v7040_v44  ;;  %v4956_v57 = vand.u32 4294901760, %v4955_v46  ;;  %v7046_v44 = vpack.c.bf16 %v4932_v37, %v4920_v54  ;;  %v7048_v0 = vpack.c.bf16 %v4950_v42, %v4938_v56  ;;  %v4961_v14 = vsub.f32 %v8781_v11, %v4960_v24 }
 0xab4   : > { %v4967_v10 = vsub.f32 %v8795_v48, %v4966_v5  ;;  %v7054_v37 = vpack.c.bf16 %v8673_v7, %v8643_v4  ;;  %v7058_v46 = vpack.c.bf16 %v8695_v50, %v8709_v17  ;;  %v7064_v56 = vpack.c.bf16 %v8740_v29, %v8732_v58 }
 0xab5   : > { %v7050_v63 = vpack.c.bf16 %v4956_v57, %v4944_v52  ;;  %v4962_v51 = vand.u32 4294901760, %v4961_v14  ;;  %v7066_v54 = vpack.c.bf16 %v8751_v22, %v8764_v9  ;;  %v7086_v42 = vpack.c.bf16 %v4882_v18, %v4870_v55 }
 0xab6   : > { %7043 = vmatpush1.bf16.msra.mxu0 %v7042_v8  ;;  %v4968_v16 = vand.u32 4294901760, %v4967_v10  ;;  %v7060_v8 = vpack.c.bf16 %v8704_v40, %v8690_v3  ;;  %v9101_v57 = vand.u32 4294901760, %v8692_v19  ;;  %v9104_v4 = vand.u32 4294901760, %v8695_v50 }
 0xab7   : > { %7045 = vmatprep.subr.bf16.mxu0 %v7044_v59  ;;  %v7062_v59 = vpack.c.bf16 %v8726_v61, %v8717_v35  ;;  %v9105_v55 = vand.u32 4294901760, %v8690_v3  ;;  %v9106_v34 = vand.u32 4294901760, %v8704_v40  ;;  %v9107_v7 = vand.u32 4294901760, %v8726_v61 }
 0xab8   : > { %v7090_v6 = vpack.c.bf16 %v9104_v4, %v9103_v33  ;;  %v9108_v28 = vand.u32 4294901760, %v8740_v29 }
 0xaba   : > { %7047 = vmatpush1.bf16.msra.mxu0 %v7046_v44  ;;  %v9102_v44 = vand.u32 4294901760, %v8684_v60  ;;  %v7096_v18 = vpack.c.bf16 %v9108_v28, %v4936_v2 }
 0xabb   : > { %7049 = vmatprep.subr.bf16.mxu0 %v7048_v0  ;;  %v7056_v0 = vpack.c.bf16 %v8684_v60, %v8692_v19  ;;  %v7094_v60 = vpack.c.bf16 %v9107_v7, %v4918_v43 }
 0xabc   : > { %v7088_v14 = vpack.c.bf16 %v9102_v44, %v9101_v57 }
 0xabe   : > { %7051 = vmatpush1.bf16.msra.mxu0 %v7050_v63 }
 0xabf   : > { %4963 = vmatprep.subr.mxu0 %v4962_v51 }
 0xac2   : > { %4969 = vmatpush1.msra.mxu0 %v4968_v16 }
 0xac3   : > { %7053 = vmatprep.subr.bf16.mxu0 %v7052_v53  ;;  %5018 = vmatmul.mubr.f32.vlgmr.msra.gmra.mrb[6].mxu0 %v8652_v32 }
 0xac4   : > { %7055 = vmatpush1.bf16.msra.mxu0 %v7054_v37  ;;  %5124 = vmatprep.mubr.f32.mxu0 %v9079_v39 }
 0xac5   : > { %7057 = vmatprep.subr.bf16.mxu0 %v7056_v0 }
 0xac8   : > { %7059 = vmatpush1.bf16.msra.mxu0 %v7058_v46 }
 0xac9   : > { %7061 = vmatprep.subr.bf16.mxu0 %v7060_v8 }
 0xacc   : > { %7063 = vmatpush1.bf16.msra.mxu0 %v7062_v59 }
 0xacd   : > { %7065 = vmatprep.subr.bf16.mxu0 %v7064_v56 }
 0xad0   : > { %7067 = vmatpush1.bf16.msra.mxu0 %v7066_v54 }
 0xad1   : > { %5074 = vmatprep.subr.mxu0 %v8781_v11 }
 0xad4   : > { %5077 = vmatpush1.msra.mxu0 %v8795_v48 }
 0xad5   : > { %7069 = vmatprep.subr.bf16.mxu0 %v8627_v12  ;;  %5127 = vmatmul.mubr.f32.vlgmr.msra.gmra.mrb[6].mxu0 %v8664_v21  ;;  %v7092_v21 = vpack.c.bf16 %v9106_v34, %v9105_v55 }
 0xad6   : > { %7071 = vmatpush1.bf16.msra.mxu0 %v8631_v47  ;;  %5215 = vmatprep.mubr.f32.mxu0 %v9079_v39 }
 0xad7   : > { %7073 = vmatprep.subr.bf16.mxu0 %v8648_v38 }
 0xada   : > { %7075 = vmatpush1.bf16.msra.mxu0 %v8676_v41 }
 0xadb   : > { %7077 = vmatprep.subr.bf16.mxu0 %v8697_v49 }
 0xade   : > { %7079 = vmatpush1.bf16.msra.mxu0 %v8700_v30 }
 0xadf   : > { %7081 = vmatprep.subr.bf16.mxu0 %v8712_v20 }
 0xae2   : > { %7083 = vmatpush1.bf16.msra.mxu0 %v8738_v45 }
 0xae3   : > { %5166 = vmatprep.subr.mxu0 %v8753_v23 }
 0xae6   : > { %5168 = vmatpush1.msra.mxu0 %v8766_v13 }
 0xae7   : > { %7085 = vmatprep.subr.bf16.mxu0 %v7084_v15  ;;  %5219 = vmatmul.mubr.f32.vlgmr.msra.gmra.mrb[6].mxu0 %v4853_v36  ;;  %v7098_v36 = vpack.c.bf16 %v4954_v62, %v4942_v1 }
 0xae8   : > { %7087 = vmatpush1.bf16.msra.mxu0 %v7086_v42  ;;  %5343 = vmatprep.mubr.f32.mxu0 %v9079_v39 }
 0xae9   : > { %7089 = vmatprep.subr.bf16.mxu0 %v7088_v14 }
 0xaec   : > { %7091 = vmatpush1.bf16.msra.mxu0 %v7090_v6 }
 0xaed   : > { %7093 = vmatprep.subr.bf16.mxu0 %v7092_v21 }
 0xaf0   : > { %7095 = vmatpush1.bf16.msra.mxu0 %v7094_v60 }
 0xaf1   : > { %7097 = vmatprep.subr.bf16.mxu0 %v7096_v18 }
 0xaf4   : > { %7099 = vmatpush1.bf16.msra.mxu0 %v7098_v36 }
 0xaf5   : > { %5292 = vmatprep.subr.mxu0 %v4960_v24 }
 0xaf8   : > { %5296 = vmatpush1.msra.mxu0 %v4966_v5 }
 0xaf9   : > { %7101 = vmatprep.subr.bf16.mxu0 %v8627_v12  ;;  %5345 = vmatmul.mubr.f32.vlgmr.msra.gmra.mrb[6].mxu0 %v8652_v32 }
 0xafa   : > { %7103 = vmatpush1.bf16.msra.mxu0 %v8631_v47  ;;  %5433 = vmatprep.mubr.f32.mxu0 %v9079_v39 }
 0xafb   : > { %7105 = vmatprep.subr.bf16.mxu0 %v8648_v38 }
 0xafe   : > { %7107 = vmatpush1.bf16.msra.mxu0 %v8676_v41 }
 0xaff   : > { %7109 = vmatprep.subr.bf16.mxu0 %v8697_v49 }
 0xb02   : > { %7111 = vmatpush1.bf16.msra.mxu0 %v8700_v30 }
 0xb03   : > { %7113 = vmatprep.subr.bf16.mxu0 %v8712_v20 }
 0xb06   : > { %7115 = vmatpush1.bf16.msra.mxu0 %v8738_v45 }
 0xb07   : > { %5384 = vmatprep.subr.mxu0 %v8753_v23 }
 0xb0a   : > { %5386 = vmatpush1.msra.mxu0 %v8766_v13 }
 0xb0b   : > { %5435 = vmatmul.mubr.f32.vlgmr.msra.gmra.mrb[6].mxu0 %v8652_v32 }
 0xbde   : > { %v8895_v12 = vpop.f32.mrb[6].mxu0 }
 0xbdf   : > { %v5449_v47 = vmul.f32 %v8895_v12, %v8895_v12  ;;  %v8899_v38 = vpop.f32.mrb[7].mxu0 }
 0xbe0   : > { %v5445_v41 = vadd.f32 %v8899_v38, %v8895_v12  ;;  %v5450_v3 = vmul.f32 %v8899_v38, %v8899_v38 }
 0xbe2   : > { %v5451_v19 = vadd.f32 %v5450_v3, %v5449_v47  ;;  %5446 = vadd.xlane.f32.xlu0 %v5445_v41 }
 0xbe4   : > { %5452 = vadd.xlane.f32.xlu1 %v5451_v19 }
 0xc6f   : > { %v5447_v50 = vpop.xlane.xlu0 %5446 }
 0xc70   : > { %v5448_v49 = vmul.f32 0.00390625, %v5447_v50 }
 0xc71   : > { %v5453_v35 = vpop.xlane.xlu1 %5452 }
 0xc72   : > { %v5456_v30 = vand.u32 4294901760, %v5448_v49  ;;  %v5454_v61 = vmul.f32 0.00390625, %v5453_v35 }
 0xc74   : > { %v5533_v32 = vsub.f32 %v5448_v49, %v5456_v30  ;;  %6769 = vmatpush3.msra.mxu1 %v5456_v30  ;;  %v5902_v1 = vand.u32 4294901760, %v5454_v61 }
 0xc75   : > { %6771 = vmatmul.mubr.f32.vlgmr.msra.gmra.mrb[12].mxu1 %v7768_v31  ;;  %6773 = vmatprep.subr.mxu1 %v9079_v39 }
 0xc76   : > { %v5534_v40 = vand.u32 4294901760, %v5533_v32  ;;  %6775 = vmatprep.mubr.msk.f32.mxu1 %vm7473_vm0, %v9079_v39  ;;  %v5979_v58 = vsub.f32 %v5454_v61, %v5902_v1 }
 0xc78   : > { %v5535_v17 = vsub.f32 %v5533_v32, %v5534_v40  ;;  %v5980_v11 = vand.u32 4294901760, %v5979_v58 }
 0xc7a   : > { %v5536_v20 = vand.u32 4294901760, %v5535_v17  ;;  %v5981_v45 = vsub.f32 %v5979_v58, %v5980_v11 }
 0xc7c   : > { %6774 = vmatpush3.msra.mxu1 %v5536_v20  ;;  %v5982_v29 = vand.u32 4294901760, %v5981_v45 }
 0xc7d   : > { %6776 = vmatmul.mubr.f32.vlgmr.msra.gmra.mrb[12].mxu1 %v7758_v25  ;;  %6778 = vmatprep.subr.mxu1 %v9079_v39 }
 0xc7e   : > { %6779 = vmatpush3.msra.mxu1 %v5533_v32  ;;  %6780 = vmatprep.mubr.msk.f32.mxu1 %vm7473_vm0, %v9079_v39 }
 0xc7f   : > { %6783 = vmatprep.subr.mxu1 %v9079_v39 }
 0xc85   : > { %6781 = vmatmul.mubr.f32.vlgmr.msra.gmra.mrb[12].mxu1 %v7761_v26 }
 0xc86   : > { %6784 = vmatpush3.msra.mxu1 %v5456_v30  ;;  %6785 = vmatprep.mubr.msk.f32.mxu1 %vm7473_vm0, %v9079_v39 }
 0xc87   : > { %6788 = vmatprep.subr.mxu1 %v9079_v39 }
 0xc8d   : > { %6786 = vmatmul.mubr.f32.vlgmr.msra.gmra.mrb[12].mxu1 %v7764_v27 }
 0xc8e   : > { %6789 = vmatpush3.msra.mxu1 %v5534_v40  ;;  %6790 = vmatprep.mubr.msk.f32.mxu1 %vm7473_vm0, %v9079_v39 }
 0xc8f   : > { %6793 = vmatprep.subr.mxu1 %v9079_v39 }
 0xc95   : > { %6791 = vmatmul.mubr.f32.vlgmr.msra.gmra.mrb[12].mxu1 %v7758_v25 }
 0xc96   : > { %6794 = vmatpush3.msra.mxu1 %v5456_v30  ;;  %6795 = vmatprep.mubr.msk.f32.mxu1 %vm7473_vm0, %v9079_v39 }
 0xc97   : > { %6798 = vmatprep.subr.mxu1 %v9079_v39 }
 0xc9d   : > { %6796 = vmatmul.mubr.f32.vlgmr.msra.gmra.mrb[12].mxu1 %v7758_v25 }
 0xc9e   : > { %6799 = vmatpush3.msra.mxu1 %v5902_v1  ;;  %6800 = vmatprep.mubr.msk.f32.mxu1 %vm7473_vm0, %v9079_v39 }
 0xc9f   : > { %6803 = vmatprep.subr.mxu1 %v9079_v39 }
 0xca1   : > { %6801 = vmatmul.mubr.f32.vlgmr.msra.gmra.mrb[14].mxu1 %v7768_v31 }
 0xca2   : > { %6804 = vmatpush3.msra.mxu1 %v5982_v29  ;;  %6805 = vmatprep.mubr.msk.f32.mxu1 %vm7473_vm0, %v9079_v39 }
 0xca3   : > { %6808 = vmatprep.subr.mxu1 %v9079_v39 }
 0xca9   : > { %6806 = vmatmul.mubr.f32.vlgmr.msra.gmra.mrb[14].mxu1 %v7758_v25 }
 0xcaa   : > { %6809 = vmatpush3.msra.mxu1 %v5979_v58  ;;  %6810 = vmatprep.mubr.msk.f32.mxu1 %vm7473_vm0, %v9079_v39 }
 0xcab   : > { %6813 = vmatprep.subr.mxu1 %v9079_v39 }
 0xcb1   : > { %6811 = vmatmul.mubr.f32.vlgmr.msra.gmra.mrb[14].mxu1 %v7761_v26 }
 0xcb2   : > { %6814 = vmatpush3.msra.mxu1 %v5902_v1  ;;  %6815 = vmatprep.mubr.msk.f32.mxu1 %vm7473_vm0, %v9079_v39 }
 0xcb3   : > { %6818 = vmatprep.subr.mxu1 %v9079_v39 }
 0xcb9   : > { %6816 = vmatmul.mubr.f32.vlgmr.msra.gmra.mrb[14].mxu1 %v7764_v27  ;;  %v6525_v27 = vld [vmem:[%s9014_s7 + $0x8] sm:$0xff] }
 0xcba   : > { %6819 = vmatpush3.msra.mxu1 %v5980_v11  ;;  %6820 = vmatprep.mubr.msk.f32.mxu1 %vm7473_vm0, %v9079_v39 }
 0xcbb   : > { %6823 = vmatprep.subr.mxu1 %v9079_v39 }
 0xcc1   : > { %6821 = vmatmul.mubr.f32.vlgmr.msra.gmra.mrb[14].mxu1 %v7758_v25 }
 0xcc2   : > { %6824 = vmatpush3.msra.mxu1 %v5902_v1  ;;  %6825 = vmatprep.mubr.msk.f32.mxu1 %vm7473_vm0, %v9079_v39 }
 0xcc9   : > { %6826 = vmatmul.mubr.f32.vlgmr.msra.gmra.mrb[14].mxu1 %v7758_v25  ;;  %v6526_v25 = vld [vmem:[%s9015_s8 + $0x8] sm:$0xff] }
 0xd70   : > { %v5897_v26 = vpop.f32.mrb[12].mxu1 }
 0xd71   : > { %6352 = vperm.xlu0 %7301, %v5897_v26   ;;  %v6797_v31 = vpop.f32.mrb[13].mxu1  ;;  %v6347_v22 = vmul.f32 %v5897_v26, %v5897_v26 }
 0xd75   : > { %6368 = vperm.xlu0 %7301, %v6525_v27  }
 0xd9c   : > { %v6343_v23 = vpop.f32.mrb[14].mxu1 }
 0xd9d   : > { %v6348_v2 = vsub.f32 %v6343_v23, %v6347_v22  ;;  %v6827_v43 = vpop.f32.mrb[15].mxu1 }
 0xd9f   : > { %v6349_v9 = vmax.f32 %v6348_v2, 0.0 }
 0xda1   : > { %v6357_v13 = vadd.f32 1e-05, %v6349_v9 }
 0xda3   : > { %7307 = vrsqrt.f32 %v6357_v13 }
 0xdad   : > { %v7308_v39 = vpop.eup %7307 }
 0xdae   : > { %6361 = vperm.xlu1 %7302, %v7308_v39  }
 0xdb2   : > { %6375 = vperm.xlu1 %7302, %v6526_v25  }
 0xdf0   : > { %v6353_v62 = vpop.permute.xlu0 %6352 }
 0xdf1   : > { %v6355_v48 = vsub.f32 %v8895_v12, %v6353_v62  ;;  %v6356_v24 = vsub.f32 %v8899_v38, %v6353_v62 }
 0xdf4   : > { %v6369_v63 = vpop.permute.xlu0 %6368 }
 0xe2d   : > { %v6362_v5 = vpop.permute.xlu1 %6361 }
 0xe2e   : > { %v6364_v52 = vmul.f32 %v6362_v5, %v6355_v48  ;;  %v6365_v10 = vmul.f32 %v6362_v5, %v6356_v24 }
 0xe30   : > { %v6371_v51 = vmul.f32 %v6369_v63, %v6364_v52  ;;  %v6372_v16 = vmul.f32 %v6369_v63, %v6365_v10 }
 0xe31   : > { %v6376_v53 = vpop.permute.xlu1 %6375 }
 0xe32   : > { %v6378_v37 = vadd.f32 %v6376_v53, %v6371_v51  ;;  %v6379_v0 = vadd.f32 %v6376_v53, %v6372_v16 }
 0xe34   : > { %v6380_v46 = vmax.f32 %v6378_v37, 0.0  ;;  %v6381_v8 = vmax.f32 %v6379_v0, 0.0 }
 0xe36   : > { %6382 = vst [vmem:[%s443_s2] sm:$0xff] %v6380_v46  ;;  %6383 = vst [vmem:[%s443_s2 + $0x8] sm:$0xff] %v6381_v8 }
 0xe37   : > { %7408 = shalt.err (!%p7405_p10)
}
 0xe38   : > { %s7409_s5 = scalar_lea.hbm %s8963_s25, 256  ;;  %s7413_s12 = scalar_lea.hbm %s9018_s11, 512 }
 0xe39   : > { %p7410_p13 = scmp.ne.s32.totalorder %s8963_s25, %s7409_s5  ;;  %p7414_p9 = scmp.lt.u32.totalorder %s8963_s25, %s9018_s11 }
 0xe3a   : > { %p7415_p11 = scmp.lt.u32.totalorder %s7413_s12, %s7409_s5  ;;  %p7417_p1 = scmp.lt.u32.totalorder %s7409_s5, %s8963_s25 }
 0xe3b   : > { %p7411_p5 = pnand %p7410_p13, %p7661_p4 }
 0xe3c   : > { %p7416_p2 = por %p7415_p11, %p7414_p9 }
 0xe3d   : > { %p7412_p0 = pneg %p7411_p5 }
 0xe3e   : > { %p7418_p6 = por %p7417_p1, %p7416_p2 }
 0xe40   : > { %p7419_p8 = pnand %p7418_p6, %p7412_p0 }
 0xe42   : > { %7422 = shalt.err (!%p7419_p8)
}
 0xe43   : > { %7227 = dma.vmem_to_hbm [thread:$0]  (%p7661_p4), %s8965_s27, 256, %s8963_s25, %s6385_s16  }
 0xe44 PF: > { %s9109_s23 = sld [smem:[#allocation13_spill]]  ;;  %s6411_s21 = sand.u32 1, %s7453_s17  }
 0xe45   : > { %p9111_p3 = scmp.ge.s32.totalorder %s7465_s20, 2  ;;  %s6412_s13 = scalar_lea.sflag [#allocation5], %s6411_s21 }
 0xe4a   : > { %p9110_p12 = scmp.ne.s32.totalorder %s9109_s23, 0 }
 0xe4c   : > { %p7241_p7 = pnand %p9111_p3, %p9110_p12 }
 0xe4e   : > { %7448 = dma.done.wait (!%p7241_p7), %s6412_s13, 256  }
 0xe4f   : > { %7450 = vsyncadd (!%p7241_p7), %s6412_s13, 4294967040  ;;  %p25_p10 = scmp.ge.s32.totalorder %s7651_s15, 4   ;;  %s9112_s17 = smov %s7457_s18 }
 0xe50   : > { %s9113_s18 = smov %s7461_s19  ;;  %s9114_s19 = smov %s7667_s28 }
 0xe51   : > { %s9115_s20 = smov %s7651_s15  ;;  %27 = sbr.rel (!%p25_p10) target bundleno = 9 (0x9), region = 128 }
 0xe58   :  { %6417 = vsyncpa [#allocation4], 1 }
 0xe59   :  { %6419 = vsyncpa [#allocation4 + $0x1], 1 }
 0xe5a   :  { %6420 = vsyncpa [#allocation7], 1 }
 0xe5b   :  { %6421 = vsyncpa [#allocation5], 1 }
 0xe5c   :  { %6423 = vsyncpa [#allocation5 + $0x1], 1 }

</bundles_post_ra>
